<compile_context>
chip_gen: v5e
topology: v5e:2x2
jax: 0.10.0
libtpu: 0.0.40
codegen_flags: <defaults>
</compile_context>

<pallas_src>
import jax
import jax.numpy as jnp
from jax.experimental import pallas as pl
from jax.experimental.pallas import tpu as pltpu

IN_FEATURES = 28 * 28          # 784
H1, H2, H3 = 1024, 512, 256
OUT_FEATURES = 1
NEG_SLOPE = 0.2
MAX_TILE_M = 1024


def _leaky_relu(x, slope=NEG_SLOPE):
    return jnp.where(x > 0, x, slope * x)


def _round_up(x, m):
    return ((x + m - 1) // m) * m


def discriminator_kernel(x_ref,
                         w1_ref, b1_ref,
                         w2_ref, b2_ref,
                         w3_ref, b3_ref,
                         w4_ref, b4_ref,
                         o_ref):
    # In-kernel bf16 cast of the activation tile (no wrapper-side HBM pass).
    x = x_ref[...].astype(jnp.bfloat16)                       # (TM, 784)

    # Layer 1: (TM,784)bf16 @ (784,1024)bf16 -> f32 accumulate (Mosaic pads K).
    h = jnp.dot(x, w1_ref[...], preferred_element_type=jnp.float32)
    h = _leaky_relu(h.astype(jnp.bfloat16) + b1_ref[...])     # bf16 epilogue
    # Dropout(0.3) -> identity at inference.

    # Layer 2: (TM,1024) @ (1024,512)
    h = jnp.dot(h, w2_ref[...], preferred_element_type=jnp.float32)
    h = _leaky_relu(h.astype(jnp.bfloat16) + b2_ref[...])

    # Layer 3: (TM,512) @ (512,256)
    h = jnp.dot(h, w3_ref[...], preferred_element_type=jnp.float32)
    h = _leaky_relu(h.astype(jnp.bfloat16) + b3_ref[...])

    # Layer 4: N=1 output -> VPU multiply + f32 lane reduction instead of a
    # 1-wide MXU matmul (which would use 1/256 of the MXU lanes for no work).
    logit = jnp.sum(h.astype(jnp.float32) * w4_ref[...], axis=-1, keepdims=True)
    logit = logit + b4_ref[...]
    o_ref[...] = jax.nn.sigmoid(logit)


def _pick_tile(batch):
    """Batch tile: track the batch up to 1024; split >=512 batches into >=2 steps
    so both v7x TensorCores get work under the 'parallel' grid axis."""
    tile_m = min(MAX_TILE_M, max(16, _round_up(batch, 16)))
    if batch >= 512:
        tile_m = min(tile_m, _round_up((batch + 1) // 2, 16))
    return tile_m


@jax.jit
def discriminator_forward(img, params):
    """img: any shape with 28*28 trailing elements per example (e.g. (B,1,28,28))."""
    x = img.reshape(-1, IN_FEATURES)                 # == torch .view(-1, 784)
    if x.dtype not in (jnp.float32, jnp.bfloat16):
        x = x.astype(jnp.float32)
    batch = x.shape[0]

    tile_m = _pick_tile(batch)
    padded_b = _round_up(batch, tile_m)
    if padded_b != batch:
        # Row-only zero pad, emitted only when the batch doesn't divide the tile.
        # (No feature pad, no dtype cast here -- both folded into the kernel.)
        x = jnp.pad(x, ((0, padded_b - batch), (0, 0)))

    w1, b1, w2, b2, w3, b3, w4, b4 = params
    grid = (padded_b // tile_m,)

    def resident(shape):
        # Constant block index -> stays resident in VMEM across grid steps; a single
        # pipeline buffer is enough (the default double buffer would be dead VMEM).
        return pl.BlockSpec(shape, lambda i: (0,) * len(shape),
                            pipeline_mode=pl.Buffered(1))

    out = pl.pallas_call(
        discriminator_kernel,
        out_shape=jax.ShapeDtypeStruct((padded_b, OUT_FEATURES), jnp.float32),
        grid_spec=pltpu.PrefetchScalarGridSpec(
            num_scalar_prefetch=0,
            grid=grid,
            in_specs=[
                pl.BlockSpec((tile_m, IN_FEATURES), lambda i: (i, 0)),
                resident((IN_FEATURES, H1)), resident((1, H1)),
                resident((H1, H2)), resident((1, H2)),
                resident((H2, H3)), resident((1, H3)),
                resident((1, H3)), resident((1, OUT_FEATURES)),
            ],
            out_specs=pl.BlockSpec((tile_m, OUT_FEATURES), lambda i: (i, 0)),
        ),
        compiler_params=pltpu.CompilerParams(
            dimension_semantics=("parallel",),   # v7x megacore; no-op on 1-TC chips
            vmem_limit_bytes=32 << 20,           # covers TM=1024 tiles comfortably
        ),
    )(x, w1, b1, w2, b2, w3, b3, w4, b4)

    return out[:batch]


def init_params(key):
    """torch.nn.Linear-style init: U(-1/sqrt(fan_in), 1/sqrt(fan_in)).
    Kernel layout: weights (in_features, out_features); w1..w3 and b1..b3 stored bf16;
    w4 stored as a (1,256) f32 row; b4 f32 (1,1)."""
    dims = [(IN_FEATURES, H1), (H1, H2), (H2, H3), (H3, OUT_FEATURES)]
    raw = []
    for (fan_in, fan_out) in dims:
        key, kw, kb = jax.random.split(key, 3)
        bound = 1.0 / float(fan_in) ** 0.5
        w = jax.random.uniform(kw, (fan_in, fan_out), jnp.float32, -bound, bound)
        b = jax.random.uniform(kb, (1, fan_out), jnp.float32, -bound, bound)
        raw.extend([w, b])
    w1, b1, w2, b2, w3, b3, w4, b4 = raw
    return (w1.astype(jnp.bfloat16), b1.astype(jnp.bfloat16),
            w2.astype(jnp.bfloat16), b2.astype(jnp.bfloat16),
            w3.astype(jnp.bfloat16), b3.astype(jnp.bfloat16),
            w4.reshape(1, H3).astype(jnp.float32), b4.astype(jnp.float32))


def reference_forward(img, params):
    """Pure-JAX f32 reference using the same (bf16-stored) weights."""
    x = img.reshape(-1, IN_FEATURES).astype(jnp.float32)
    w1, b1, w2, b2, w3, b3, w4, b4 = params
    h = _leaky_relu(x @ w1.astype(jnp.float32) + b1.astype(jnp.float32))
    h = _leaky_relu(h @ w2.astype(jnp.float32) + b2.astype(jnp.float32))
    h = _leaky_relu(h @ w3.astype(jnp.float32) + b3.astype(jnp.float32))
    return jax.nn.sigmoid(h @ w4.astype(jnp.float32).reshape(H3, OUT_FEATURES) + b4)


if __name__ == "__main__":
    key = jax.random.PRNGKey(0)
    k_img, k_params = jax.random.split(key)

    # Small example input consistent with the module: a batch of 28x28 images (NCHW).
    img = jax.random.normal(k_img, (2, 1, 28, 28), dtype=jnp.float32)
    params = init_params(k_params)

    out = discriminator_forward(img, params)
    out = jax.block_until_ready(out)

    ref = reference_forward(img, params)
    assert out.shape == (2, 1), out.shape
    # bf16 matmul inputs + bf16 epilogue (f32 accumulation) -> loosened tolerance
    # vs the f32 reference.
    assert jnp.allclose(out, ref, atol=2e-2, rtol=2e-2), (out, ref)

    print("KERNEL_OK")
</pallas_src>

<mosaic_0001>
module attributes {stable_mosaic.version = 11 : i64} {
  func.func @discriminator_kernel(%arg0: i32, %arg1: memref<16x784xf32, #tpu.memory_space<vmem>>, %arg2: memref<784x1024xbf16, #tpu.memory_space<vmem>>, %arg3: memref<1x1024xbf16, #tpu.memory_space<vmem>>, %arg4: memref<1024x512xbf16, #tpu.memory_space<vmem>>, %arg5: memref<1x512xbf16, #tpu.memory_space<vmem>>, %arg6: memref<512x256xbf16, #tpu.memory_space<vmem>>, %arg7: memref<1x256xbf16, #tpu.memory_space<vmem>>, %arg8: memref<1x256xf32, #tpu.memory_space<vmem>>, %arg9: memref<1x1xf32, #tpu.memory_space<vmem>>, %arg10: memref<16x1xf32, #tpu.memory_space<vmem>>) attributes {dimension_semantics = [#tpu.dimension_semantics<parallel>], iteration_bounds = array<i64: 1>, scalar_prefetch = 0 : i64, scratch_operands = 0 : i64, tpu.core_type = #tpu.core_type<tc>, window_params = [{transform_indices = @transform_0, window_bounds = array<i64: 16, 784>}, {pipeline_mode = #tpu.pipeline_mode<synchronous>, transform_indices = @transform_1, window_bounds = array<i64: 784, 1024>}, {pipeline_mode = #tpu.pipeline_mode<synchronous>, transform_indices = @transform_2, window_bounds = array<i64: 1, 1024>}, {pipeline_mode = #tpu.pipeline_mode<synchronous>, transform_indices = @transform_3, window_bounds = array<i64: 1024, 512>}, {pipeline_mode = #tpu.pipeline_mode<synchronous>, transform_indices = @transform_4, window_bounds = array<i64: 1, 512>}, {pipeline_mode = #tpu.pipeline_mode<synchronous>, transform_indices = @transform_5, window_bounds = array<i64: 512, 256>}, {pipeline_mode = #tpu.pipeline_mode<synchronous>, transform_indices = @transform_6, window_bounds = array<i64: 1, 256>}, {pipeline_mode = #tpu.pipeline_mode<synchronous>, transform_indices = @transform_7, window_bounds = array<i64: 1, 256>}, {pipeline_mode = #tpu.pipeline_mode<synchronous>, transform_indices = @transform_8, window_bounds = array<i64: 1, 1>}, {transform_indices = @transform_9, window_bounds = array<i64: 16, 1>}]} {
    %c0 = arith.constant 0 : index
    %c0_0 = arith.constant 0 : index
    %0 = vector.load %arg1[%c0, %c0_0] : memref<16x784xf32, #tpu.memory_space<vmem>>, vector<16x784xf32>
    %1 = arith.truncf %0 : vector<16x784xf32> to vector<16x784xbf16>
    %c0_1 = arith.constant 0 : index
    %c0_2 = arith.constant 0 : index
    %2 = vector.load %arg2[%c0_1, %c0_2] : memref<784x1024xbf16, #tpu.memory_space<vmem>>, vector<784x1024xbf16>
    %cst = arith.constant dense<0.000000e+00> : vector<16x1024xf32>
    %3 = tpu.matmul %1, %2, %cst {dimension_numbers = #tpu.dot_dimension_numbers<[1], [0], [0], [1], [0, 0, 1, 1], [], []>} : vector<16x784xbf16>, vector<784x1024xbf16>, vector<16x1024xf32> -> vector<16x1024xf32>
    %4 = arith.truncf %3 : vector<16x1024xf32> to vector<16x1024xbf16>
    %c0_3 = arith.constant 0 : index
    %c0_4 = arith.constant 0 : index
    %5 = vector.load %arg3[%c0_3, %c0_4] : memref<1x1024xbf16, #tpu.memory_space<vmem>>, vector<1x1024xbf16>
    %6 = vector.broadcast %5 : vector<1x1024xbf16> to vector<16x1024xbf16>
    %7 = arith.addf %4, %6 : vector<16x1024xbf16>
    %cst_5 = arith.constant 0.000000e+00 : bf16
    %8 = vector.broadcast %cst_5 : bf16 to vector<16x1024xbf16>
    %9 = arith.cmpf ogt, %7, %8 : vector<16x1024xbf16>
    %cst_6 = arith.constant 2.001950e-01 : bf16
    %10 = vector.broadcast %cst_6 : bf16 to vector<16x1024xbf16>
    %11 = arith.mulf %10, %7 : vector<16x1024xbf16>
    %12 = arith.select %9, %7, %11 : vector<16x1024xi1>, vector<16x1024xbf16>
    %c0_7 = arith.constant 0 : index
    %c0_8 = arith.constant 0 : index
    %13 = vector.load %arg4[%c0_7, %c0_8] : memref<1024x512xbf16, #tpu.memory_space<vmem>>, vector<1024x512xbf16>
    %cst_9 = arith.constant dense<0.000000e+00> : vector<16x512xf32>
    %14 = tpu.matmul %12, %13, %cst_9 {dimension_numbers = #tpu.dot_dimension_numbers<[1], [0], [0], [1], [0, 0, 1, 1], [], []>} : vector<16x1024xbf16>, vector<1024x512xbf16>, vector<16x512xf32> -> vector<16x512xf32>
    %15 = arith.truncf %14 : vector<16x512xf32> to vector<16x512xbf16>
    %c0_10 = arith.constant 0 : index
    %c0_11 = arith.constant 0 : index
    %16 = vector.load %arg5[%c0_10, %c0_11] : memref<1x512xbf16, #tpu.memory_space<vmem>>, vector<1x512xbf16>
    %17 = vector.broadcast %16 : vector<1x512xbf16> to vector<16x512xbf16>
    %18 = arith.addf %15, %17 : vector<16x512xbf16>
    %cst_12 = arith.constant 0.000000e+00 : bf16
    %19 = vector.broadcast %cst_12 : bf16 to vector<16x512xbf16>
    %20 = arith.cmpf ogt, %18, %19 : vector<16x512xbf16>
    %cst_13 = arith.constant 2.001950e-01 : bf16
    %21 = vector.broadcast %cst_13 : bf16 to vector<16x512xbf16>
    %22 = arith.mulf %21, %18 : vector<16x512xbf16>
    %23 = arith.select %20, %18, %22 : vector<16x512xi1>, vector<16x512xbf16>
    %c0_14 = arith.constant 0 : index
    %c0_15 = arith.constant 0 : index
    %24 = vector.load %arg6[%c0_14, %c0_15] : memref<512x256xbf16, #tpu.memory_space<vmem>>, vector<512x256xbf16>
    %cst_16 = arith.constant dense<0.000000e+00> : vector<16x256xf32>
    %25 = tpu.matmul %23, %24, %cst_16 {dimension_numbers = #tpu.dot_dimension_numbers<[1], [0], [0], [1], [0, 0, 1, 1], [], []>} : vector<16x512xbf16>, vector<512x256xbf16>, vector<16x256xf32> -> vector<16x256xf32>
    %26 = arith.truncf %25 : vector<16x256xf32> to vector<16x256xbf16>
    %c0_17 = arith.constant 0 : index
    %c0_18 = arith.constant 0 : index
    %27 = vector.load %arg7[%c0_17, %c0_18] : memref<1x256xbf16, #tpu.memory_space<vmem>>, vector<1x256xbf16>
    %28 = vector.broadcast %27 : vector<1x256xbf16> to vector<16x256xbf16>
    %29 = arith.addf %26, %28 : vector<16x256xbf16>
    %cst_19 = arith.constant 0.000000e+00 : bf16
    %30 = vector.broadcast %cst_19 : bf16 to vector<16x256xbf16>
    %31 = arith.cmpf ogt, %29, %30 : vector<16x256xbf16>
    %cst_20 = arith.constant 2.001950e-01 : bf16
    %32 = vector.broadcast %cst_20 : bf16 to vector<16x256xbf16>
    %33 = arith.mulf %32, %29 : vector<16x256xbf16>
    %34 = arith.select %31, %29, %33 : vector<16x256xi1>, vector<16x256xbf16>
    %35 = arith.extf %34 : vector<16x256xbf16> to vector<16x256xf32>
    %c0_21 = arith.constant 0 : index
    %c0_22 = arith.constant 0 : index
    %36 = vector.load %arg8[%c0_21, %c0_22] : memref<1x256xf32, #tpu.memory_space<vmem>>, vector<1x256xf32>
    %37 = vector.broadcast %36 : vector<1x256xf32> to vector<16x256xf32>
    %38 = arith.mulf %35, %37 : vector<16x256xf32>
    %cst_23 = arith.constant dense<0.000000e+00> : vector<16xf32>
    %39 = vector.multi_reduction <add>, %38, %cst_23 [1] : vector<16x256xf32> to vector<16xf32>
    %40 = vector.shape_cast %39 : vector<16xf32> to vector<16x1xf32>
    %c0_24 = arith.constant 0 : index
    %c0_25 = arith.constant 0 : index
    %41 = vector.load %arg9[%c0_24, %c0_25] : memref<1x1xf32, #tpu.memory_space<vmem>>, vector<1x1xf32>
    %42 = vector.broadcast %41 : vector<1x1xf32> to vector<16x1xf32>
    %43 = arith.addf %40, %42 : vector<16x1xf32>
    %44 = arith.negf %43 : vector<16x1xf32>
    %45 = math.exp %44 : vector<16x1xf32>
    %cst_26 = arith.constant 1.000000e+00 : f32
    %46 = vector.broadcast %cst_26 : f32 to vector<16x1xf32>
    %47 = arith.addf %46, %45 : vector<16x1xf32>
    %48 = arith.divf %46, %47 : vector<16x1xf32>
    %c0_27 = arith.constant 0 : index
    %c0_28 = arith.constant 0 : index
    %49 = vector.load %arg10[%c0_27, %c0_28] : memref<16x1xf32, #tpu.memory_space<vmem>>, vector<16x1xf32>
    tpu.vector_store %arg10[%c0_27, %c0_28], %48 {strides = array<i32>} : memref<16x1xf32, #tpu.memory_space<vmem>>, vector<16x1xf32>,
    return
  }
  func.func @transform_0(%arg0: i32) -> (i32, i32) {
    %c0_i32 = arith.constant 0 : i32
    %c0_i32_0 = arith.constant 0 : i32
    return %arg0, %c0_i32 : i32, i32
  }
  func.func @transform_1(%arg0: i32) -> (i32, i32) {
    %c0_i32 = arith.constant 0 : i32
    %c0_i32_0 = arith.constant 0 : i32
    %c0_i32_1 = arith.constant 0 : i32
    return %c0_i32, %c0_i32_0 : i32, i32
  }
  func.func @transform_2(%arg0: i32) -> (i32, i32) {
    %c0_i32 = arith.constant 0 : i32
    %c0_i32_0 = arith.constant 0 : i32
    %c0_i32_1 = arith.constant 0 : i32
    return %c0_i32, %c0_i32_0 : i32, i32
  }
  func.func @transform_3(%arg0: i32) -> (i32, i32) {
    %c0_i32 = arith.constant 0 : i32
    %c0_i32_0 = arith.constant 0 : i32
    %c0_i32_1 = arith.constant 0 : i32
    return %c0_i32, %c0_i32_0 : i32, i32
  }
  func.func @transform_4(%arg0: i32) -> (i32, i32) {
    %c0_i32 = arith.constant 0 : i32
    %c0_i32_0 = arith.constant 0 : i32
    %c0_i32_1 = arith.constant 0 : i32
    return %c0_i32, %c0_i32_0 : i32, i32
  }
  func.func @transform_5(%arg0: i32) -> (i32, i32) {
    %c0_i32 = arith.constant 0 : i32
    %c0_i32_0 = arith.constant 0 : i32
    %c0_i32_1 = arith.constant 0 : i32
    return %c0_i32, %c0_i32_0 : i32, i32
  }
  func.func @transform_6(%arg0: i32) -> (i32, i32) {
    %c0_i32 = arith.constant 0 : i32
    %c0_i32_0 = arith.constant 0 : i32
    %c0_i32_1 = arith.constant 0 : i32
    return %c0_i32, %c0_i32_0 : i32, i32
  }
  func.func @transform_7(%arg0: i32) -> (i32, i32) {
    %c0_i32 = arith.constant 0 : i32
    %c0_i32_0 = arith.constant 0 : i32
    %c0_i32_1 = arith.constant 0 : i32
    return %c0_i32, %c0_i32_0 : i32, i32
  }
  func.func @transform_8(%arg0: i32) -> (i32, i32) {
    %c0_i32 = arith.constant 0 : i32
    %c0_i32_0 = arith.constant 0 : i32
    %c0_i32_1 = arith.constant 0 : i32
    return %c0_i32, %c0_i32_0 : i32, i32
  }
  func.func @transform_9(%arg0: i32) -> (i32, i32) {
    %c0_i32 = arith.constant 0 : i32
    %c0_i32_0 = arith.constant 0 : i32
    return %arg0, %c0_i32 : i32, i32
  }
}

</mosaic_0001>

<bundles_post_ra>
// kernel: discriminator_forward.1
= control target key start
LH: loop header
LB: loop body
LE: loop exit
PB: predicated region body
PF: predicated region fallthrough
CT: control target
= control target key end

     0   :  { %s10734_s0 = inlined_call_operand.vmem [shape: f32[16,784], index: 0, kind: input, shape index: {}]   ;;  %s10735_s1 = inlined_call_operand.hbm [shape: bf16[784,1024], index: 1, kind: input, shape index: {}]   ;;  %s10736_s2 = inlined_call_operand.hbm [shape: bf16[1,1024], index: 2, kind: input, shape index: {}]   ;;  %s10737_s3 = inlined_call_operand.hbm [shape: bf16[1024,512], index: 3, kind: input, shape index: {}]   ;;  %s10738_s4 = inlined_call_operand.hbm [shape: bf16[1,512], index: 4, kind: input, shape index: {}]   ;;  %s10739_s5 = inlined_call_operand.hbm [shape: bf16[512,256], index: 5, kind: input, shape index: {}]   ;;  %s10740_s6 = inlined_call_operand.hbm [shape: bf16[1,256], index: 6, kind: input, shape index: {}]   ;;  %s10741_s7 = inlined_call_operand.hbm [shape: f32[1,256], index: 7, kind: input, shape index: {}]   ;;  %s10742_s8 = inlined_call_operand.<no memory space> [shape: f32[1,1], index: 8, kind: input, shape index: {}]   ;;  %s10743_s9 = inlined_call_operand.vmem [shape: f32[16,1], index: 9, kind: output, shape index: {}]  }
   0x1   :  { %v14_v0 = vstv %s10742_s8 }
   0x2   :  { %15 = vst [vmem:[#allocation2] sm:$0x1] %v14_v0 }
   0x3   :  { %16 = vsyncpa [#allocation4], 0 }
   0x4   :  { %17 = vsyncpa [#allocation6], 0 }
   0x5   :  { %18 = vsyncpa [#allocation9], 0  ;;  %s40_s13 = sshll.u32 %s10736_s2, 4  ;;  %s41_s13 = int_to_ptr.hbm [resolvable:$true] %s40_s13 }
   0x6   :  { %19 = vsyncpa [#allocation12], 0  ;;  %s9969_s14 = smov [#allocation5]   ;;  %s64_s18 = sshll.u32 %s10738_s4, 4  ;;  %s65_s18 = int_to_ptr.hbm [resolvable:$true] %s64_s18 }
   0x7   :  { %s42_s15 = sshll.u32 %s9969_s14, 4  ;;  %s9970_s8 = smov [#allocation8]   ;;  %s43_s15 = int_to_ptr.vmem [resolvable:$true] %s42_s15 }
   0x8   :  { %45 = dma.hbm_to_vmem [thread:$0]  %s41_s13, 128, %s43_s15, [#allocation6]  }
   0x9   :  { %s66_s19 = sshll.u32 %s9970_s8, 4  ;;  %s88_s22 = sshll.u32 %s10740_s6, 4  ;;  %s67_s19 = int_to_ptr.vmem [resolvable:$true] %s66_s19  ;;  %s89_s22 = int_to_ptr.hbm [resolvable:$true] %s88_s22 }
   0xa   :  { %69 = dma.hbm_to_vmem [thread:$0]  %s65_s18, 64, %s67_s19, [#allocation9]  }
   0xb   :  { %s26_s24 = sshll.u32 %s10735_s1, 4  ;;  %s9971_s25 = smov [#allocation11]   ;;  %s27_s24 = int_to_ptr.hbm [resolvable:$true] %s26_s24 }
   0xc   :  { %s90_s26 = sshll.u32 %s9971_s25, 4  ;;  %s9972_s4 = smov [#allocation3]   ;;  %s91_s26 = int_to_ptr.vmem [resolvable:$true] %s90_s26 }
   0xd   :  { %93 = dma.hbm_to_vmem [thread:$0]  %s89_s22, 32, %s91_s26, [#allocation12]  }
   0xe   :  { %s28_s27 = sshll.u32 %s9972_s4, 4  ;;  %s9973_s28 = smov 512   ;;  %s29_s27 = int_to_ptr.vmem [resolvable:$true] %s28_s27 }
   0xf   :  { %s9974_s29 = smov 32   ;;  %s50_s10 = sshll.u32 %s10737_s3, 4  ;;  %s51_s10 = int_to_ptr.hbm [resolvable:$true] %s50_s10 }
  0x10   :  { %34 = dma.hbm_to_vmem [thread:$0]  %s27_s24, 50176, %s29_s27, [#allocation4], %s9973_s28, %s9973_s28, %s9974_s29  }
  0x11   :  { %s9975_s11 = smov [#allocation7]   ;;  %s74_s14 = sshll.u32 %s10739_s5, 4  ;;  %s75_s14 = int_to_ptr.hbm [resolvable:$true] %s74_s14 }
  0x12   :  { %s52_s12 = sshll.u32 %s9975_s11, 4  ;;  %s9976_s15 = smov 256   ;;  %s53_s12 = int_to_ptr.vmem [resolvable:$true] %s52_s12 }
  0x13   :  { %s9977_s16 = smov 16   ;;  %s9978_s17 = smov [#allocation10]  }
  0x14   :  { %58 = dma.hbm_to_vmem [thread:$0]  %s51_s10, 32768, %s53_s12, [#allocation6], %s9976_s15, %s9976_s15, %s9977_s16  }
  0x15   :  { %s76_s18 = sshll.u32 %s9978_s17, 4  ;;  %s9979_s8 = smov 128   ;;  %s77_s18 = int_to_ptr.vmem [resolvable:$true] %s76_s18 }
  0x16   :  { %s9980_s19 = smov 8   ;;  %s99_s21 = sshll.u32 %s10741_s7, 4  ;;  %s100_s21 = int_to_ptr.hbm [resolvable:$true] %s99_s21 }
  0x17   :  { %82 = dma.hbm_to_vmem [thread:$0]  %s75_s14, 8192, %s77_s18, [#allocation9], %s9979_s8, %s9979_s8, %s9980_s19  }
  0x18   :  { %s9981_s22 = smov [#allocation13]  }
  0x19   :  { %s101_s2 = sshll.u32 %s9981_s22, 4  ;;  %s102_s2 = int_to_ptr.vmem [resolvable:$true] %s101_s2 }
  0x1a   :  { %104 = dma.hbm_to_vmem [thread:$0]  %s100_s21, 32, %s102_s2, [#allocation12]  }
  0x1b   :  { %9961 = dma.done.wait [#allocation4], 50176  }
  0x1c   :  { %9962 = vsyncadd [#allocation4], 4294917120 }
  0x1d   :  { %9963 = dma.done.wait [#allocation6], 32896  }
  0x1e   :  { %9964 = vsyncadd [#allocation6], 4294934400 }
  0x1f   :  { %9965 = dma.done.wait [#allocation9], 8256  }
  0x20   :  { %9966 = vsyncadd [#allocation9], 4294959040 }
  0x21   :  { %9967 = dma.done.wait [#allocation12], 64  }
  0x22   :  { %9968 = vsyncadd [#allocation12], 4294967232  ;;  %v6427_v1 = vld [vmem:[#allocation3 + $0x1c0] sm:$0xf]  ;;  %vm2509_vm0 = vcmask 130048  }
  0x23   :  { %v9119_v2 = vld [vmem:[#allocation3 + $0x1dc] sm:$0xf0] }
  0x24   :  { %v6683_v3 = vld [vmem:[#allocation3 + $0x3c0] sm:$0xf]  ;;  %v6428_v4 = vor.u32 %v9119_v2, %v6427_v1 }
  0x25   :  { %v9183_v5 = vld [vmem:[#allocation3 + $0x3dc] sm:$0xf0] }
  0x26   :  { %v6939_v6 = vld [vmem:[#allocation3 + $0x5c0] sm:$0xf]  ;;  %v6684_v8 = vor.u32 %v9183_v5, %v6683_v3  ;;  %2513 = vmatpush.bf16.msra.mxu0 %v6428_v4 }
  0x27   :  { %v9247_v7 = vld [vmem:[#allocation3 + $0x5dc] sm:$0xf0] }
  0x28   :  { %v6940_v9 = vor.u32 %v9247_v7, %v6939_v6  ;;  %v7195_v10 = vld [vmem:[#allocation3 + $0x7c0] sm:$0xf]  ;;  %2527 = vmatpush.bf16.msra.mxu1 %v6684_v8 }
  0x29   :  { %v9311_v11 = vld [vmem:[#allocation3 + $0x7dc] sm:$0xf0] }
  0x2a   :  { %v6395_v12 = vld [vmem:[#allocation3 + $0x180] sm:$0xf]  ;;  %v7196_v13 = vor.u32 %v9311_v11, %v7195_v10  ;;  %2541 = vmatpush.bf16.msra.mxu2 %v6940_v9 }
  0x2b   :  { %v9111_v14 = vld [vmem:[#allocation3 + $0x19c] sm:$0xf0] }
  0x2c   :  { %v6651_v15 = vld [vmem:[#allocation3 + $0x380] sm:$0xf]  ;;  %v6396_v17 = vor.u32 %v9111_v14, %v6395_v12  ;;  %2555 = vmatpush.bf16.msra.mxu3 %v7196_v13 }
  0x2d   :  { %v9175_v16 = vld [vmem:[#allocation3 + $0x39c] sm:$0xf0] }
  0x2e   :  { %v6652_v18 = vor.u32 %v9175_v16, %v6651_v15  ;;  %v6907_v19 = vld [vmem:[#allocation3 + $0x580] sm:$0xf]  ;;  %2514 = vmatpush.bf16.msra.mxu0 %v6396_v17 }
  0x2f   :  { %v9239_v20 = vld [vmem:[#allocation3 + $0x59c] sm:$0xf0] }
  0x30   :  { %v7163_v21 = vld [vmem:[#allocation3 + $0x780] sm:$0xf]  ;;  %v6908_v22 = vor.u32 %v9239_v20, %v6907_v19  ;;  %2528 = vmatpush.bf16.msra.mxu1 %v6652_v18 }
  0x31   :  { %v9303_v23 = vld [vmem:[#allocation3 + $0x79c] sm:$0xf0] }
  0x32   :  { %v6363_v24 = vld [vmem:[#allocation3 + $0x140] sm:$0xf]  ;;  %v7164_v26 = vor.u32 %v9303_v23, %v7163_v21  ;;  %2542 = vmatpush.bf16.msra.mxu2 %v6908_v22 }
  0x33   :  { %v9103_v25 = vld [vmem:[#allocation3 + $0x15c] sm:$0xf0] }
  0x34   :  { %v6619_v27 = vld [vmem:[#allocation3 + $0x340] sm:$0xf]  ;;  %v6364_v30 = vor.u32 %v9103_v25, %v6363_v24  ;;  %2556 = vmatpush.bf16.msra.mxu3 %v7164_v26 }
  0x35   :  { %v9167_v28 = vld [vmem:[#allocation3 + $0x35c] sm:$0xf0] }
  0x36   :  { %v6875_v29 = vld [vmem:[#allocation3 + $0x540] sm:$0xf]  ;;  %v6620_v34 = vor.u32 %v9167_v28, %v6619_v27  ;;  %2515 = vmatpush.bf16.msra.mxu0 %v6364_v30 }
  0x37   :  { %v9231_v31 = vld [vmem:[#allocation3 + $0x55c] sm:$0xf0] }
  0x38   :  { %v7131_v32 = vld [vmem:[#allocation3 + $0x740] sm:$0xf]  ;;  %v6876_v35 = vor.u32 %v9231_v31, %v6875_v29  ;;  %2529 = vmatpush.bf16.msra.mxu1 %v6620_v34  ;;  %v6429_v34 = vld [vmem:[#allocation3 + $0x1e0] sm:$0xf0] }
  0x39   :  { %v9295_v33 = vld [vmem:[#allocation3 + $0x75c] sm:$0xf0] }
  0x3a   :  { %v6331_v36 = vld [vmem:[#allocation3 + $0x100] sm:$0xf]  ;;  %v7132_v39 = vor.u32 %v9295_v33, %v7131_v32  ;;  %2543 = vmatpush.bf16.msra.mxu2 %v6876_v35  ;;  %v9115_v33 = vld [vmem:[#allocation3 + $0x1c4] sm:$0xf] }
  0x3b   :  { %v9095_v37 = vld [vmem:[#allocation3 + $0x11c] sm:$0xf0]  ;;  %v138_v35 = vld [vmem:[%s10734_s0 + $0x10] sm:$0xff] }
  0x3c   :  { %v6587_v38 = vld [vmem:[#allocation3 + $0x300] sm:$0xf]  ;;  %v6332_v45 = vor.u32 %v9095_v37, %v6331_v36  ;;  %2557 = vmatpush.bf16.msra.mxu3 %v7132_v39 }
  0x3d   :  { %v9159_v40 = vld [vmem:[#allocation3 + $0x31c] sm:$0xf0] }
  0x3e   :  { %v6843_v41 = vld [vmem:[#allocation3 + $0x500] sm:$0xf]  ;;  %v6588_v46 = vor.u32 %v9159_v40, %v6587_v38  ;;  %2516 = vmatpush.bf16.msra.mxu0 %v6332_v45 }
  0x3f   :  { %v9223_v42 = vld [vmem:[#allocation3 + $0x51c] sm:$0xf0] }
  0x40   :  { %v7099_v43 = vld [vmem:[#allocation3 + $0x700] sm:$0xf]  ;;  %v6844_v47 = vor.u32 %v9223_v42, %v6843_v41  ;;  %2530 = vmatpush.bf16.msra.mxu1 %v6588_v46  ;;  %v9179_v42 = vld [vmem:[#allocation3 + $0x3c4] sm:$0xf] }
  0x41   :  { %v9287_v44 = vld [vmem:[#allocation3 + $0x71c] sm:$0xf0] }
  0x42   :  { %v6299_v48 = vld [vmem:[#allocation3 + $0xc0] sm:$0xf]  ;;  %v7100_v51 = vor.u32 %v9287_v44, %v7099_v43  ;;  %2544 = vmatpush.bf16.msra.mxu2 %v6844_v47  ;;  %v136_v43 = vld [vmem:[%s10734_s0] sm:$0xff]  ;;  %v143_v44 = vld [vmem:[%s10734_s0 + $0x38] sm:$0xff] }
  0x43   :  { %v9087_v49 = vld [vmem:[#allocation3 + $0xdc] sm:$0xf0]  ;;  %v6685_v47 = vld [vmem:[#allocation3 + $0x3e0] sm:$0xf0] }
  0x44   :  { %v6555_v50 = vld [vmem:[#allocation3 + $0x2c0] sm:$0xf]  ;;  %v6300_v57 = vor.u32 %v9087_v49, %v6299_v48  ;;  %2558 = vmatpush.bf16.msra.mxu3 %v7100_v51  ;;  %v139_v48 = vld [vmem:[%s10734_s0 + $0x18] sm:$0xff]  ;;  %v146_v49 = vld [vmem:[%s10734_s0 + $0x50] sm:$0xff]  ;;  %v6432_v51 = vor.u32 %v9115_v33, %v6429_v34 }
  0x45   :  { %v9151_v52 = vld [vmem:[#allocation3 + $0x2dc] sm:$0xf0] }
  0x46   :  { %v6811_v53 = vld [vmem:[#allocation3 + $0x4c0] sm:$0xf]  ;;  %v6556_v58 = vor.u32 %v9151_v52, %v6555_v50  ;;  %2517 = vmatpush.bf16.msra.mxu0 %v6300_v57  ;;  %v9107_v57 = vld [vmem:[#allocation3 + $0x184] sm:$0xf] }
  0x47   :  { %v9215_v54 = vld [vmem:[#allocation3 + $0x4dc] sm:$0xf0] }
  0x48   :  { %v7067_v55 = vld [vmem:[#allocation3 + $0x6c0] sm:$0xf]  ;;  %v6812_v59 = vor.u32 %v9215_v54, %v6811_v53  ;;  %2531 = vmatpush.bf16.msra.mxu1 %v6556_v58  ;;  %v6397_v58 = vld [vmem:[#allocation3 + $0x1a0] sm:$0xf0] }
  0x49   :  { %v9279_v56 = vld [vmem:[#allocation3 + $0x6dc] sm:$0xf0] }
  0x4a   :  { %v6267_v60 = vld [vmem:[#allocation3 + $0x80] sm:$0xf]  ;;  %v7068_v63 = vor.u32 %v9279_v56, %v7067_v55  ;;  %2545 = vmatpush.bf16.msra.mxu2 %v6812_v59  ;;  %v10076_v59 = vpack.c.bf16 %v143_v44, %v136_v43 }
  0x4b   :  { %v9079_v61 = vld [vmem:[#allocation3 + $0x9c] sm:$0xf0] }
  0x4c   :  { %v6523_v62 = vld [vmem:[#allocation3 + $0x280] sm:$0xf]  ;;  %v6268_v5 = vor.u32 %v9079_v61, %v6267_v60  ;;  %2559 = vmatpush.bf16.msra.mxu3 %v7068_v63  ;;  %v10078_v61 = vpack.c.bf16 %v146_v49, %v139_v48  ;;  %v144_v63 = vld [vmem:[%s10734_s0 + $0x40] sm:$0xff]  ;;  %v9075_v49 = vld [vmem:[#allocation3 + $0x84] sm:$0xf] }
  0x4d   :  { %v9143_v0 = vld [vmem:[#allocation3 + $0x29c] sm:$0xf0] }
  0x4e   :  { %v6779_v1 = vld [vmem:[#allocation3 + $0x480] sm:$0xf]  ;;  %v6524_v7 = vor.u32 %v9143_v0, %v6523_v62  ;;  %2518 = vmatpush.bf16.msra.mxu0 %v6268_v5  ;;  %10748 = vst [vmem:[#allocation19_spill] sm:$0xff] %v10078_v61  ;;  %v6688_v0 = vor.u32 %v9179_v42, %v6685_v47  ;;  %v6400_v5 = vor.u32 %v9107_v57, %v6397_v58  ;;  %v6557_v42 = vld [vmem:[#allocation3 + $0x2e0] sm:$0xf0] }
  0x4f   :  { %v9207_v2 = vld [vmem:[#allocation3 + $0x49c] sm:$0xf0] }
  0x50   :  { %v7035_v3 = vld [vmem:[#allocation3 + $0x680] sm:$0xf]  ;;  %v6780_v8 = vor.u32 %v9207_v2, %v6779_v1  ;;  %2532 = vmatpush.bf16.msra.mxu1 %v6524_v7  ;;  %v9171_v2 = vld [vmem:[#allocation3 + $0x384] sm:$0xf] }
  0x51   :  { %v9271_v4 = vld [vmem:[#allocation3 + $0x69c] sm:$0xf0] }
  0x52   :  { %v6235_v6 = vld [vmem:[#allocation3 + $0x40] sm:$0xf]  ;;  %v7036_v12 = vor.u32 %v9271_v4, %v7035_v3  ;;  %2546 = vmatpush.bf16.msra.mxu2 %v6780_v8  ;;  %v6653_v3 = vld [vmem:[#allocation3 + $0x3a0] sm:$0xf0] }
  0x53   :  { %v9071_v9 = vld [vmem:[#allocation3 + $0x5c] sm:$0xf0] }
  0x54   :  { %v6491_v10 = vld [vmem:[#allocation3 + $0x240] sm:$0xf]  ;;  %v6236_v19 = vor.u32 %v9071_v9, %v6235_v6  ;;  %2560 = vmatpush.bf16.msra.mxu3 %v7036_v12  ;;  %v6365_v12 = vld [vmem:[#allocation3 + $0x160] sm:$0xf0] }
  0x55   :  { %v9135_v11 = vld [vmem:[#allocation3 + $0x25c] sm:$0xf0] }
  0x56   :  { %v6747_v13 = vld [vmem:[#allocation3 + $0x440] sm:$0xf]  ;;  %v6492_v24 = vor.u32 %v9135_v11, %v6491_v10  ;;  %2519 = vmatpush.bf16.msra.mxu0 %v6236_v19  ;;  %v9099_v11 = vld [vmem:[#allocation3 + $0x144] sm:$0xf] }
  0x57   :  { %v9199_v14 = vld [vmem:[#allocation3 + $0x45c] sm:$0xf0] }
  0x58   :  { %v7003_v15 = vld [vmem:[#allocation3 + $0x640] sm:$0xf]  ;;  %v6748_v25 = vor.u32 %v9199_v14, %v6747_v13  ;;  %2533 = vmatpush.bf16.msra.mxu1 %v6492_v24  ;;  %v6656_v13 = vor.u32 %v9171_v2, %v6653_v3  ;;  %v6333_v24 = vld [vmem:[#allocation3 + $0x120] sm:$0xf0] }
  0x59   :  { %v9263_v16 = vld [vmem:[#allocation3 + $0x65c] sm:$0xf0]  ;;  %v6237_v2 = vld [vmem:[#allocation3 + $0x60] sm:$0xf0] }
  0x5a   :  { %v6203_v17 = vld [vmem:[#allocation3] sm:$0xf]  ;;  %v7004_v29 = vor.u32 %v9263_v16, %v7003_v15  ;;  %2547 = vmatpush.bf16.msra.mxu2 %v6748_v25  ;;  %v9163_v15 = vld [vmem:[#allocation3 + $0x344] sm:$0xf] }
  0x5b   :  { %v9063_v18 = vld [vmem:[#allocation3 + $0x1c] sm:$0xf0]  ;;  %v6621_v16 = vld [vmem:[#allocation3 + $0x360] sm:$0xf0] }
  0x5c   :  { %v6459_v20 = vld [vmem:[#allocation3 + $0x200] sm:$0xf]  ;;  %v6204_v36 = vor.u32 %v9063_v18, %v6203_v17  ;;  %2561 = vmatpush.bf16.msra.mxu3 %v7004_v29  ;;  %v6368_v18 = vor.u32 %v9099_v11, %v6365_v12  ;;  %v6624_v25 = vor.u32 %v9163_v15, %v6621_v16  ;;  %v9131_v3 = vld [vmem:[#allocation3 + $0x244] sm:$0xf] }
  0x5d   :  { %v9127_v21 = vld [vmem:[#allocation3 + $0x21c] sm:$0xf0]  ;;  %v6205_v15 = vld [vmem:[#allocation3 + $0x20] sm:$0xf0] }
  0x5e   :  { %v6715_v22 = vld [vmem:[#allocation3 + $0x400] sm:$0xf]  ;;  %v6460_v40 = vor.u32 %v9127_v21, %v6459_v20  ;;  %2520 = vmatpush.bf16.msra.mxu0 %v6204_v36  ;;  %v6301_v36 = vld [vmem:[#allocation3 + $0xe0] sm:$0xf0] }
  0x5f   :  { %v9191_v23 = vld [vmem:[#allocation3 + $0x41c] sm:$0xf0]  ;;  %v9243_v16 = vld [vmem:[#allocation3 + $0x5c4] sm:$0xf] }
  0x60   :  { %v6971_v26 = vld [vmem:[#allocation3 + $0x600] sm:$0xf]  ;;  %v6716_v41 = vor.u32 %v9191_v23, %v6715_v22  ;;  %2534 = vmatpush.bf16.msra.mxu1 %v6460_v40  ;;  %v9091_v23 = vld [vmem:[#allocation3 + $0x104] sm:$0xf] }
  0x61   :  { %v9255_v27 = vld [vmem:[#allocation3 + $0x61c] sm:$0xf0]  ;;  %2521 = vmatmul.bf16.vlgmr.msra.gmra.mxu0 %v10076_v59 }
  0x62   :  { %v7451_v28 = vld [vmem:[#allocation3 + $0x9c0] sm:$0xf]  ;;  %v6972_v45 = vor.u32 %v9255_v27, %v6971_v26  ;;  %2548 = vmatpush.bf16.msra.mxu2 %v6716_v41  ;;  %v9155_v27 = vld [vmem:[#allocation3 + $0x304] sm:$0xf] }
  0x63   :  { %v9375_v30 = vld [vmem:[#allocation3 + $0x9dc] sm:$0xf0]  ;;  %v9147_v41 = vld [vmem:[#allocation3 + $0x2c4] sm:$0xf] }
  0x64   :  { %v7707_v31 = vld [vmem:[#allocation3 + $0xbc0] sm:$0xf]  ;;  %v7452_v46 = vor.u32 %v9375_v30, %v7451_v28  ;;  %2562 = vmatpush.bf16.msra.mxu3 %v6972_v45  ;;  %v6589_v28 = vld [vmem:[#allocation3 + $0x320] sm:$0xf0]  ;;  %v6336_v30 = vor.u32 %v9091_v23, %v6333_v24  ;;  %v140_v24 = vld [vmem:[%s10734_s0 + $0x20] sm:$0xff] }
  0x65   :  { %v9439_v32 = vld [vmem:[#allocation3 + $0xbdc] sm:$0xf0] }
  0x66   :  { %v145_v37 = vld [vmem:[%s10734_s0 + $0x48] sm:$0xff]  ;;  %v7708_v50 = vor.u32 %v9439_v32, %v7707_v31  ;;  %2569 = vmatpush.bf16.msrb.mxu0 %v7452_v46 }
  0x67   :  { %v7739_v38 = vld [vmem:[#allocation3 + $0xc00] sm:$0xf]  ;;  %v10074_v55 = vpack.c.bf16 %v145_v37, %v138_v35  ;;  %2563 = vmatmul.bf16.vlgmr.msra.gmra.mxu3 %v10078_v61  ;;  %v9083_v35 = vld [vmem:[#allocation3 + $0xc4] sm:$0xf] }
  0x68   :  { %v9447_v39 = vld [vmem:[#allocation3 + $0xc1c] sm:$0xf0]  ;;  %2583 = vmatpush.bf16.msrb.mxu1 %v7708_v50  ;;  %2611 = vmatpush.bf16.msrb.mxu3 %v6432_v51  ;;  %v142_v37 = vld [vmem:[%s10734_s0 + $0x30] sm:$0xff]  ;;  %v6304_v44 = vor.u32 %v9083_v35, %v6301_v36 }
  0x69   :  { %v7419_v52 = vld [vmem:[#allocation3 + $0x980] sm:$0xf]  ;;  %10747 = vst [vmem:[#allocation18_spill] sm:$0xff] %v10074_v55  ;;  %v7740_v60 = vor.u32 %v9447_v39, %v7739_v38  ;;  %2549 = vmatmul.bf16.vlgmr.msra.gmra.mxu2 %v10074_v55  ;;  %v6592_v39 = vor.u32 %v9155_v27, %v6589_v28  ;;  %v6269_v50 = vld [vmem:[#allocation3 + $0xa0] sm:$0xf0] }
  0x6a   :  { %v9367_v53 = vld [vmem:[#allocation3 + $0x99c] sm:$0xf0]  ;;  %v6272_v58 = vor.u32 %v9075_v49, %v6269_v50  ;;  %v7709_v35 = vld [vmem:[#allocation3 + $0xbe0] sm:$0xf0] }
  0x6b   :  { %v7675_v54 = vld [vmem:[#allocation3 + $0xb80] sm:$0xf]  ;;  %v7420_v1 = vor.u32 %v9367_v53, %v7419_v52  ;;  %2604 = vmatpush.bf16.msrb.mxu2 %v7740_v60  ;;  %v6560_v52 = vor.u32 %v9147_v41, %v6557_v42  ;;  %v9235_v36 = vld [vmem:[#allocation3 + $0x584] sm:$0xf] }
  0x6c   :  { %v9431_v56 = vld [vmem:[#allocation3 + $0xb9c] sm:$0xf0]  ;;  %2612 = vmatpush.bf16.msrb.mxu3 %v6400_v5  ;;  %v7165_v41 = vld [vmem:[#allocation3 + $0x7a0] sm:$0xf0] }
  0x6d   :  { %v137_v62 = vld [vmem:[%s10734_s0 + $0x8] sm:$0xff]  ;;  %v7676_v4 = vor.u32 %v9431_v56, %v7675_v54  ;;  %2570 = vmatpush.bf16.msrb.mxu0 %v7420_v1 }
  0x6e   :  { %v7387_v6 = vld [vmem:[#allocation3 + $0x940] sm:$0xf]  ;;  %v10088_v9 = vpack.c.bf16 %v144_v63, %v137_v62  ;;  %v9139_v54 = vld [vmem:[#allocation3 + $0x284] sm:$0xf] }
  0x6f   :  { %v9359_v7 = vld [vmem:[#allocation3 + $0x95c] sm:$0xf0]  ;;  %2625 = vmatpush.bf16.msra.mxu2 %v6688_v0  ;;  %2584 = vmatpush.bf16.msrb.mxu1 %v7676_v4  ;;  %v6525_v56 = vld [vmem:[#allocation3 + $0x2a0] sm:$0xf0] }
  0x70   :  { %v7643_v8 = vld [vmem:[#allocation3 + $0xb40] sm:$0xf]  ;;  %v7388_v14 = vor.u32 %v9359_v7, %v7387_v6  ;;  %2535 = vmatmul.bf16.vlgmr.msra.gmra.mxu1 %v10088_v9  ;;  %2613 = vmatpush.bf16.msrb.mxu3 %v6368_v18  ;;  %v9067_v1 = vld [vmem:[#allocation3 + $0x44] sm:$0xf]  ;;  %v6528_v5 = vor.u32 %v9139_v54, %v6525_v56 }
  0x71   :  { %v9423_v10 = vld [vmem:[#allocation3 + $0xb5c] sm:$0xf0]  ;;  %v6493_v4 = vld [vmem:[#allocation3 + $0x260] sm:$0xf0]  ;;  %v6240_v12 = vor.u32 %v9067_v1, %v6237_v2 }
  0x72   :  { %v7644_v17 = vor.u32 %v9423_v10, %v7643_v8  ;;  %v7355_v19 = vld [vmem:[#allocation3 + $0x900] sm:$0xf]  ;;  %2571 = vmatpush.bf16.msrb.mxu0 %v7388_v14  ;;  %v9059_v14 = vld [vmem:[#allocation3 + $0x4] sm:$0xf] }
  0x73   :  { %v9351_v20 = vld [vmem:[#allocation3 + $0x91c] sm:$0xf0]  ;;  %2626 = vmatpush.bf16.msra.mxu2 %v6656_v13  ;;  %v9307_v18 = vld [vmem:[#allocation3 + $0x7c4] sm:$0xf]  ;;  %v6208_v28 = vor.u32 %v9059_v14, %v6205_v15 }
  0x74   :  { %v7611_v21 = vld [vmem:[#allocation3 + $0xb00] sm:$0xf]  ;;  %v7356_v26 = vor.u32 %v9351_v20, %v7355_v19  ;;  %2585 = vmatpush.bf16.msrb.mxu1 %v7644_v17  ;;  %2614 = vmatpush.bf16.msrb.mxu3 %v6336_v30  ;;  %v6941_v17 = vld [vmem:[#allocation3 + $0x5e0] sm:$0xf0] }
  0x75   :  { %v9415_v22 = vld [vmem:[#allocation3 + $0xb1c] sm:$0xf0]  ;;  %v7197_v19 = vld [vmem:[#allocation3 + $0x7e0] sm:$0xf0] }
  0x76   :  { %v7612_v29 = vor.u32 %v9415_v22, %v7611_v21  ;;  %v7323_v31 = vld [vmem:[#allocation3 + $0x8c0] sm:$0xf]  ;;  %2572 = vmatpush.bf16.msrb.mxu0 %v7356_v26  ;;  %v9371_v20 = vld [vmem:[#allocation3 + $0x9c4] sm:$0xf]  ;;  %v6496_v22 = vor.u32 %v9131_v3, %v6493_v4 }
  0x77   :  { %v9343_v32 = vld [vmem:[#allocation3 + $0x8dc] sm:$0xf0]  ;;  %2627 = vmatpush.bf16.msra.mxu2 %v6624_v25  ;;  %v7453_v21 = vld [vmem:[#allocation3 + $0x9e0] sm:$0xf0]  ;;  %v147_v25 = vld [vmem:[%s10734_s0 + $0x58] sm:$0xff] }
  0x78   :  { %v7579_v33 = vld [vmem:[#allocation3 + $0xac0] sm:$0xf]  ;;  %v7324_v40 = vor.u32 %v9343_v32, %v7323_v31  ;;  %2586 = vmatpush.bf16.msrb.mxu1 %v7612_v29  ;;  %2615 = vmatpush.bf16.msrb.mxu3 %v6304_v44  ;;  %v9123_v26 = vld [vmem:[#allocation3 + $0x204] sm:$0xf]  ;;  %v148_v31 = vld [vmem:[%s10734_s0 + $0x60] sm:$0xff]  ;;  %v6944_v32 = vor.u32 %v9243_v16, %v6941_v17 }
  0x79   :  { %v9407_v34 = vld [vmem:[#allocation3 + $0xadc] sm:$0xf0]  ;;  %v6461_v29 = vld [vmem:[#allocation3 + $0x220] sm:$0xf0] }
  0x7a   :  { %v149_v38 = vld [vmem:[%s10734_s0 + $0x68] sm:$0xff]  ;;  %v7580_v43 = vor.u32 %v9407_v34, %v7579_v33  ;;  %2573 = vmatpush.bf16.msrb.mxu0 %v7324_v40  ;;  %v7200_v33 = vor.u32 %v9307_v18, %v7197_v19  ;;  %v6464_v42 = vor.u32 %v9123_v26, %v6461_v29 }
  0x7b   :  { %v7291_v45 = vld [vmem:[#allocation3 + $0x880] sm:$0xf]  ;;  %v10098_v51 = vpack.c.bf16 %v149_v38, %v142_v37  ;;  %2628 = vmatpush.bf16.msra.mxu2 %v6592_v39  ;;  %v9435_v34 = vld [vmem:[#allocation3 + $0xbc4] sm:$0xf]  ;;  %v7456_v37 = vor.u32 %v9371_v20, %v7453_v21  ;;  %v10114_v38 = vpack.c.bf16 %v147_v25, %v140_v24 }
  0x7c   :  { %v9335_v46 = vld [vmem:[#allocation3 + $0x89c] sm:$0xf0]  ;;  %2587 = vmatpush.bf16.msrb.mxu1 %v7580_v43  ;;  %2616 = vmatpush.bf16.msrb.mxu3 %v6272_v58  ;;  %v6909_v39 = vld [vmem:[#allocation3 + $0x5a0] sm:$0xf0] }
  0x7d   :  { %v7547_v47 = vld [vmem:[#allocation3 + $0xa80] sm:$0xf]  ;;  %10749 = vst [vmem:[#allocation20_spill] sm:$0xff] %v10098_v51  ;;  %v7292_v53 = vor.u32 %v9335_v46, %v7291_v45  ;;  %7769 = vmatmul.msk.bf16.vlgmr.msrb.gmra.mxu2 %vm2509_vm0, %v10098_v51  ;;  %v9299_v40 = vld [vmem:[#allocation3 + $0x784] sm:$0xf]  ;;  %v7712_v46 = vor.u32 %v9435_v34, %v7709_v35 }
  0x7e   :  { %v9399_v48 = vld [vmem:[#allocation3 + $0xa9c] sm:$0xf0]  ;;  %v9363_v44 = vld [vmem:[#allocation3 + $0x984] sm:$0xf] }
  0x7f   :  { %v7548_v57 = vor.u32 %v9399_v48, %v7547_v47  ;;  %v7259_v60 = vld [vmem:[#allocation3 + $0x840] sm:$0xf]  ;;  %2629 = vmatpush.bf16.msra.mxu2 %v6560_v52  ;;  %2574 = vmatpush.bf16.msrb.mxu0 %v7292_v53  ;;  %v7421_v45 = vld [vmem:[#allocation3 + $0x9a0] sm:$0xf0]  ;;  %v6912_v47 = vor.u32 %v9235_v36, %v6909_v39  ;;  %v7168_v48 = vor.u32 %v9299_v40, %v7165_v41 }
  0x80   :  { %v9327_v62 = vld [vmem:[#allocation3 + $0x85c] sm:$0xf0]  ;;  %2617 = vmatpush.bf16.msrb.mxu3 %v6240_v12  ;;  %v9427_v49 = vld [vmem:[#allocation3 + $0xb84] sm:$0xf]  ;;  %v7424_v53 = vor.u32 %v9363_v44, %v7421_v45 }
  0x81   :  { %v7515_v63 = vld [vmem:[#allocation3 + $0xa40] sm:$0xf]  ;;  %v7260_v6 = vor.u32 %v9327_v62, %v7259_v60  ;;  %2588 = vmatpush.bf16.msrb.mxu1 %v7548_v57  ;;  %v7677_v50 = vld [vmem:[#allocation3 + $0xba0] sm:$0xf0] }
  0x82   :  { %v9391_v0 = vld [vmem:[#allocation3 + $0xa5c] sm:$0xf0]  ;;  %v9227_v52 = vld [vmem:[#allocation3 + $0x544] sm:$0xf]  ;;  %v7680_v62 = vor.u32 %v9427_v49, %v7677_v50 }
  0x83   :  { %v7227_v7 = vld [vmem:[#allocation3 + $0x800] sm:$0xf]  ;;  %v7516_v11 = vor.u32 %v9391_v0, %v7515_v63  ;;  %2630 = vmatpush.bf16.msra.mxu2 %v6528_v5  ;;  %2575 = vmatpush.bf16.msrb.mxu0 %v7260_v6  ;;  %v6877_v54 = vld [vmem:[#allocation3 + $0x560] sm:$0xf0] }
  0x84   :  { %v9319_v8 = vld [vmem:[#allocation3 + $0x81c] sm:$0xf0]  ;;  %2618 = vmatpush.bf16.msrb.mxu3 %v6208_v28  ;;  %v9291_v56 = vld [vmem:[#allocation3 + $0x744] sm:$0xf]  ;;  %v6880_v63 = vor.u32 %v9227_v52, %v6877_v54 }
  0x85   :  { %v7483_v10 = vld [vmem:[#allocation3 + $0xa00] sm:$0xf]  ;;  %v7228_v23 = vor.u32 %v9319_v8, %v7227_v7  ;;  %2589 = vmatpush.bf16.msrb.mxu1 %v7516_v11  ;;  %v7133_v57 = vld [vmem:[#allocation3 + $0x760] sm:$0xf0] }
  0x86   :  { %v9383_v13 = vld [vmem:[#allocation3 + $0xa1c] sm:$0xf0]  ;;  %v9355_v58 = vld [vmem:[#allocation3 + $0x944] sm:$0xf]  ;;  %v7136_v0 = vor.u32 %v9291_v56, %v7133_v57 }
  0x87   :  { %v7484_v27 = vor.u32 %v9383_v13, %v7483_v10  ;;  %v141_v30 = vld [vmem:[%s10734_s0 + $0x28] sm:$0xff]  ;;  %2631 = vmatpush.bf16.msra.mxu2 %v6496_v22  ;;  %2576 = vmatpush.bf16.msrb.mxu0 %v7228_v23 }
  0x88   :  { %v10116_v43 = vpack.c.bf16 %v148_v31, %v141_v30  ;;  %2667 = vmatpush.bf16.msra.mxu3 %v7456_v37  ;;  %v7389_v60 = vld [vmem:[#allocation3 + $0x960] sm:$0xf0] }
  0x89   :  { %2590 = vmatpush.bf16.msrb.mxu1 %v7484_v27  ;;  %2619 = vmatmul.bf16.vlgmr.msrb.gmra.mxu3 %v10076_v59  ;;  %v9419_v1 = vld [vmem:[#allocation3 + $0xb44] sm:$0xf]  ;;  %v7392_v4 = vor.u32 %v9355_v58, %v7389_v60 }
  0x8a   :  { %2577 = vmatmul.bf16.vlgmr.msrb.gmra.mxu0 %v10114_v38  ;;  %v7645_v2 = vld [vmem:[#allocation3 + $0xb60] sm:$0xf0] }
  0x8b   :  { %2639 = vmatpush.bf16.msra.mxu0 %v6944_v32  ;;  %2632 = vmatpush.bf16.msra.mxu2 %v6464_v42  ;;  %v9219_v3 = vld [vmem:[#allocation3 + $0x504] sm:$0xf]  ;;  %v7648_v11 = vor.u32 %v9419_v1, %v7645_v2  ;;  %v6435_v1 = vld [vmem:[#allocation3 + $0x1c8] sm:$0xf] }
  0x8c   :  { %2591 = vmatmul.bf16.vlgmr.msrb.gmra.mxu1 %v10116_v43  ;;  %2668 = vmatpush.bf16.msra.mxu3 %v7424_v53  ;;  %v6845_v5 = vld [vmem:[#allocation3 + $0x520] sm:$0xf0]  ;;  %v9120_v2 = vld [vmem:[#allocation3 + $0x1e4] sm:$0xf0] }
  0x8d   :  { %2653 = vmatpush.bf16.msra.mxu1 %v7200_v33  ;;  %v9283_v6 = vld [vmem:[#allocation3 + $0x704] sm:$0xf]  ;;  %v6848_v12 = vor.u32 %v9219_v3, %v6845_v5  ;;  %v6947_v3 = vld [vmem:[#allocation3 + $0x5c8] sm:$0xf] }
  0x8e   :  { %2633 = vmatmul.bf16.vlgmr.msra.gmra.mxu2 %v10088_v9  ;;  %v7101_v7 = vld [vmem:[#allocation3 + $0x720] sm:$0xf0]  ;;  %v9248_v5 = vld [vmem:[#allocation3 + $0x5e4] sm:$0xf0] }
  0x8f   :  { %2681 = vmatpush.bf16.msrb.mxu2 %v7712_v46  ;;  %2640 = vmatpush.bf16.msra.mxu0 %v6912_v47  ;;  %v9347_v8 = vld [vmem:[#allocation3 + $0x904] sm:$0xf]  ;;  %v7104_v13 = vor.u32 %v9283_v6, %v7101_v7 }
  0x90   :  { %v7357_v10 = vld [vmem:[#allocation3 + $0x920] sm:$0xf0]  ;;  %2669 = vmatpush.bf16.msra.mxu3 %v7392_v4 }
  0x91   :  { %2654 = vmatpush.bf16.msra.mxu1 %v7168_v48  ;;  %v9411_v14 = vld [vmem:[#allocation3 + $0xb04] sm:$0xf]  ;;  %v7360_v17 = vor.u32 %v9347_v8, %v7357_v10 }
  0x92   :  { %v7613_v15 = vld [vmem:[#allocation3 + $0xb20] sm:$0xf0] }
  0x93   :  { %2682 = vmatpush.bf16.msrb.mxu2 %v7680_v62  ;;  %2641 = vmatpush.bf16.msra.mxu0 %v6880_v63  ;;  %v9211_v16 = vld [vmem:[#allocation3 + $0x4c4] sm:$0xf]  ;;  %v7616_v23 = vor.u32 %v9411_v14, %v7613_v15  ;;  %v6436_v14 = vor.u32 %v9120_v2, %v6435_v1  ;;  %v7203_v15 = vld [vmem:[#allocation3 + $0x7c8] sm:$0xf] }
  0x94   :  { %v6813_v18 = vld [vmem:[#allocation3 + $0x4e0] sm:$0xf0]  ;;  %2670 = vmatpush.bf16.msra.mxu3 %v7360_v17  ;;  %v6948_v17 = vor.u32 %v9248_v5, %v6947_v3  ;;  %v9088_v1 = vld [vmem:[#allocation3 + $0xe4] sm:$0xf0] }
  0x95   :  { %2655 = vmatpush.bf16.msra.mxu1 %v7136_v0  ;;  %v9275_v19 = vld [vmem:[#allocation3 + $0x6c4] sm:$0xf]  ;;  %v6816_v24 = vor.u32 %v9211_v16, %v6813_v18  ;;  %v9312_v16 = vld [vmem:[#allocation3 + $0x7e4] sm:$0xf0] }
  0x96   :  { %v7069_v20 = vld [vmem:[#allocation3 + $0x6e0] sm:$0xf0]  ;;  %v6819_v2 = vld [vmem:[#allocation3 + $0x4c8] sm:$0xf] }
  0x97   :  { %v9339_v21 = vld [vmem:[#allocation3 + $0x8c4] sm:$0xf]  ;;  %2683 = vmatpush.bf16.msrb.mxu2 %v7648_v11  ;;  %2642 = vmatpush.bf16.msra.mxu0 %v6848_v12  ;;  %v7072_v25 = vor.u32 %v9275_v19, %v7069_v20  ;;  %v6691_v19 = vld [vmem:[#allocation3 + $0x3c8] sm:$0xf] }
  0x98   :  { %v7325_v22 = vld [vmem:[#allocation3 + $0x8e0] sm:$0xf0]  ;;  %v9184_v20 = vld [vmem:[#allocation3 + $0x3e4] sm:$0xf0] }
  0x99   :  { %2656 = vmatpush.bf16.msra.mxu1 %v7104_v13  ;;  %v9403_v26 = vld [vmem:[#allocation3 + $0xac4] sm:$0xf]  ;;  %v7328_v29 = vor.u32 %v9339_v21, %v7325_v22  ;;  %v6403_v21 = vld [vmem:[#allocation3 + $0x188] sm:$0xf] }
  0x9a   :  { %v7581_v27 = vld [vmem:[#allocation3 + $0xae0] sm:$0xf0]  ;;  %v9216_v3 = vld [vmem:[#allocation3 + $0x4e4] sm:$0xf0] }
  0x9b   :  { %v9203_v28 = vld [vmem:[#allocation3 + $0x484] sm:$0xf]  ;;  %2684 = vmatpush.bf16.msrb.mxu2 %v7616_v23  ;;  %v7584_v35 = vor.u32 %v9403_v26, %v7581_v27  ;;  %2643 = vmatpush.bf16.msra.mxu0 %v6816_v24  ;;  %v9112_v23 = vld [vmem:[#allocation3 + $0x1a4] sm:$0xf0]  ;;  %v7204_v26 = vor.u32 %v9312_v16, %v7203_v15  ;;  %v6692_v27 = vor.u32 %v9184_v20, %v6691_v19 }
  0x9c   :  { %v6781_v30 = vld [vmem:[#allocation3 + $0x4a0] sm:$0xf0]  ;;  %2671 = vmatpush.bf16.msra.mxu3 %v7328_v29  ;;  %v6915_v24 = vld [vmem:[#allocation3 + $0x588] sm:$0xf] }
  0x9d   :  { %v9267_v31 = vld [vmem:[#allocation3 + $0x684] sm:$0xf]  ;;  %2657 = vmatpush.bf16.msra.mxu1 %v7072_v25  ;;  %v6784_v36 = vor.u32 %v9203_v28, %v6781_v30  ;;  %v9240_v25 = vld [vmem:[#allocation3 + $0x5a4] sm:$0xf0]  ;;  %v6404_v30 = vor.u32 %v9112_v23, %v6403_v21 }
  0x9e   :  { %v7037_v32 = vld [vmem:[#allocation3 + $0x6a0] sm:$0xf0]  ;;  %v7171_v28 = vld [vmem:[#allocation3 + $0x788] sm:$0xf] }
  0x9f   :  { %v9331_v33 = vld [vmem:[#allocation3 + $0x884] sm:$0xf]  ;;  %v7040_v37 = vor.u32 %v9267_v31, %v7037_v32  ;;  %2685 = vmatpush.bf16.msrb.mxu2 %v7584_v35  ;;  %2644 = vmatpush.bf16.msra.mxu0 %v6784_v36  ;;  %v9304_v29 = vld [vmem:[#allocation3 + $0x7a4] sm:$0xf0]  ;;  %v6916_v31 = vor.u32 %v9240_v25, %v6915_v24 }
  0xa0   :  { %v7293_v34 = vld [vmem:[#allocation3 + $0x8a0] sm:$0xf0]  ;;  %v6659_v32 = vld [vmem:[#allocation3 + $0x388] sm:$0xf] }
  0xa1   :  { %v9395_v39 = vld [vmem:[#allocation3 + $0xa84] sm:$0xf]  ;;  %v7296_v42 = vor.u32 %v9331_v33, %v7293_v34  ;;  %2658 = vmatpush.bf16.msra.mxu1 %v7040_v37  ;;  %v9176_v33 = vld [vmem:[#allocation3 + $0x3a4] sm:$0xf0] }
  0xa2   :  { %v7549_v40 = vld [vmem:[#allocation3 + $0xaa0] sm:$0xf0]  ;;  %v6371_v34 = vld [vmem:[#allocation3 + $0x148] sm:$0xf] }
  0xa3   :  { %v9195_v41 = vld [vmem:[#allocation3 + $0x444] sm:$0xf]  ;;  %v7552_v49 = vor.u32 %v9395_v39, %v7549_v40  ;;  %2672 = vmatpush.bf16.msra.mxu3 %v7296_v42  ;;  %v9104_v35 = vld [vmem:[#allocation3 + $0x164] sm:$0xf0]  ;;  %v7172_v39 = vor.u32 %v9304_v29, %v7171_v28  ;;  %v6660_v40 = vor.u32 %v9176_v33, %v6659_v32 }
  0xa4   :  { %v6749_v44 = vld [vmem:[#allocation3 + $0x460] sm:$0xf0]  ;;  %v6883_v36 = vld [vmem:[#allocation3 + $0x548] sm:$0xf] }
  0xa5   :  { %v9259_v45 = vld [vmem:[#allocation3 + $0x644] sm:$0xf]  ;;  %v6752_v53 = vor.u32 %v9195_v41, %v6749_v44  ;;  %2686 = vmatpush.bf16.msrb.mxu2 %v7552_v49  ;;  %v9232_v37 = vld [vmem:[#allocation3 + $0x564] sm:$0xf0] }
  0xa6   :  { %v7005_v46 = vld [vmem:[#allocation3 + $0x660] sm:$0xf0]  ;;  %v6627_v41 = vld [vmem:[#allocation3 + $0x348] sm:$0xf] }
  0xa7   :  { %v9323_v47 = vld [vmem:[#allocation3 + $0x844] sm:$0xf]  ;;  %v7008_v54 = vor.u32 %v9259_v45, %v7005_v46  ;;  %2645 = vmatpush.bf16.msra.mxu0 %v6752_v53  ;;  %v7139_v42 = vld [vmem:[#allocation3 + $0x748] sm:$0xf]  ;;  %v6372_v45 = vor.u32 %v9104_v35, %v6371_v34  ;;  %v6884_v46 = vor.u32 %v9232_v37, %v6883_v36 }
  0xa8   :  { %v7261_v48 = vld [vmem:[#allocation3 + $0x860] sm:$0xf0]  ;;  %v9296_v44 = vld [vmem:[#allocation3 + $0x764] sm:$0xf0] }
  0xa9   :  { %v9387_v50 = vld [vmem:[#allocation3 + $0xa44] sm:$0xf]  ;;  %v7264_v60 = vor.u32 %v9323_v47, %v7261_v48  ;;  %2659 = vmatpush.bf16.msra.mxu1 %v7008_v54  ;;  %v9168_v47 = vld [vmem:[#allocation3 + $0x364] sm:$0xf0]  ;;  %v7140_v53 = vor.u32 %v9296_v44, %v7139_v42 }
  0xaa   :  { %v7517_v52 = vld [vmem:[#allocation3 + $0xa60] sm:$0xf0]  ;;  %v6339_v48 = vld [vmem:[#allocation3 + $0x108] sm:$0xf]  ;;  %v6628_v54 = vor.u32 %v9168_v47, %v6627_v41 }
  0xab   :  { %v9187_v56 = vld [vmem:[#allocation3 + $0x404] sm:$0xf]  ;;  %v7520_v4 = vor.u32 %v9387_v50, %v7517_v52  ;;  %2673 = vmatpush.bf16.msra.mxu3 %v7264_v60  ;;  %v9096_v49 = vld [vmem:[#allocation3 + $0x124] sm:$0xf0] }
  0xac   :  { %v6717_v57 = vld [vmem:[#allocation3 + $0x420] sm:$0xf0]  ;;  %v6851_v50 = vld [vmem:[#allocation3 + $0x508] sm:$0xf] }
  0xad   :  { %v9251_v58 = vld [vmem:[#allocation3 + $0x604] sm:$0xf]  ;;  %v6720_v8 = vor.u32 %v9187_v56, %v6717_v57  ;;  %2687 = vmatpush.bf16.msrb.mxu2 %v7520_v4  ;;  %v9224_v52 = vld [vmem:[#allocation3 + $0x524] sm:$0xf0] }
  0xae   :  { %v6973_v62 = vld [vmem:[#allocation3 + $0x620] sm:$0xf0]  ;;  %v7107_v56 = vld [vmem:[#allocation3 + $0x708] sm:$0xf]  ;;  %v6852_v60 = vor.u32 %v9224_v52, %v6851_v50 }
  0xaf   :  { %v9315_v63 = vld [vmem:[#allocation3 + $0x804] sm:$0xf]  ;;  %v6976_v10 = vor.u32 %v9251_v58, %v6973_v62  ;;  %2646 = vmatpush.bf16.msra.mxu0 %v6720_v8  ;;  %v9288_v57 = vld [vmem:[#allocation3 + $0x724] sm:$0xf0]  ;;  %v6340_v58 = vor.u32 %v9096_v49, %v6339_v48 }
  0xb0   :  { %v7229_v0 = vld [vmem:[#allocation3 + $0x820] sm:$0xf0]  ;;  %v6595_v62 = vld [vmem:[#allocation3 + $0x308] sm:$0xf]  ;;  %v7108_v4 = vor.u32 %v9288_v57, %v7107_v56 }
  0xb1   :  { %v9443_v6 = vld [vmem:[#allocation3 + $0xc04] sm:$0xf]  ;;  %v7232_v13 = vor.u32 %v9315_v63, %v7229_v0  ;;  %2660 = vmatpush.bf16.msra.mxu1 %v6976_v10  ;;  %v9160_v63 = vld [vmem:[#allocation3 + $0x324] sm:$0xf0]  ;;  %v6820_v10 = vor.u32 %v9216_v3, %v6819_v2  ;;  %v6693_v3 = vld [vmem:[#allocation3 + $0x3e8] sm:$0xf0] }
  0xb2   :  { %v7741_v7 = vld [vmem:[#allocation3 + $0xc20] sm:$0xf0]  ;;  %2647 = vmatmul.bf16.vlgmr.msra.gmra.mxu0 %v10074_v55  ;;  %v6307_v0 = vld [vmem:[#allocation3 + $0xc8] sm:$0xf]  ;;  %v6596_v5 = vor.u32 %v9160_v63, %v6595_v62  ;;  %v9116_v63 = vld [vmem:[#allocation3 + $0x1cc] sm:$0xf] }
  0xb3   :  { %v9379_v11 = vld [vmem:[#allocation3 + $0xa04] sm:$0xf]  ;;  %v7744_v18 = vor.u32 %v9443_v6, %v7741_v7  ;;  %2674 = vmatpush.bf16.msra.mxu3 %v7232_v13  ;;  %2737 = vmatpush.bf16.msrb.mxu0 %v6948_v17  ;;  %v7075_v6 = vld [vmem:[#allocation3 + $0x6c8] sm:$0xf]  ;;  %v6308_v8 = vor.u32 %v9088_v1, %v6307_v0  ;;  %v6437_v0 = vld [vmem:[#allocation3 + $0x1e8] sm:$0xf0] }
  0xb4   :  { %v7485_v12 = vld [vmem:[#allocation3 + $0xa20] sm:$0xf0]  ;;  %2661 = vmatmul.bf16.vlgmr.msra.gmra.mxu1 %v10078_v61  ;;  %v9280_v7 = vld [vmem:[#allocation3 + $0x6e4] sm:$0xf0]  ;;  %v9180_v1 = vld [vmem:[#allocation3 + $0x3cc] sm:$0xf] }
  0xb5   :  { %v7488_v22 = vor.u32 %v9379_v11, %v7485_v12  ;;  %2709 = vmatpush.bf16.msrb.mxu1 %v6436_v14  ;;  %v6563_v11 = vld [vmem:[#allocation3 + $0x2c8] sm:$0xf]  ;;  %v7076_v17 = vor.u32 %v9280_v7, %v7075_v6 }
  0xb6   :  { %2675 = vmatmul.bf16.vlgmr.msra.gmra.mxu3 %v10114_v38  ;;  %v9152_v12 = vld [vmem:[#allocation3 + $0x2e4] sm:$0xf0] }
  0xb7   :  { %2702 = vmatpush.bf16.msrb.mxu3 %v7744_v18  ;;  %2688 = vmatpush.bf16.msrb.mxu2 %v7488_v22  ;;  %v6275_v13 = vld [vmem:[#allocation3 + $0x88] sm:$0xf]  ;;  %v6564_v18 = vor.u32 %v9152_v12, %v6563_v11  ;;  %v6696_v12 = vor.u32 %v9180_v1, %v6693_v3 }
  0xb8   :  { %2738 = vmatpush.bf16.msrb.mxu0 %v6916_v31  ;;  %v9080_v14 = vld [vmem:[#allocation3 + $0xa4] sm:$0xf0] }
  0xb9   :  { %2710 = vmatpush.bf16.msrb.mxu1 %v6404_v30  ;;  %v6787_v15 = vld [vmem:[#allocation3 + $0x488] sm:$0xf]  ;;  %v6276_v21 = vor.u32 %v9080_v14, %v6275_v13  ;;  %v9108_v14 = vld [vmem:[#allocation3 + $0x18c] sm:$0xf] }
  0xba   :  { %2689 = vmatmul.bf16.vlgmr.msrb.gmra.mxu2 %v10116_v43  ;;  %v9208_v16 = vld [vmem:[#allocation3 + $0x4a4] sm:$0xf0] }
  0xbb   :  { %2751 = vmatpush.bf16.msra.mxu2 %v7204_v26  ;;  %2723 = vmatpush.bf16.msra.mxu3 %v6692_v27  ;;  %v7043_v19 = vld [vmem:[#allocation3 + $0x688] sm:$0xf]  ;;  %v6788_v22 = vor.u32 %v9208_v16, %v6787_v15  ;;  %v6405_v15 = vld [vmem:[#allocation3 + $0x1a8] sm:$0xf0] }
  0xbc   :  { %2739 = vmatpush.bf16.msrb.mxu0 %v6884_v46  ;;  %v9272_v20 = vld [vmem:[#allocation3 + $0x6a4] sm:$0xf0]  ;;  %v9172_v16 = vld [vmem:[#allocation3 + $0x38c] sm:$0xf] }
  0xbd   :  { %2711 = vmatpush.bf16.msrb.mxu1 %v6372_v45  ;;  %v6531_v23 = vld [vmem:[#allocation3 + $0x288] sm:$0xf]  ;;  %v7044_v29 = vor.u32 %v9272_v20, %v7043_v19 }
  0xbe   :  { %v9144_v24 = vld [vmem:[#allocation3 + $0x2a4] sm:$0xf0] }
  0xbf   :  { %2752 = vmatpush.bf16.msra.mxu2 %v7172_v39  ;;  %2724 = vmatpush.bf16.msra.mxu3 %v6660_v40  ;;  %v6243_v25 = vld [vmem:[#allocation3 + $0x48] sm:$0xf]  ;;  %v6532_v30 = vor.u32 %v9144_v24, %v6531_v23 }
  0xc0   :  { %2740 = vmatpush.bf16.msrb.mxu0 %v6852_v60  ;;  %v9072_v26 = vld [vmem:[#allocation3 + $0x64] sm:$0xf0] }
  0xc1   :  { %2712 = vmatpush.bf16.msrb.mxu1 %v6340_v58  ;;  %v6755_v27 = vld [vmem:[#allocation3 + $0x448] sm:$0xf]  ;;  %v6244_v34 = vor.u32 %v9072_v26, %v6243_v25  ;;  %v9100_v26 = vld [vmem:[#allocation3 + $0x14c] sm:$0xf] }
  0xc2   :  { %v9200_v28 = vld [vmem:[#allocation3 + $0x464] sm:$0xf0] }
  0xc3   :  { %2753 = vmatpush.bf16.msra.mxu2 %v7140_v53  ;;  %2725 = vmatpush.bf16.msra.mxu3 %v6628_v54  ;;  %v6499_v31 = vld [vmem:[#allocation3 + $0x248] sm:$0xf]  ;;  %v6756_v35 = vor.u32 %v9200_v28, %v6755_v27  ;;  %v6373_v27 = vld [vmem:[#allocation3 + $0x168] sm:$0xf0] }
  0xc4   :  { %2741 = vmatpush.bf16.msrb.mxu0 %v6820_v10  ;;  %v7011_v32 = vld [vmem:[#allocation3 + $0x648] sm:$0xf]  ;;  %v9164_v28 = vld [vmem:[#allocation3 + $0x34c] sm:$0xf] }
  0xc5   :  { %2713 = vmatpush.bf16.msrb.mxu1 %v6308_v8  ;;  %v9264_v33 = vld [vmem:[#allocation3 + $0x664] sm:$0xf0]  ;;  %v6440_v8 = vor.u32 %v9116_v63, %v6437_v0 }
  0xc6   :  { %7770 = vmatmul.msk.bf16.vlgmr.msrb.gmra.mxu3 %vm2509_vm0, %v10098_v51  ;;  %v9136_v36 = vld [vmem:[#allocation3 + $0x264] sm:$0xf0]  ;;  %v7012_v44 = vor.u32 %v9264_v33, %v7011_v32  ;;  %v6376_v33 = vor.u32 %v9100_v26, %v6373_v27 }
  0xc7   :  { %2754 = vmatpush.bf16.msra.mxu2 %v7108_v4  ;;  %2726 = vmatpush.bf16.msra.mxu3 %v6596_v5  ;;  %v6211_v37 = vld [vmem:[#allocation3 + $0x8] sm:$0xf]  ;;  %v6500_v48 = vor.u32 %v9136_v36, %v6499_v31 }
  0xc8   :  { %2742 = vmatpush.bf16.msrb.mxu0 %v6788_v22  ;;  %v9064_v39 = vld [vmem:[#allocation3 + $0x24] sm:$0xf0] }
  0xc9   :  { %2714 = vmatpush.bf16.msrb.mxu1 %v6276_v21  ;;  %v6723_v40 = vld [vmem:[#allocation3 + $0x408] sm:$0xf]  ;;  %v6212_v53 = vor.u32 %v9064_v39, %v6211_v37  ;;  %v6408_v21 = vor.u32 %v9108_v14, %v6405_v15  ;;  %v9092_v39 = vld [vmem:[#allocation3 + $0x10c] sm:$0xf] }
  0xca   :  { %v9192_v41 = vld [vmem:[#allocation3 + $0x424] sm:$0xf0] }
  0xcb   :  { %2755 = vmatpush.bf16.msra.mxu2 %v7076_v17  ;;  %2727 = vmatpush.bf16.msra.mxu3 %v6564_v18  ;;  %v7459_v42 = vld [vmem:[#allocation3 + $0x9c8] sm:$0xf]  ;;  %v6724_v54 = vor.u32 %v9192_v41, %v6723_v40  ;;  %v6661_v17 = vld [vmem:[#allocation3 + $0x3a8] sm:$0xf0] }
  0xcc   :  { %v9376_v45 = vld [vmem:[#allocation3 + $0x9e4] sm:$0xf0]  ;;  %2743 = vmatpush.bf16.msrb.mxu0 %v6756_v35  ;;  %v6664_v24 = vor.u32 %v9172_v16, %v6661_v17  ;;  %v6341_v40 = vld [vmem:[#allocation3 + $0x128] sm:$0xf0] }
  0xcd   :  { %v7747_v46 = vld [vmem:[#allocation3 + $0xc08] sm:$0xf]  ;;  %2715 = vmatpush.bf16.msrb.mxu1 %v6244_v34  ;;  %v7460_v60 = vor.u32 %v9376_v45, %v7459_v42  ;;  %v9156_v41 = vld [vmem:[#allocation3 + $0x30c] sm:$0xf] }
  0xce   :  { %v9448_v47 = vld [vmem:[#allocation3 + $0xc24] sm:$0xf0]  ;;  %v6597_v42 = vld [vmem:[#allocation3 + $0x328] sm:$0xf0] }
  0xcf   :  { %2756 = vmatpush.bf16.msra.mxu2 %v7044_v29  ;;  %2728 = vmatpush.bf16.msra.mxu3 %v6532_v30  ;;  %v6467_v49 = vld [vmem:[#allocation3 + $0x208] sm:$0xf]  ;;  %v7748_v62 = vor.u32 %v9448_v47, %v7747_v46  ;;  %v6629_v29 = vld [vmem:[#allocation3 + $0x368] sm:$0xf0]  ;;  %v6344_v47 = vor.u32 %v9092_v39, %v6341_v40 }
  0xd0   :  { %v6979_v50 = vld [vmem:[#allocation3 + $0x608] sm:$0xf]  ;;  %2744 = vmatpush.bf16.msrb.mxu0 %v6724_v54  ;;  %v6632_v36 = vor.u32 %v9164_v28, %v6629_v29  ;;  %v6309_v54 = vld [vmem:[#allocation3 + $0xe8] sm:$0xf0] }
  0xd1   :  { %v9256_v52 = vld [vmem:[#allocation3 + $0x624] sm:$0xf0]  ;;  %2716 = vmatpush.bf16.msrb.mxu1 %v6212_v53  ;;  %v9084_v53 = vld [vmem:[#allocation3 + $0xcc] sm:$0xf] }
  0xd2   :  { %v9128_v56 = vld [vmem:[#allocation3 + $0x224] sm:$0xf0]  ;;  %v6980_v2 = vor.u32 %v9256_v52, %v6979_v50  ;;  %v6600_v50 = vor.u32 %v9156_v41, %v6597_v42  ;;  %v6312_v63 = vor.u32 %v9084_v53, %v6309_v54  ;;  %v9068_v17 = vld [vmem:[#allocation3 + $0x4c] sm:$0xf] }
  0xd3   :  { %v7715_v57 = vld [vmem:[#allocation3 + $0xbc8] sm:$0xf]  ;;  %2757 = vmatpush.bf16.msra.mxu2 %v7012_v44  ;;  %2729 = vmatpush.bf16.msra.mxu3 %v6500_v48  ;;  %v6468_v6 = vor.u32 %v9128_v56, %v6467_v49  ;;  %v9148_v56 = vld [vmem:[#allocation3 + $0x2cc] sm:$0xf] }
  0xd4   :  { %v9440_v58 = vld [vmem:[#allocation3 + $0xbe4] sm:$0xf0]  ;;  %2800 = vmatpush.bf16.msra.mxu0 %v7748_v62  ;;  %2717 = vmatmul.bf16.vlgmr.msrb.gmra.mxu1 %v10076_v59  ;;  %v9372_v39 = vld [vmem:[#allocation3 + $0x9cc] sm:$0xf] }
  0xd5   :  { %v7427_v4 = vld [vmem:[#allocation3 + $0x988] sm:$0xf]  ;;  %v7716_v7 = vor.u32 %v9440_v58, %v7715_v57  ;;  %2765 = vmatpush.bf16.msra.mxu1 %v7460_v60  ;;  %2745 = vmatmul.bf16.vlgmr.msrb.gmra.mxu0 %v10074_v55  ;;  %v6565_v57 = vld [vmem:[#allocation3 + $0x2e8] sm:$0xf0] }
  0xd6   :  { %v9368_v5 = vld [vmem:[#allocation3 + $0x9a4] sm:$0xf0]  ;;  %v7461_v40 = vld [vmem:[#allocation3 + $0x9e8] sm:$0xf0] }
  0xd7   :  { %v7683_v10 = vld [vmem:[#allocation3 + $0xb88] sm:$0xf]  ;;  %v7428_v13 = vor.u32 %v9368_v5, %v7427_v4  ;;  %2758 = vmatpush.bf16.msra.mxu2 %v6980_v2  ;;  %2730 = vmatpush.bf16.msra.mxu3 %v6468_v6  ;;  %v6568_v2 = vor.u32 %v9148_v56, %v6565_v57  ;;  %v9076_v4 = vld [vmem:[#allocation3 + $0x8c] sm:$0xf] }
  0xd8   :  { %v9432_v11 = vld [vmem:[#allocation3 + $0xba4] sm:$0xf0]  ;;  %2821 = vmatpush.bf16.msrb.mxu0 %v6696_v12  ;;  %v6277_v5 = vld [vmem:[#allocation3 + $0xa8] sm:$0xf0] }
  0xd9   :  { %v7395_v18 = vld [vmem:[#allocation3 + $0x948] sm:$0xf]  ;;  %v7684_v20 = vor.u32 %v9432_v11, %v7683_v10  ;;  %2766 = vmatpush.bf16.msra.mxu1 %v7428_v13  ;;  %v9140_v6 = vld [vmem:[#allocation3 + $0x28c] sm:$0xf]  ;;  %v6280_v12 = vor.u32 %v9076_v4, %v6277_v5 }
  0xda   :  { %v9360_v19 = vld [vmem:[#allocation3 + $0x964] sm:$0xf0]  ;;  %2731 = vmatmul.bf16.vlgmr.msra.gmra.mxu3 %v10088_v9  ;;  %2759 = vmatmul.bf16.vlgmr.msra.gmra.mxu2 %v10078_v61  ;;  %v9436_v41 = vld [vmem:[#allocation3 + $0xbcc] sm:$0xf] }
  0xdb   :  { %2779 = vmatpush.bf16.msrb.mxu3 %v7716_v7  ;;  %2807 = vmatpush.bf16.msrb.mxu2 %v6440_v8  ;;  %v7651_v22 = vld [vmem:[#allocation3 + $0xb48] sm:$0xf]  ;;  %v7396_v25 = vor.u32 %v9360_v19, %v7395_v18  ;;  %v6533_v7 = vld [vmem:[#allocation3 + $0x2a8] sm:$0xf0] }
  0xdc   :  { %v9424_v23 = vld [vmem:[#allocation3 + $0xb64] sm:$0xf0]  ;;  %2822 = vmatpush.bf16.msrb.mxu0 %v6664_v24  ;;  %v6536_v15 = vor.u32 %v9140_v6, %v6533_v7  ;;  %v6245_v18 = vld [vmem:[#allocation3 + $0x68] sm:$0xf0] }
  0xdd   :  { %v7363_v30 = vld [vmem:[#allocation3 + $0x908] sm:$0xf]  ;;  %v7652_v32 = vor.u32 %v9424_v23, %v7651_v22  ;;  %2767 = vmatpush.bf16.msra.mxu1 %v7396_v25  ;;  %v9132_v19 = vld [vmem:[#allocation3 + $0x24c] sm:$0xf]  ;;  %v6248_v26 = vor.u32 %v9068_v17, %v6245_v18 }
  0xde   :  { %v9352_v31 = vld [vmem:[#allocation3 + $0x924] sm:$0xf0]  ;;  %v9244_v23 = vld [vmem:[#allocation3 + $0x5cc] sm:$0xf] }
  0xdf   :  { %2780 = vmatpush.bf16.msrb.mxu3 %v7684_v20  ;;  %2808 = vmatpush.bf16.msrb.mxu2 %v6408_v21  ;;  %v7619_v34 = vld [vmem:[#allocation3 + $0xb08] sm:$0xf]  ;;  %v7364_v37 = vor.u32 %v9352_v31, %v7363_v30  ;;  %v6501_v20 = vld [vmem:[#allocation3 + $0x268] sm:$0xf0] }
  0xe0   :  { %v9416_v35 = vld [vmem:[#allocation3 + $0xb24] sm:$0xf0]  ;;  %2823 = vmatpush.bf16.msrb.mxu0 %v6632_v36  ;;  %v6949_v24 = vld [vmem:[#allocation3 + $0x5e8] sm:$0xf0]  ;;  %v6504_v29 = vor.u32 %v9132_v19, %v6501_v20 }
  0xe1   :  { %v7331_v44 = vld [vmem:[#allocation3 + $0x8c8] sm:$0xf]  ;;  %v7620_v46 = vor.u32 %v9416_v35, %v7619_v34  ;;  %2768 = vmatpush.bf16.msra.mxu1 %v7364_v37  ;;  %v9060_v31 = vld [vmem:[#allocation3 + $0xc] sm:$0xf]  ;;  %v6952_v34 = vor.u32 %v9244_v23, %v6949_v24 }
  0xe2   :  { %v9344_v45 = vld [vmem:[#allocation3 + $0x8e4] sm:$0xf0]  ;;  %v6469_v35 = vld [vmem:[#allocation3 + $0x228] sm:$0xf0] }
  0xe3   :  { %2781 = vmatpush.bf16.msrb.mxu3 %v7652_v32  ;;  %2809 = vmatpush.bf16.msrb.mxu2 %v6376_v33  ;;  %v7587_v48 = vld [vmem:[#allocation3 + $0xac8] sm:$0xf]  ;;  %v7332_v52 = vor.u32 %v9344_v45, %v7331_v44  ;;  %v6213_v32 = vld [vmem:[#allocation3 + $0x28] sm:$0xf0] }
  0xe4   :  { %v9408_v49 = vld [vmem:[#allocation3 + $0xae4] sm:$0xf0]  ;;  %2824 = vmatpush.bf16.msrb.mxu0 %v6600_v50  ;;  %v9124_v33 = vld [vmem:[#allocation3 + $0x20c] sm:$0xf]  ;;  %v7464_v50 = vor.u32 %v9372_v39, %v7461_v40 }
  0xe5   :  { %v7299_v58 = vld [vmem:[#allocation3 + $0x888] sm:$0xf]  ;;  %v7588_v62 = vor.u32 %v9408_v49, %v7587_v48  ;;  %2769 = vmatpush.bf16.msra.mxu1 %v7332_v52  ;;  %7771 = vmatmul.msk.bf16.vlgmr.msra.gmra.mxu0 %vm2509_vm0, %v10098_v51  ;;  %v9308_v36 = vld [vmem:[#allocation3 + $0x7cc] sm:$0xf]  ;;  %v6472_v48 = vor.u32 %v9124_v33, %v6469_v35 }
  0xe6   :  { %v9336_v60 = vld [vmem:[#allocation3 + $0x8a4] sm:$0xf0]  ;;  %v7205_v37 = vld [vmem:[#allocation3 + $0x7e8] sm:$0xf0] }
  0xe7   :  { %2782 = vmatpush.bf16.msrb.mxu3 %v7620_v46  ;;  %2810 = vmatpush.bf16.msrb.mxu2 %v6344_v47  ;;  %v7555_v0 = vld [vmem:[#allocation3 + $0xa88] sm:$0xf]  ;;  %v7300_v3 = vor.u32 %v9336_v60, %v7299_v58  ;;  %v7717_v44 = vld [vmem:[#allocation3 + $0xbe8] sm:$0xf0]  ;;  %v6216_v47 = vor.u32 %v9060_v31, %v6213_v32  ;;  %v7208_v49 = vor.u32 %v9308_v36, %v7205_v37 }
  0xe8   :  { %v9400_v1 = vld [vmem:[#allocation3 + $0xaa4] sm:$0xf0]  ;;  %2825 = vmatpush.bf16.msrb.mxu0 %v6568_v2  ;;  %v9236_v45 = vld [vmem:[#allocation3 + $0x58c] sm:$0xf]  ;;  %v7720_v54 = vor.u32 %v9436_v41, %v7717_v44 }
  0xe9   :  { %v7267_v8 = vld [vmem:[#allocation3 + $0x848] sm:$0xf]  ;;  %v7556_v11 = vor.u32 %v9400_v1, %v7555_v0  ;;  %2770 = vmatpush.bf16.msra.mxu1 %v7300_v3  ;;  %v6917_v46 = vld [vmem:[#allocation3 + $0x5a8] sm:$0xf0] }
  0xea   :  { %v9328_v10 = vld [vmem:[#allocation3 + $0x864] sm:$0xf0]  ;;  %v9300_v52 = vld [vmem:[#allocation3 + $0x78c] sm:$0xf]  ;;  %v6920_v56 = vor.u32 %v9236_v45, %v6917_v46 }
  0xeb   :  { %2783 = vmatpush.bf16.msrb.mxu3 %v7588_v62  ;;  %2811 = vmatpush.bf16.msrb.mxu2 %v6312_v63  ;;  %v7523_v13 = vld [vmem:[#allocation3 + $0xa48] sm:$0xf]  ;;  %v7268_v16 = vor.u32 %v9328_v10, %v7267_v8  ;;  %v7173_v53 = vld [vmem:[#allocation3 + $0x7a8] sm:$0xf0] }
  0xec   :  { %v9392_v14 = vld [vmem:[#allocation3 + $0xa64] sm:$0xf0]  ;;  %2826 = vmatpush.bf16.msrb.mxu0 %v6536_v15  ;;  %v9364_v57 = vld [vmem:[#allocation3 + $0x98c] sm:$0xf]  ;;  %v7176_v1 = vor.u32 %v9300_v52, %v7173_v53 }
  0xed   :  { %v7235_v21 = vld [vmem:[#allocation3 + $0x808] sm:$0xf]  ;;  %v7524_v25 = vor.u32 %v9392_v14, %v7523_v13  ;;  %2771 = vmatpush.bf16.msra.mxu1 %v7268_v16  ;;  %v7429_v58 = vld [vmem:[#allocation3 + $0x9a8] sm:$0xf0]  ;;  %v2536_v31 = vpop.f32.mrf.mxu1 }
  0xee   :  { %v9320_v22 = vld [vmem:[#allocation3 + $0x824] sm:$0xf0]  ;;  %v9428_v60 = vld [vmem:[#allocation3 + $0xb8c] sm:$0xf]  ;;  %v7432_v2 = vor.u32 %v9364_v57, %v7429_v58 }
  0xef   :  { %2784 = vmatpush.bf16.msrb.mxu3 %v7556_v11  ;;  %2812 = vmatpush.bf16.msrb.mxu2 %v6280_v12  ;;  %v7491_v27 = vld [vmem:[#allocation3 + $0xa08] sm:$0xf]  ;;  %v7236_v30 = vor.u32 %v9320_v22, %v7235_v21  ;;  %v7685_v62 = vld [vmem:[#allocation3 + $0xba8] sm:$0xf0] }
  0xf0   :  { %v9384_v28 = vld [vmem:[#allocation3 + $0xa24] sm:$0xf0]  ;;  %2827 = vmatpush.bf16.msrb.mxu0 %v6504_v29  ;;  %v9228_v63 = vld [vmem:[#allocation3 + $0x54c] sm:$0xf]  ;;  %v7688_v5 = vor.u32 %v9428_v60, %v7685_v62 }
  0xf1   :  { %v7492_v42 = vor.u32 %v9384_v28, %v7491_v27  ;;  %2772 = vmatpush.bf16.msra.mxu1 %v7236_v30  ;;  %v6885_v0 = vld [vmem:[#allocation3 + $0x568] sm:$0xf0]  ;;  %v2522_v30 = vpop.f32.mrf.mxu0 }
  0xf2   :  { %v9292_v3 = vld [vmem:[#allocation3 + $0x74c] sm:$0xf]  ;;  %v6888_v6 = vor.u32 %v9228_v63, %v6885_v0  ;;  %v2537_v37 = vadd.f32 %v2536_v31, %v2522_v30  ;;  %v6955_v30 = vld [vmem:[#allocation3 + $0x5d0] sm:$0xf] }
  0xf3   :  { %2785 = vmatpush.bf16.msrb.mxu3 %v7524_v25  ;;  %2813 = vmatpush.bf16.msrb.mxu2 %v6248_v26  ;;  %v7141_v4 = vld [vmem:[#allocation3 + $0x768] sm:$0xf0] }
  0xf4   :  { %2773 = vmatmul.bf16.vlgmr.msra.gmra.mxu1 %v10114_v38  ;;  %2828 = vmatpush.bf16.msrb.mxu0 %v6472_v48  ;;  %v9356_v7 = vld [vmem:[#allocation3 + $0x94c] sm:$0xf]  ;;  %v7144_v14 = vor.u32 %v9292_v3, %v7141_v4 }
  0xf5   :  { %2835 = vmatpush.bf16.msrb.mxu1 %v6952_v34  ;;  %v7397_v8 = vld [vmem:[#allocation3 + $0x968] sm:$0xf0] }
  0xf6   :  { %v9420_v10 = vld [vmem:[#allocation3 + $0xb4c] sm:$0xf]  ;;  %v7400_v15 = vor.u32 %v9356_v7, %v7397_v8 }
  0xf7   :  { %2786 = vmatpush.bf16.msrb.mxu3 %v7492_v42  ;;  %2814 = vmatpush.bf16.msrb.mxu2 %v6216_v47  ;;  %v7653_v11 = vld [vmem:[#allocation3 + $0xb68] sm:$0xf0]  ;;  %v2550_v42 = vpop.f32.mrf.mxu2 }
  0xf8   :  { %2877 = vmatpush.bf16.msra.mxu0 %v7720_v54  ;;  %v9220_v12 = vld [vmem:[#allocation3 + $0x50c] sm:$0xf]  ;;  %v7656_v18 = vor.u32 %v9420_v10, %v7653_v11  ;;  %v2551_v44 = vadd.f32 %v2550_v42, %v2537_v37  ;;  %v9113_v42 = vld [vmem:[#allocation3 + $0x1ac] sm:$0xf0] }
  0xf9   :  { %2836 = vmatpush.bf16.msrb.mxu1 %v6920_v56  ;;  %v6853_v13 = vld [vmem:[#allocation3 + $0x528] sm:$0xf0]  ;;  %2829 = vmatmul.bf16.vlgmr.msrb.gmra.mxu0 %v10088_v9  ;;  %v10142_v37 = vpop.f32.mrf.mxu0 }
  0xfa   :  { %2787 = vmatmul.bf16.vlgmr.msrb.gmra.mxu3 %v10116_v43  ;;  %2815 = vmatmul.bf16.vlgmr.msrb.gmra.mxu2 %v10076_v59  ;;  %v9284_v16 = vld [vmem:[#allocation3 + $0x70c] sm:$0xf]  ;;  %v6856_v19 = vor.u32 %v9220_v12, %v6853_v13 }
  0xfb   :  { %2849 = vmatpush.bf16.msra.mxu3 %v7208_v49  ;;  %2863 = vmatpush.bf16.msra.mxu2 %v7464_v50  ;;  %v7109_v17 = vld [vmem:[#allocation3 + $0x728] sm:$0xf0]  ;;  %v2564_v49 = vpop.f32.mrf.mxu3 }
  0xfc   :  { %2878 = vmatpush.bf16.msra.mxu0 %v7688_v5  ;;  %v9348_v20 = vld [vmem:[#allocation3 + $0x90c] sm:$0xf]  ;;  %v7112_v26 = vor.u32 %v9284_v16, %v7109_v17  ;;  %v10138_v57 = vadd.f32 %v2564_v49, %v2551_v44  ;;  %v10144_v44 = vpop.f32.mrf.mxu1  ;;  %v6923_v49 = vld [vmem:[#allocation3 + $0x590] sm:$0xf] }
  0xfd   :  { %2837 = vmatpush.bf16.msrb.mxu1 %v6888_v6  ;;  %v7365_v21 = vld [vmem:[#allocation3 + $0x928] sm:$0xf0] }
  0xfe   :  { %v9412_v22 = vld [vmem:[#allocation3 + $0xb0c] sm:$0xf]  ;;  %v7368_v27 = vor.u32 %v9348_v20, %v7365_v21 }
  0xff   :  { %2850 = vmatpush.bf16.msra.mxu3 %v7176_v1  ;;  %2864 = vmatpush.bf16.msra.mxu2 %v7432_v2  ;;  %v7621_v23 = vld [vmem:[#allocation3 + $0xb28] sm:$0xf0]  ;;  %v10140_v12 = vpop.f32.mrf.mxu2 }
 0x100   :  { %v9212_v24 = vld [vmem:[#allocation3 + $0x4cc] sm:$0xf]  ;;  %2879 = vmatpush.bf16.msra.mxu0 %v7656_v18  ;;  %v7624_v32 = vor.u32 %v9412_v22, %v7621_v23 }
 0x101   :  { %v6821_v25 = vld [vmem:[#allocation3 + $0x4e8] sm:$0xf0]  ;;  %2838 = vmatpush.bf16.msrb.mxu1 %v6856_v19 }
 0x102   :  { %v9276_v28 = vld [vmem:[#allocation3 + $0x6cc] sm:$0xf]  ;;  %v6824_v33 = vor.u32 %v9212_v24, %v6821_v25 }
 0x103   :  { %2851 = vmatpush.bf16.msra.mxu3 %v7144_v14  ;;  %2865 = vmatpush.bf16.msra.mxu2 %v7400_v15  ;;  %v7077_v29 = vld [vmem:[#allocation3 + $0x6e8] sm:$0xf0] }
 0x104   :  { %v9340_v34 = vld [vmem:[#allocation3 + $0x8cc] sm:$0xf]  ;;  %v7080_v45 = vor.u32 %v9276_v28, %v7077_v29  ;;  %2880 = vmatpush.bf16.msra.mxu0 %v7624_v32  ;;  %v6699_v28 = vld [vmem:[#allocation3 + $0x3d0] sm:$0xf] }
 0x105   :  { %v7333_v35 = vld [vmem:[#allocation3 + $0x8e8] sm:$0xf0]  ;;  %2839 = vmatpush.bf16.msrb.mxu1 %v6824_v33  ;;  %v9185_v29 = vld [vmem:[#allocation3 + $0x3ec] sm:$0xf0] }
 0x106   :  { %v9404_v36 = vld [vmem:[#allocation3 + $0xacc] sm:$0xf]  ;;  %v7336_v46 = vor.u32 %v9340_v34, %v7333_v35  ;;  %v9249_v32 = vld [vmem:[#allocation3 + $0x5ec] sm:$0xf0] }
 0x107   :  { %v7589_v39 = vld [vmem:[#allocation3 + $0xae8] sm:$0xf0]  ;;  %2852 = vmatpush.bf16.msra.mxu3 %v7112_v26  ;;  %2866 = vmatpush.bf16.msra.mxu2 %v7368_v27  ;;  %v6443_v26 = vld [vmem:[#allocation3 + $0x1d0] sm:$0xf] }
 0x108   :  { %v9204_v40 = vld [vmem:[#allocation3 + $0x48c] sm:$0xf]  ;;  %v7592_v50 = vor.u32 %v9404_v36, %v7589_v39  ;;  %v9121_v27 = vld [vmem:[#allocation3 + $0x1ec] sm:$0xf0] }
 0x109   :  { %v6789_v41 = vld [vmem:[#allocation3 + $0x4a8] sm:$0xf0]  ;;  %v7211_v33 = vld [vmem:[#allocation3 + $0x7d0] sm:$0xf]  ;;  %v6444_v39 = vor.u32 %v9121_v27, %v6443_v26 }
 0x10a   :  { %v9268_v47 = vld [vmem:[#allocation3 + $0x68c] sm:$0xf]  ;;  %v6792_v52 = vor.u32 %v9204_v40, %v6789_v41  ;;  %2881 = vmatpush.bf16.msra.mxu0 %v7592_v50  ;;  %v9313_v34 = vld [vmem:[#allocation3 + $0x7ec] sm:$0xf0]  ;;  %v6700_v40 = vor.u32 %v9185_v29, %v6699_v28  ;;  %v2606_v50 = vpop.f32.mrf.mxu2 }
 0x10b   :  { %v7045_v48 = vld [vmem:[#allocation3 + $0x6a8] sm:$0xf0]  ;;  %2853 = vmatpush.bf16.msra.mxu3 %v7080_v45  ;;  %2867 = vmatpush.bf16.msra.mxu2 %v7336_v46  ;;  %v6411_v41 = vld [vmem:[#allocation3 + $0x190] sm:$0xf]  ;;  %v6956_v45 = vor.u32 %v9249_v32, %v6955_v30  ;;  %v7212_v46 = vor.u32 %v9313_v34, %v7211_v33 }
 0x10c   :  { %v9332_v53 = vld [vmem:[#allocation3 + $0x88c] sm:$0xf]  ;;  %v7048_v63 = vor.u32 %v9268_v47, %v7045_v48  ;;  %2840 = vmatpush.bf16.msrb.mxu1 %v6792_v52  ;;  %v6667_v47 = vld [vmem:[#allocation3 + $0x390] sm:$0xf] }
 0x10d   :  { %v7301_v54 = vld [vmem:[#allocation3 + $0x8a8] sm:$0xf0]  ;;  %v9177_v48 = vld [vmem:[#allocation3 + $0x3ac] sm:$0xf0] }
 0x10e   :  { %v9396_v56 = vld [vmem:[#allocation3 + $0xa8c] sm:$0xf]  ;;  %v7304_v0 = vor.u32 %v9332_v53, %v7301_v54  ;;  %v9241_v52 = vld [vmem:[#allocation3 + $0x5ac] sm:$0xf0] }
 0x10f   :  { %v7557_v58 = vld [vmem:[#allocation3 + $0xaa8] sm:$0xf0]  ;;  %2854 = vmatpush.bf16.msra.mxu3 %v7048_v63  ;;  %v7179_v53 = vld [vmem:[#allocation3 + $0x790] sm:$0xf]  ;;  %v6924_v63 = vor.u32 %v9241_v52, %v6923_v49 }
 0x110   :  { %v9196_v60 = vld [vmem:[#allocation3 + $0x44c] sm:$0xf]  ;;  %v7560_v3 = vor.u32 %v9396_v56, %v7557_v58  ;;  %2868 = vmatpush.bf16.msra.mxu2 %v7304_v0  ;;  %v9305_v54 = vld [vmem:[#allocation3 + $0x7ac] sm:$0xf0]  ;;  %v6412_v56 = vor.u32 %v9113_v42, %v6411_v41  ;;  %v6668_v58 = vor.u32 %v9177_v48, %v6667_v47 }
 0x111   :  { %v6757_v62 = vld [vmem:[#allocation3 + $0x468] sm:$0xf0]  ;;  %v7180_v0 = vor.u32 %v9305_v54, %v7179_v53  ;;  %v6315_v29 = vld [vmem:[#allocation3 + $0xd0] sm:$0xf] }
 0x112   :  { %v9260_v1 = vld [vmem:[#allocation3 + $0x64c] sm:$0xf]  ;;  %v6760_v4 = vor.u32 %v9196_v60, %v6757_v62  ;;  %2882 = vmatpush.bf16.msra.mxu0 %v7560_v3  ;;  %v6379_v60 = vld [vmem:[#allocation3 + $0x150] sm:$0xf] }
 0x113   :  { %v7013_v2 = vld [vmem:[#allocation3 + $0x668] sm:$0xf0]  ;;  %v9105_v62 = vld [vmem:[#allocation3 + $0x16c] sm:$0xf0] }
 0x114   :  { %v9324_v5 = vld [vmem:[#allocation3 + $0x84c] sm:$0xf]  ;;  %v7016_v15 = vor.u32 %v9260_v1, %v7013_v2  ;;  %2841 = vmatpush.bf16.msrb.mxu1 %v6760_v4  ;;  %v6635_v1 = vld [vmem:[#allocation3 + $0x350] sm:$0xf] }
 0x115   :  { %v7269_v6 = vld [vmem:[#allocation3 + $0x868] sm:$0xf0]  ;;  %v9169_v2 = vld [vmem:[#allocation3 + $0x36c] sm:$0xf0] }
 0x116   :  { %v9388_v7 = vld [vmem:[#allocation3 + $0xa4c] sm:$0xf]  ;;  %v7272_v16 = vor.u32 %v9324_v5, %v7269_v6  ;;  %2855 = vmatpush.bf16.msra.mxu3 %v7016_v15  ;;  %v6891_v3 = vld [vmem:[#allocation3 + $0x550] sm:$0xf] }
 0x117   :  { %v7525_v8 = vld [vmem:[#allocation3 + $0xa68] sm:$0xf0]  ;;  %v9233_v4 = vld [vmem:[#allocation3 + $0x56c] sm:$0xf0] }
 0x118   :  { %v9188_v10 = vld [vmem:[#allocation3 + $0x40c] sm:$0xf]  ;;  %v7528_v19 = vor.u32 %v9388_v7, %v7525_v8  ;;  %2869 = vmatpush.bf16.msra.mxu2 %v7272_v16  ;;  %v7147_v5 = vld [vmem:[#allocation3 + $0x750] sm:$0xf]  ;;  %v2578_v7 = vpop.f32.mrf.mxu0  ;;  %v6380_v8 = vor.u32 %v9105_v62, %v6379_v60  ;;  %v6892_v15 = vor.u32 %v9233_v4, %v6891_v3 }
 0x119   :  { %v6725_v11 = vld [vmem:[#allocation3 + $0x428] sm:$0xf0]  ;;  %v9297_v6 = vld [vmem:[#allocation3 + $0x76c] sm:$0xf0] }
 0x11a   :  { %v9444_v13 = vld [vmem:[#allocation3 + $0xc0c] sm:$0xf]  ;;  %v6728_v20 = vor.u32 %v9188_v10, %v6725_v11  ;;  %2883 = vmatpush.bf16.msra.mxu0 %v7528_v19  ;;  %v6636_v10 = vor.u32 %v9169_v2, %v6635_v1  ;;  %v6347_v11 = vld [vmem:[#allocation3 + $0x110] sm:$0xf]  ;;  %v7148_v16 = vor.u32 %v9297_v6, %v7147_v5 }
 0x11b   :  { %v7749_v14 = vld [vmem:[#allocation3 + $0xc28] sm:$0xf0]  ;;  %v9161_v19 = vld [vmem:[#allocation3 + $0x32c] sm:$0xf0] }
 0x11c   :  { %v9252_v17 = vld [vmem:[#allocation3 + $0x60c] sm:$0xf]  ;;  %v7752_v25 = vor.u32 %v9444_v13, %v7749_v14  ;;  %2842 = vmatpush.bf16.msrb.mxu1 %v6728_v20  ;;  %v9097_v13 = vld [vmem:[#allocation3 + $0x12c] sm:$0xf0]  ;;  %v2579_v14 = vadd.f32 %v2578_v7, %v10138_v57 }
 0x11d   :  { %v6981_v18 = vld [vmem:[#allocation3 + $0x628] sm:$0xf0]  ;;  %v6859_v20 = vld [vmem:[#allocation3 + $0x510] sm:$0xf]  ;;  %v6348_v27 = vor.u32 %v9097_v13, %v6347_v11 }
 0x11e   :  { %v9316_v21 = vld [vmem:[#allocation3 + $0x80c] sm:$0xf]  ;;  %v6984_v31 = vor.u32 %v9252_v17, %v6981_v18  ;;  %v2592_v17 = vpop.f32.mrf.mxu1  ;;  %v6603_v18 = vld [vmem:[#allocation3 + $0x310] sm:$0xf] }
 0x11f   :  { %v7237_v22 = vld [vmem:[#allocation3 + $0x828] sm:$0xf0]  ;;  %2843 = vmatmul.bf16.vlgmr.msrb.gmra.mxu1 %v10074_v55  ;;  %v2593_v26 = vadd.f32 %v2592_v17, %v2579_v14  ;;  %v6604_v28 = vor.u32 %v9161_v19, %v6603_v18  ;;  %v9089_v57 = vld [vmem:[#allocation3 + $0xec] sm:$0xf0] }
 0x120   :  { %v9380_v23 = vld [vmem:[#allocation3 + $0xa0c] sm:$0xf]  ;;  %v7240_v35 = vor.u32 %v9316_v21, %v7237_v22  ;;  %2898 = vmatpush.bf16.msra.mxu1 %v7752_v25  ;;  %2856 = vmatpush.bf16.msra.mxu3 %v6984_v31  ;;  %v10151_v21 = vpop.f32.mrf.mxu2  ;;  %v10153_v22 = vpop.f32.mrf.mxu3  ;;  %v9289_v25 = vld [vmem:[#allocation3 + $0x72c] sm:$0xf0]  ;;  %v6316_v41 = vor.u32 %v9089_v57, %v6315_v29  ;;  %v3305_v29 = vld [vmem:[#allocation5] sm:$0xff] }
 0x121   :  { %v7493_v24 = vld [vmem:[#allocation3 + $0xa28] sm:$0xf0]  ;;  %v10155_v30 = vadd.f32 %v2606_v50, %v2593_v26  ;;  %v6571_v33 = vld [vmem:[#allocation3 + $0x2d0] sm:$0xf]  ;;  %3307 = vst [vmem:[#allocation1] ss:$9 sm:$0xff] %v3305_v29 }
 0x122   :  { %v7496_v36 = vor.u32 %v9380_v23, %v7493_v24  ;;  %2870 = vmatpush.bf16.msra.mxu2 %v7240_v35  ;;  %v9225_v23 = vld [vmem:[#allocation3 + $0x52c] sm:$0xf0] }
 0x123   :  { %2857 = vmatmul.bf16.vlgmr.msra.gmra.mxu3 %v10078_v61  ;;  %v7115_v24 = vld [vmem:[#allocation3 + $0x710] sm:$0xf]  ;;  %v6860_v31 = vor.u32 %v9225_v23, %v6859_v20 }
 0x124   :  { %2884 = vmatpush.bf16.msra.mxu0 %v7496_v36  ;;  %2905 = vmatpush.bf16.msrb.mxu3 %v6444_v39  ;;  %v7116_v32 = vor.u32 %v9289_v25, %v7115_v24  ;;  %v9153_v34 = vld [vmem:[#allocation3 + $0x2ec] sm:$0xf0] }
 0x125   :  { %2919 = vmatpush.bf16.msrb.mxu1 %v6700_v40  ;;  %2871 = vmatmul.bf16.vlgmr.msra.gmra.mxu2 %v10114_v38  ;;  %v6827_v35 = vld [vmem:[#allocation3 + $0x4d0] sm:$0xf]  ;;  %v6572_v42 = vor.u32 %v9153_v34, %v6571_v33  ;;  %v9117_v34 = vld [vmem:[#allocation3 + $0x1d4] sm:$0xf] }
 0x126   :  { %2933 = vmatpush.bf16.msrb.mxu2 %v6956_v45  ;;  %v9217_v36 = vld [vmem:[#allocation3 + $0x4ec] sm:$0xf0] }
 0x127   :  { %2885 = vmatmul.bf16.vlgmr.msra.gmra.mxu0 %v10116_v43  ;;  %v7083_v39 = vld [vmem:[#allocation3 + $0x6d0] sm:$0xf]  ;;  %v6828_v47 = vor.u32 %v9217_v36, %v6827_v35  ;;  %v6445_v35 = vld [vmem:[#allocation3 + $0x1f0] sm:$0xf0] }
 0x128   :  { %2947 = vmatpush.bf16.msrb.mxu0 %v7212_v46  ;;  %2906 = vmatpush.bf16.msrb.mxu3 %v6412_v56  ;;  %v9281_v40 = vld [vmem:[#allocation3 + $0x6ec] sm:$0xf0]  ;;  %v2634_v60 = vpop.f32.mrf.mxu2 }
 0x129   :  { %2920 = vmatpush.bf16.msrb.mxu1 %v6668_v58  ;;  %v6283_v45 = vld [vmem:[#allocation3 + $0x90] sm:$0xf]  ;;  %v7084_v48 = vor.u32 %v9281_v40, %v7083_v39  ;;  %v2620_v58 = vpop.f32.mrf.mxu3 }
 0x12a   :  { %2934 = vmatpush.bf16.msrb.mxu2 %v6924_v63  ;;  %v9081_v46 = vld [vmem:[#allocation3 + $0xac] sm:$0xf0]  ;;  %v10159_v62 = vadd.f32 %v2634_v60, %v2620_v58  ;;  %v9109_v58 = vld [vmem:[#allocation3 + $0x194] sm:$0xf] }
 0x12b   :  { %v6539_v49 = vld [vmem:[#allocation3 + $0x290] sm:$0xf]  ;;  %v6284_v63 = vor.u32 %v9081_v46, %v6283_v45  ;;  %v6413_v60 = vld [vmem:[#allocation3 + $0x1b0] sm:$0xf0] }
 0x12c   :  { %2948 = vmatpush.bf16.msrb.mxu0 %v7180_v0  ;;  %2907 = vmatpush.bf16.msrb.mxu3 %v6380_v8  ;;  %v9145_v50 = vld [vmem:[#allocation3 + $0x2ac] sm:$0xf0] }
 0x12d   :  { %2921 = vmatpush.bf16.msrb.mxu1 %v6636_v10  ;;  %v6795_v52 = vld [vmem:[#allocation3 + $0x490] sm:$0xf]  ;;  %v6540_v0 = vor.u32 %v9145_v50, %v6539_v49  ;;  %v6448_v49 = vor.u32 %v9117_v34, %v6445_v35  ;;  %v9157_v35 = vld [vmem:[#allocation3 + $0x314] sm:$0xf] }
 0x12e   :  { %2935 = vmatpush.bf16.msrb.mxu2 %v6892_v15  ;;  %v9209_v53 = vld [vmem:[#allocation3 + $0x4ac] sm:$0xf0] }
 0x12f   :  { %7772 = vmatmul.msk.bf16.vlgmr.msra.gmra.mxu1 %vm2509_vm0, %v10098_v51  ;;  %v7051_v54 = vld [vmem:[#allocation3 + $0x690] sm:$0xf]  ;;  %v6796_v3 = vor.u32 %v9209_v53, %v6795_v52 }
 0x130   :  { %2949 = vmatpush.bf16.msrb.mxu0 %v7148_v16  ;;  %2908 = vmatpush.bf16.msrb.mxu3 %v6348_v27  ;;  %v9273_v56 = vld [vmem:[#allocation3 + $0x6ac] sm:$0xf0] }
 0x131   :  { %2922 = vmatpush.bf16.msrb.mxu1 %v6604_v28  ;;  %v6251_v1 = vld [vmem:[#allocation3 + $0x50] sm:$0xf]  ;;  %v7052_v4 = vor.u32 %v9273_v56, %v7051_v54  ;;  %v10163_v54 = vpop.f32.mrf.mxu1 }
 0x132   :  { %2936 = vmatpush.bf16.msrb.mxu2 %v6860_v31  ;;  %v9073_v2 = vld [vmem:[#allocation3 + $0x6c] sm:$0xf0] }
 0x133   :  { %v6507_v5 = vld [vmem:[#allocation3 + $0x250] sm:$0xf]  ;;  %v6252_v15 = vor.u32 %v9073_v2, %v6251_v1  ;;  %v9173_v2 = vld [vmem:[#allocation3 + $0x394] sm:$0xf] }
 0x134   :  { %2950 = vmatpush.bf16.msrb.mxu0 %v7116_v32  ;;  %2909 = vmatpush.bf16.msrb.mxu3 %v6316_v41  ;;  %v9137_v6 = vld [vmem:[#allocation3 + $0x26c] sm:$0xf0]  ;;  %v10161_v41 = vpop.f32.mrf.mxu0 }
 0x135   :  { %2923 = vmatpush.bf16.msrb.mxu1 %v6572_v42  ;;  %v6763_v7 = vld [vmem:[#allocation3 + $0x450] sm:$0xf]  ;;  %v6508_v16 = vor.u32 %v9137_v6, %v6507_v5  ;;  %v6416_v5 = vor.u32 %v9109_v58, %v6413_v60  ;;  %v6573_v58 = vld [vmem:[#allocation3 + $0x2f0] sm:$0xf0] }
 0x136   :  { %2937 = vmatpush.bf16.msrb.mxu2 %v6828_v47  ;;  %v9201_v8 = vld [vmem:[#allocation3 + $0x46c] sm:$0xf0]  ;;  %v9181_v47 = vld [vmem:[#allocation3 + $0x3d4] sm:$0xf] }
 0x137   :  { %v7019_v10 = vld [vmem:[#allocation3 + $0x650] sm:$0xf]  ;;  %v6764_v20 = vor.u32 %v9201_v8, %v6763_v7 }
 0x138   :  { %2951 = vmatpush.bf16.msrb.mxu0 %v7084_v48  ;;  %v9265_v11 = vld [vmem:[#allocation3 + $0x66c] sm:$0xf0]  ;;  %2910 = vmatpush.bf16.msrb.mxu3 %v6284_v63  ;;  %v6701_v48 = vld [vmem:[#allocation3 + $0x3f0] sm:$0xf0] }
 0x139   :  { %v6219_v13 = vld [vmem:[#allocation3 + $0x10] sm:$0xf]  ;;  %2924 = vmatpush.bf16.msrb.mxu1 %v6540_v0  ;;  %v7020_v23 = vor.u32 %v9265_v11, %v7019_v10  ;;  %v6704_v0 = vor.u32 %v9181_v47, %v6701_v48  ;;  %v9101_v11 = vld [vmem:[#allocation3 + $0x154] sm:$0xf] }
 0x13a   :  { %v9065_v14 = vld [vmem:[#allocation3 + $0x2c] sm:$0xf0]  ;;  %2938 = vmatpush.bf16.msrb.mxu2 %v6796_v3  ;;  %v6669_v3 = vld [vmem:[#allocation3 + $0x3b0] sm:$0xf0] }
 0x13b   :  { %v6475_v17 = vld [vmem:[#allocation3 + $0x210] sm:$0xf]  ;;  %v6220_v32 = vor.u32 %v9065_v14, %v6219_v13  ;;  %v6381_v13 = vld [vmem:[#allocation3 + $0x170] sm:$0xf0]  ;;  %v10168_v14 = vpop.f32.mrf.mxu3 }
 0x13c   :  { %v9129_v18 = vld [vmem:[#allocation3 + $0x22c] sm:$0xf0]  ;;  %2952 = vmatpush.bf16.msrb.mxu0 %v7052_v4  ;;  %2911 = vmatpush.bf16.msrb.mxu3 %v6252_v15  ;;  %v6672_v15 = vor.u32 %v9173_v2, %v6669_v3  ;;  %v9085_v47 = vld [vmem:[#allocation3 + $0xd4] sm:$0xf] }
 0x13d   :  { %v6731_v19 = vld [vmem:[#allocation3 + $0x410] sm:$0xf]  ;;  %2925 = vmatpush.bf16.msrb.mxu1 %v6508_v16  ;;  %v6476_v33 = vor.u32 %v9129_v18, %v6475_v17  ;;  %v2648_v16 = vpop.f32.mrf.mxu0  ;;  %v9165_v18 = vld [vmem:[#allocation3 + $0x354] sm:$0xf] }
 0x13e   :  { %v9193_v24 = vld [vmem:[#allocation3 + $0x42c] sm:$0xf0]  ;;  %2939 = vmatpush.bf16.msrb.mxu2 %v6764_v20  ;;  %v2649_v20 = vadd.f32 %v2648_v16, %v10159_v62  ;;  %v6317_v48 = vld [vmem:[#allocation3 + $0xf0] sm:$0xf0] }
 0x13f   :  { %v6987_v25 = vld [vmem:[#allocation3 + $0x610] sm:$0xf]  ;;  %v6732_v36 = vor.u32 %v9193_v24, %v6731_v19  ;;  %v6637_v19 = vld [vmem:[#allocation3 + $0x370] sm:$0xf0]  ;;  %v6384_v24 = vor.u32 %v9101_v11, %v6381_v13 }
 0x140   :  { %v9257_v26 = vld [vmem:[#allocation3 + $0x62c] sm:$0xf0]  ;;  %2953 = vmatpush.bf16.msrb.mxu0 %v7020_v23  ;;  %2912 = vmatpush.bf16.msrb.mxu3 %v6220_v32  ;;  %v6541_v11 = vld [vmem:[#allocation3 + $0x2b0] sm:$0xf0] }
 0x141   :  { %v7467_v27 = vld [vmem:[#allocation3 + $0x9d0] sm:$0xf]  ;;  %v6988_v39 = vor.u32 %v9257_v26, %v6987_v25  ;;  %2926 = vmatpush.bf16.msrb.mxu1 %v6476_v33  ;;  %v6640_v33 = vor.u32 %v9165_v18, %v6637_v19 }
 0x142   :  { %v9377_v28 = vld [vmem:[#allocation3 + $0x9ec] sm:$0xf0]  ;;  %2940 = vmatpush.bf16.msrb.mxu2 %v6732_v36  ;;  %v6605_v36 = vld [vmem:[#allocation3 + $0x330] sm:$0xf0] }
 0x143   :  { %v7723_v57 = vld [vmem:[#allocation3 + $0xbd0] sm:$0xf]  ;;  %v7468_v42 = vor.u32 %v9377_v28, %v7467_v27  ;;  %2913 = vmatmul.bf16.vlgmr.msrb.gmra.mxu3 %v10076_v59  ;;  %v2662_v28 = vpop.f32.mrf.mxu1 }
 0x144   :  { %v9441_v31 = vld [vmem:[#allocation3 + $0xbec] sm:$0xf0]  ;;  %2954 = vmatpush.bf16.msrb.mxu0 %v6988_v39  ;;  %2927 = vmatmul.bf16.vlgmr.msrb.gmra.mxu1 %v10088_v9  ;;  %v2663_v32 = vadd.f32 %v2662_v28, %v2649_v20  ;;  %v9069_v20 = vld [vmem:[#allocation3 + $0x54] sm:$0xf] }
 0x145   :  { %v7755_v40 = vld [vmem:[#allocation3 + $0xc10] sm:$0xf]  ;;  %v7724_v45 = vor.u32 %v9441_v31, %v7723_v57  ;;  %2961 = vmatpush.bf16.msra.mxu3 %v7468_v42  ;;  %2941 = vmatmul.bf16.vlgmr.msrb.gmra.mxu2 %v10074_v55  ;;  %v9093_v57 = vld [vmem:[#allocation3 + $0x114] sm:$0xf] }
 0x146   :  { %v9449_v46 = vld [vmem:[#allocation3 + $0xc2c] sm:$0xf0]  ;;  %v6349_v31 = vld [vmem:[#allocation3 + $0x130] sm:$0xf0] }
 0x147   :  { %v7435_v50 = vld [vmem:[#allocation3 + $0x990] sm:$0xf]  ;;  %v7756_v63 = vor.u32 %v9449_v46, %v7755_v40  ;;  %2975 = vmatpush.bf16.msra.mxu1 %v7724_v45  ;;  %2955 = vmatmul.bf16.vlgmr.msrb.gmra.mxu0 %v10078_v61  ;;  %v6352_v62 = vor.u32 %v9093_v57, %v6349_v31  ;;  %v6509_v28 = vld [vmem:[#allocation3 + $0x270] sm:$0xf0] }
 0x148   :  { %v9369_v52 = vld [vmem:[#allocation3 + $0x9ac] sm:$0xf0]  ;;  %3003 = vmatpush.bf16.msra.mxu0 %v6448_v49  ;;  %v2676_v49 = vpop.f32.mrf.mxu3 }
 0x149   :  { %v7691_v53 = vld [vmem:[#allocation3 + $0xb90] sm:$0xf]  ;;  %v7436_v1 = vor.u32 %v9369_v52, %v7435_v50  ;;  %2996 = vmatpush.bf16.msra.mxu2 %v7756_v63  ;;  %v10172_v50 = vadd.f32 %v2676_v49, %v2663_v32  ;;  %v6608_v52 = vor.u32 %v9157_v35, %v6605_v36  ;;  %v6320_v63 = vor.u32 %v9085_v47, %v6317_v48  ;;  %v9061_v35 = vld [vmem:[#allocation3 + $0x14] sm:$0xf] }
 0x14a   :  { %v9433_v56 = vld [vmem:[#allocation3 + $0xbac] sm:$0xf0]  ;;  %v6221_v36 = vld [vmem:[#allocation3 + $0x30] sm:$0xf0] }
 0x14b   :  { %v7692_v4 = vor.u32 %v9433_v56, %v7691_v53  ;;  %v7403_v6 = vld [vmem:[#allocation3 + $0x950] sm:$0xf]  ;;  %2962 = vmatpush.bf16.msra.mxu3 %v7436_v1  ;;  %v9149_v56 = vld [vmem:[#allocation3 + $0x2d4] sm:$0xf] }
 0x14c   :  { %v9361_v7 = vld [vmem:[#allocation3 + $0x96c] sm:$0xf0]  ;;  %3004 = vmatpush.bf16.msra.mxu0 %v6416_v5  ;;  %v6285_v5 = vld [vmem:[#allocation3 + $0xb0] sm:$0xf0] }
 0x14d   :  { %v7659_v8 = vld [vmem:[#allocation3 + $0xb50] sm:$0xf]  ;;  %3017 = vmatpush.bf16.msrb.mxu2 %v6704_v0  ;;  %v7404_v17 = vor.u32 %v9361_v7, %v7403_v6  ;;  %2976 = vmatpush.bf16.msra.mxu1 %v7692_v4  ;;  %v9077_v4 = vld [vmem:[#allocation3 + $0x94] sm:$0xf]  ;;  %v10174_v6 = vpop.f32.mrf.mxu2  ;;  %v6576_v7 = vor.u32 %v9149_v56, %v6573_v58 }
 0x14e   :  { %v9425_v10 = vld [vmem:[#allocation3 + $0xb6c] sm:$0xf0]  ;;  %v9373_v48 = vld [vmem:[#allocation3 + $0x9d4] sm:$0xf] }
 0x14f   :  { %v7660_v23 = vor.u32 %v9425_v10, %v7659_v8  ;;  %v7371_v25 = vld [vmem:[#allocation3 + $0x910] sm:$0xf]  ;;  %2963 = vmatpush.bf16.msra.mxu3 %v7404_v17  ;;  %v9141_v10 = vld [vmem:[#allocation3 + $0x294] sm:$0xf] }
 0x150   :  { %v9353_v26 = vld [vmem:[#allocation3 + $0x92c] sm:$0xf0]  ;;  %3005 = vmatpush.bf16.msra.mxu0 %v6384_v24  ;;  %v10178_v24 = vpop.f32.mrf.mxu3  ;;  %v7469_v49 = vld [vmem:[#allocation3 + $0x9f0] sm:$0xf0] }
 0x151   :  { %v7627_v27 = vld [vmem:[#allocation3 + $0xb10] sm:$0xf]  ;;  %3018 = vmatpush.bf16.msrb.mxu2 %v6672_v15  ;;  %v7372_v34 = vor.u32 %v9353_v26, %v7371_v25  ;;  %2977 = vmatpush.bf16.msra.mxu1 %v7660_v23  ;;  %v6288_v15 = vor.u32 %v9077_v4, %v6285_v5  ;;  %v6253_v23 = vld [vmem:[#allocation3 + $0x70] sm:$0xf0]  ;;  %v6544_v25 = vor.u32 %v9141_v10, %v6541_v11 }
 0x152   :  { %v9417_v29 = vld [vmem:[#allocation3 + $0xb2c] sm:$0xf0]  ;;  %v6256_v31 = vor.u32 %v9069_v20, %v6253_v23  ;;  %v9125_v56 = vld [vmem:[#allocation3 + $0x214] sm:$0xf]  ;;  %v7472_v4 = vor.u32 %v9373_v48, %v7469_v49 }
 0x153   :  { %v7628_v39 = vor.u32 %v9417_v29, %v7627_v27  ;;  %v7339_v40 = vld [vmem:[#allocation3 + $0x8d0] sm:$0xf]  ;;  %2964 = vmatpush.bf16.msra.mxu3 %v7372_v34  ;;  %v9133_v27 = vld [vmem:[#allocation3 + $0x254] sm:$0xf] }
 0x154   :  { %v9345_v42 = vld [vmem:[#allocation3 + $0x8ec] sm:$0xf0]  ;;  %3006 = vmatpush.bf16.msra.mxu0 %v6352_v62  ;;  %v6477_v58 = vld [vmem:[#allocation3 + $0x230] sm:$0xf0] }
 0x155   :  { %v7595_v45 = vld [vmem:[#allocation3 + $0xad0] sm:$0xf]  ;;  %3019 = vmatpush.bf16.msrb.mxu2 %v6640_v33  ;;  %v7340_v53 = vor.u32 %v9345_v42, %v7339_v40  ;;  %2978 = vmatpush.bf16.msra.mxu1 %v7628_v39  ;;  %v9245_v39 = vld [vmem:[#allocation3 + $0x5d4] sm:$0xf]  ;;  %v2690_v62 = vpop.f32.mrf.mxu2 }
 0x156   :  { %v9409_v46 = vld [vmem:[#allocation3 + $0xaec] sm:$0xf0]  ;;  %7773 = vmatmul.msk.bf16.vlgmr.msra.gmra.mxu2 %vm2509_vm0, %v10098_v51  ;;  %v6957_v40 = vld [vmem:[#allocation3 + $0x5f0] sm:$0xf0] }
 0x157   :  { %v7596_v60 = vor.u32 %v9409_v46, %v7595_v45  ;;  %v7307_v0 = vld [vmem:[#allocation3 + $0x890] sm:$0xf]  ;;  %2965 = vmatpush.bf16.msra.mxu3 %v7340_v53  ;;  %v9309_v42 = vld [vmem:[#allocation3 + $0x7d4] sm:$0xf]  ;;  %v6512_v46 = vor.u32 %v9133_v27, %v6509_v28  ;;  %v6224_v53 = vor.u32 %v9061_v35, %v6221_v36 }
 0x158   :  { %v9337_v1 = vld [vmem:[#allocation3 + $0x8ac] sm:$0xf0]  ;;  %3007 = vmatpush.bf16.msra.mxu0 %v6320_v63  ;;  %v7213_v45 = vld [vmem:[#allocation3 + $0x7f0] sm:$0xf0]  ;;  %v6960_v63 = vor.u32 %v9245_v39, %v6957_v40  ;;  %v2704_v5 = vpop.f32.mrf.mxu3 }
 0x159   :  { %v7563_v2 = vld [vmem:[#allocation3 + $0xa90] sm:$0xf]  ;;  %3020 = vmatpush.bf16.msrb.mxu2 %v6608_v52  ;;  %v7308_v8 = vor.u32 %v9337_v1, %v7307_v0  ;;  %2979 = vmatpush.bf16.msra.mxu1 %v7596_v60  ;;  %v2691_v60 = vadd.f32 %v2690_v62, %v10172_v50  ;;  %v7216_v0 = vor.u32 %v9309_v42, %v7213_v45  ;;  %v9437_v1 = vld [vmem:[#allocation3 + $0xbd4] sm:$0xf] }
 0x15a   :  { %v9401_v3 = vld [vmem:[#allocation3 + $0xaac] sm:$0xf0]  ;;  %v7181_v10 = vld [vmem:[#allocation3 + $0x7b0] sm:$0xf0] }
 0x15b   :  { %v7564_v13 = vor.u32 %v9401_v3, %v7563_v2  ;;  %v7275_v16 = vld [vmem:[#allocation3 + $0x850] sm:$0xf]  ;;  %2966 = vmatpush.bf16.msra.mxu3 %v7308_v8  ;;  %v7725_v2 = vld [vmem:[#allocation3 + $0xbf0] sm:$0xf0]  ;;  %v2705_v11 = vadd.f32 %v2704_v5, %v2691_v60 }
 0x15c   :  { %v9329_v17 = vld [vmem:[#allocation3 + $0x86c] sm:$0xf0]  ;;  %3008 = vmatpush.bf16.msra.mxu0 %v6288_v15  ;;  %v9237_v3 = vld [vmem:[#allocation3 + $0x594] sm:$0xf] }
 0x15d   :  { %v7531_v18 = vld [vmem:[#allocation3 + $0xa50] sm:$0xf]  ;;  %3021 = vmatpush.bf16.msrb.mxu2 %v6576_v7  ;;  %v7276_v26 = vor.u32 %v9329_v17, %v7275_v16  ;;  %2980 = vmatpush.bf16.msra.mxu1 %v7564_v13  ;;  %v6925_v7 = vld [vmem:[#allocation3 + $0x5b0] sm:$0xf0]  ;;  %v6480_v13 = vor.u32 %v9125_v56, %v6477_v58  ;;  %v7728_v17 = vor.u32 %v9437_v1, %v7725_v2 }
 0x15e   :  { %v9393_v19 = vld [vmem:[#allocation3 + $0xa6c] sm:$0xf0]  ;;  %v9301_v8 = vld [vmem:[#allocation3 + $0x794] sm:$0xf]  ;;  %v10182_v50 = vpack.c.bf16 %v2705_v11, %v10155_v30 }
 0x15f   :  { %v7243_v29 = vld [vmem:[#allocation3 + $0x810] sm:$0xf]  ;;  %v7532_v57 = vor.u32 %v9393_v19, %v7531_v18  ;;  %2967 = vmatpush.bf16.msra.mxu3 %v7276_v26  ;;  %v9365_v15 = vld [vmem:[#allocation3 + $0x994] sm:$0xf]  ;;  %v6928_v18 = vor.u32 %v9237_v3, %v6925_v7  ;;  %v7184_v19 = vor.u32 %v9301_v8, %v7181_v10 }
 0x160   :  { %v9321_v32 = vld [vmem:[#allocation3 + $0x82c] sm:$0xf0]  ;;  %3009 = vmatpush.bf16.msra.mxu0 %v6256_v31  ;;  %v7437_v16 = vld [vmem:[#allocation3 + $0x9b0] sm:$0xf0] }
 0x161   :  { %v7499_v33 = vld [vmem:[#allocation3 + $0xa10] sm:$0xf]  ;;  %3022 = vmatpush.bf16.msrb.mxu2 %v6544_v25  ;;  %v7244_v47 = vor.u32 %v9321_v32, %v7243_v29  ;;  %2981 = vmatpush.bf16.msra.mxu1 %v7532_v57  ;;  %v9429_v20 = vld [vmem:[#allocation3 + $0xb94] sm:$0xf]  ;;  %v7440_v26 = vor.u32 %v9365_v15, %v7437_v16 }
 0x162   :  { %v9385_v34 = vld [vmem:[#allocation3 + $0xa2c] sm:$0xf0]  ;;  %v7693_v23 = vld [vmem:[#allocation3 + $0xbb0] sm:$0xf0] }
 0x163   :  { %v7500_v52 = vor.u32 %v9385_v34, %v7499_v33  ;;  %2968 = vmatpush.bf16.msra.mxu3 %v7244_v47  ;;  %v9229_v25 = vld [vmem:[#allocation3 + $0x554] sm:$0xf]  ;;  %v7696_v30 = vor.u32 %v9429_v20, %v7693_v23 }
 0x164   :  { %3010 = vmatpush.bf16.msra.mxu0 %v6224_v53  ;;  %v6893_v27 = vld [vmem:[#allocation3 + $0x570] sm:$0xf0] }
 0x165   :  { %3023 = vmatpush.bf16.msrb.mxu2 %v6512_v46  ;;  %2982 = vmatpush.bf16.msra.mxu1 %v7500_v52  ;;  %v9293_v28 = vld [vmem:[#allocation3 + $0x754] sm:$0xf]  ;;  %v6896_v32 = vor.u32 %v9229_v25, %v6893_v27 }
 0x166   :  { %2969 = vmatmul.bf16.vlgmr.msra.gmra.mxu3 %v10114_v38  ;;  %v7149_v29 = vld [vmem:[#allocation3 + $0x770] sm:$0xf0] }
 0x167   :  { %3031 = vmatpush.bf16.msrb.mxu3 %v6960_v63  ;;  %v9357_v57 = vld [vmem:[#allocation3 + $0x954] sm:$0xf]  ;;  %3011 = vmatmul.bf16.vlgmr.msra.gmra.mxu0 %v10076_v59  ;;  %v7152_v33 = vor.u32 %v9293_v28, %v7149_v29 }
 0x168   :  { %3059 = vmatpush.bf16.msrb.mxu0 %v7472_v4  ;;  %v7405_v31 = vld [vmem:[#allocation3 + $0x970] sm:$0xf0]  ;;  %2983 = vmatmul.bf16.vlgmr.msra.gmra.mxu1 %v10116_v43 }
 0x169   :  { %3045 = vmatpush.bf16.msrb.mxu1 %v7216_v0  ;;  %3024 = vmatpush.bf16.msrb.mxu2 %v6480_v13  ;;  %v9421_v34 = vld [vmem:[#allocation3 + $0xb54] sm:$0xf]  ;;  %v7408_v39 = vor.u32 %v9357_v57, %v7405_v31 }
 0x16a   :  { %v7661_v35 = vld [vmem:[#allocation3 + $0xb70] sm:$0xf0] }
 0x16b   :  { %3032 = vmatpush.bf16.msrb.mxu3 %v6928_v18  ;;  %v9221_v36 = vld [vmem:[#allocation3 + $0x514] sm:$0xf]  ;;  %v7664_v47 = vor.u32 %v9421_v34, %v7661_v35 }
 0x16c   :  { %3060 = vmatpush.bf16.msrb.mxu0 %v7440_v26  ;;  %v6861_v62 = vld [vmem:[#allocation3 + $0x530] sm:$0xf0]  ;;  %3025 = vmatmul.bf16.vlgmr.msrb.gmra.mxu2 %v10088_v9 }
 0x16d   :  { %3073 = vmatpush.bf16.msra.mxu2 %v7728_v17  ;;  %3046 = vmatpush.bf16.msrb.mxu1 %v7184_v19  ;;  %v9285_v40 = vld [vmem:[#allocation3 + $0x714] sm:$0xf]  ;;  %v6864_v48 = vor.u32 %v9221_v36, %v6861_v62 }
 0x16e   :  { %v7117_v42 = vld [vmem:[#allocation3 + $0x730] sm:$0xf0] }
 0x16f   :  { %v9349_v45 = vld [vmem:[#allocation3 + $0x914] sm:$0xf]  ;;  %3033 = vmatpush.bf16.msrb.mxu3 %v6896_v32  ;;  %v7120_v49 = vor.u32 %v9285_v40, %v7117_v42 }
 0x170   :  { %v7373_v46 = vld [vmem:[#allocation3 + $0x930] sm:$0xf0]  ;;  %3061 = vmatpush.bf16.msrb.mxu0 %v7408_v39 }
 0x171   :  { %3074 = vmatpush.bf16.msra.mxu2 %v7696_v30  ;;  %3047 = vmatpush.bf16.msrb.mxu1 %v7152_v33  ;;  %v9413_v52 = vld [vmem:[#allocation3 + $0xb14] sm:$0xf]  ;;  %v7376_v58 = vor.u32 %v9349_v45, %v7373_v46 }
 0x172   :  { %v7629_v53 = vld [vmem:[#allocation3 + $0xb30] sm:$0xf0] }
 0x173   :  { %v9213_v56 = vld [vmem:[#allocation3 + $0x4d4] sm:$0xf]  ;;  %v7632_v3 = vor.u32 %v9413_v52, %v7629_v53  ;;  %3034 = vmatpush.bf16.msrb.mxu3 %v6864_v48  ;;  %v9122_v52 = vld [vmem:[#allocation3 + $0x1f4] sm:$0xf0] }
 0x174   :  { %v6829_v60 = vld [vmem:[#allocation3 + $0x4f0] sm:$0xf0]  ;;  %3062 = vmatpush.bf16.msrb.mxu0 %v7376_v58  ;;  %v6963_v53 = vld [vmem:[#allocation3 + $0x5d8] sm:$0xf] }
 0x175   :  { %v9277_v63 = vld [vmem:[#allocation3 + $0x6d4] sm:$0xf]  ;;  %3075 = vmatpush.bf16.msra.mxu2 %v7664_v47  ;;  %3048 = vmatpush.bf16.msrb.mxu1 %v7120_v49  ;;  %v6832_v4 = vor.u32 %v9213_v56, %v6829_v60  ;;  %v6451_v49 = vld [vmem:[#allocation3 + $0x1d8] sm:$0xf] }
 0x176   :  { %v7085_v0 = vld [vmem:[#allocation3 + $0x6f0] sm:$0xf0]  ;;  %v9250_v58 = vld [vmem:[#allocation3 + $0x5f4] sm:$0xf0] }
 0x177   :  { %v9341_v1 = vld [vmem:[#allocation3 + $0x8d4] sm:$0xf]  ;;  %v7088_v5 = vor.u32 %v9277_v63, %v7085_v0  ;;  %3035 = vmatpush.bf16.msrb.mxu3 %v6832_v4  ;;  %v6707_v4 = vld [vmem:[#allocation3 + $0x3d8] sm:$0xf] }
 0x178   :  { %v7341_v2 = vld [vmem:[#allocation3 + $0x8f0] sm:$0xf0] }
 0x179   :  { %v9405_v7 = vld [vmem:[#allocation3 + $0xad4] sm:$0xf]  ;;  %v7344_v11 = vor.u32 %v9341_v1, %v7341_v2  ;;  %3076 = vmatpush.bf16.msra.mxu2 %v7632_v3  ;;  %3049 = vmatpush.bf16.msrb.mxu1 %v7088_v5 }
 0x17a   :  { %v7597_v8 = vld [vmem:[#allocation3 + $0xaf0] sm:$0xf0] }
 0x17b   :  { %v9205_v10 = vld [vmem:[#allocation3 + $0x494] sm:$0xf]  ;;  %v7600_v19 = vor.u32 %v9405_v7, %v7597_v8  ;;  %3063 = vmatpush.bf16.msrb.mxu0 %v7344_v11  ;;  %v6452_v7 = vor.u32 %v9122_v52, %v6451_v49  ;;  %v9186_v8 = vld [vmem:[#allocation3 + $0x3f4] sm:$0xf0]  ;;  %v10193_v52 = vpop.f32.mrf.mxu1 }
 0x17c   :  { %v6797_v13 = vld [vmem:[#allocation3 + $0x4b0] sm:$0xf0]  ;;  %v9314_v11 = vld [vmem:[#allocation3 + $0x7f4] sm:$0xf0] }
 0x17d   :  { %v9269_v15 = vld [vmem:[#allocation3 + $0x694] sm:$0xf]  ;;  %v6800_v20 = vor.u32 %v9205_v10, %v6797_v13  ;;  %3077 = vmatpush.bf16.msra.mxu2 %v7600_v19  ;;  %v7219_v10 = vld [vmem:[#allocation3 + $0x7d8] sm:$0xf]  ;;  %v6964_v13 = vor.u32 %v9250_v58, %v6963_v53 }
 0x17e   :  { %v7053_v16 = vld [vmem:[#allocation3 + $0x6b0] sm:$0xf0]  ;;  %v6931_v19 = vld [vmem:[#allocation3 + $0x598] sm:$0xf] }
 0x17f   :  { %v9333_v17 = vld [vmem:[#allocation3 + $0x894] sm:$0xf]  ;;  %v7056_v23 = vor.u32 %v9269_v15, %v7053_v16  ;;  %3036 = vmatpush.bf16.msrb.mxu3 %v6800_v20  ;;  %v6419_v16 = vld [vmem:[#allocation3 + $0x198] sm:$0xf] }
 0x180   :  { %v7309_v18 = vld [vmem:[#allocation3 + $0x8b0] sm:$0xf0]  ;;  %v9242_v20 = vld [vmem:[#allocation3 + $0x5b4] sm:$0xf0] }
 0x181   :  { %v9397_v25 = vld [vmem:[#allocation3 + $0xa94] sm:$0xf]  ;;  %v7312_v28 = vor.u32 %v9333_v17, %v7309_v18  ;;  %3050 = vmatpush.bf16.msrb.mxu1 %v7056_v23  ;;  %v9114_v17 = vld [vmem:[#allocation3 + $0x1b4] sm:$0xf0]  ;;  %v6708_v23 = vor.u32 %v9186_v8, %v6707_v4 }
 0x182   :  { %v7565_v26 = vld [vmem:[#allocation3 + $0xab0] sm:$0xf0]  ;;  %v9098_v49 = vld [vmem:[#allocation3 + $0x134] sm:$0xf0] }
 0x183   :  { %v9197_v27 = vld [vmem:[#allocation3 + $0x454] sm:$0xf]  ;;  %v7568_v33 = vor.u32 %v9397_v25, %v7565_v26  ;;  %3064 = vmatpush.bf16.msrb.mxu0 %v7312_v28  ;;  %v7220_v25 = vor.u32 %v9314_v11, %v7219_v10  ;;  %v6675_v26 = vld [vmem:[#allocation3 + $0x398] sm:$0xf] }
 0x184   :  { %v6765_v29 = vld [vmem:[#allocation3 + $0x470] sm:$0xf0]  ;;  %v9178_v28 = vld [vmem:[#allocation3 + $0x3b4] sm:$0xf0] }
 0x185   :  { %v9261_v57 = vld [vmem:[#allocation3 + $0x654] sm:$0xf]  ;;  %v6768_v36 = vor.u32 %v9197_v27, %v6765_v29  ;;  %3078 = vmatpush.bf16.msra.mxu2 %v7568_v33  ;;  %v6420_v27 = vor.u32 %v9114_v17, %v6419_v16  ;;  %v7187_v29 = vld [vmem:[#allocation3 + $0x798] sm:$0xf]  ;;  %v10188_v33 = vpop.f32.mrf.mxu0  ;;  %v10198_v17 = vpop.f32.mrf.mxu3 }
 0x186   :  { %v7021_v31 = vld [vmem:[#allocation3 + $0x670] sm:$0xf0]  ;;  %v6867_v53 = vld [vmem:[#allocation3 + $0x518] sm:$0xf] }
 0x187   :  { %v9325_v30 = vld [vmem:[#allocation3 + $0x854] sm:$0xf]  ;;  %v7024_v39 = vor.u32 %v9261_v57, %v7021_v31  ;;  %3037 = vmatpush.bf16.msrb.mxu3 %v6768_v36  ;;  %v9306_v57 = vld [vmem:[#allocation3 + $0x7b4] sm:$0xf0]  ;;  %v6932_v31 = vor.u32 %v9242_v20, %v6931_v19  ;;  %v6676_v36 = vor.u32 %v9178_v28, %v6675_v26  ;;  %v10200_v28 = vpop.f32.mrf.mxu1 }
 0x188   :  { %v7277_v32 = vld [vmem:[#allocation3 + $0x870] sm:$0xf0]  ;;  %v6835_v10 = vld [vmem:[#allocation3 + $0x4d8] sm:$0xf] }
 0x189   :  { %v9389_v34 = vld [vmem:[#allocation3 + $0xa54] sm:$0xf]  ;;  %v7280_v45 = vor.u32 %v9325_v30, %v7277_v32  ;;  %3051 = vmatpush.bf16.msrb.mxu1 %v7024_v39  ;;  %v6387_v30 = vld [vmem:[#allocation3 + $0x158] sm:$0xf]  ;;  %v7188_v39 = vor.u32 %v9306_v57, %v7187_v29 }
 0x18a   :  { %v7533_v35 = vld [vmem:[#allocation3 + $0xa70] sm:$0xf0]  ;;  %v9106_v32 = vld [vmem:[#allocation3 + $0x174] sm:$0xf0] }
 0x18b   :  { %v9189_v62 = vld [vmem:[#allocation3 + $0x414] sm:$0xf]  ;;  %v7536_v56 = vor.u32 %v9389_v34, %v7533_v35  ;;  %3065 = vmatpush.bf16.msrb.mxu0 %v7280_v45  ;;  %v6899_v34 = vld [vmem:[#allocation3 + $0x558] sm:$0xf] }
 0x18c   :  { %v6733_v40 = vld [vmem:[#allocation3 + $0x430] sm:$0xf0]  ;;  %v9234_v35 = vld [vmem:[#allocation3 + $0x574] sm:$0xf0] }
 0x18d   :  { %v9253_v42 = vld [vmem:[#allocation3 + $0x614] sm:$0xf]  ;;  %v6736_v0 = vor.u32 %v9189_v62, %v6733_v40  ;;  %3079 = vmatpush.bf16.msra.mxu2 %v7536_v56  ;;  %v6643_v62 = vld [vmem:[#allocation3 + $0x358] sm:$0xf]  ;;  %v6388_v40 = vor.u32 %v9106_v32, %v6387_v30  ;;  %v10196_v8 = vpop.f32.mrf.mxu0 }
 0x18e   :  { %v6989_v46 = vld [vmem:[#allocation3 + $0x630] sm:$0xf0]  ;;  %v7155_v45 = vld [vmem:[#allocation3 + $0x758] sm:$0xf] }
 0x18f   :  { %v9317_v47 = vld [vmem:[#allocation3 + $0x814] sm:$0xf]  ;;  %v6992_v1 = vor.u32 %v9253_v42, %v6989_v46  ;;  %3038 = vmatpush.bf16.msrb.mxu3 %v6736_v0  ;;  %v9170_v42 = vld [vmem:[#allocation3 + $0x374] sm:$0xf0] }
 0x190   :  { %v7245_v48 = vld [vmem:[#allocation3 + $0x830] sm:$0xf0]  ;;  %v9298_v46 = vld [vmem:[#allocation3 + $0x774] sm:$0xf0]  ;;  %v6644_v58 = vor.u32 %v9170_v42, %v6643_v62 }
 0x191   :  { %v9445_v60 = vld [vmem:[#allocation3 + $0xc14] sm:$0xf]  ;;  %v7248_v5 = vor.u32 %v9317_v47, %v7245_v48  ;;  %3052 = vmatpush.bf16.msrb.mxu1 %v6992_v1  ;;  %v6900_v47 = vor.u32 %v9234_v35, %v6899_v34  ;;  %v6355_v48 = vld [vmem:[#allocation3 + $0x118] sm:$0xf]  ;;  %v10202_v34 = vpop.f32.mrf.mxu2 }
 0x192   :  { %v7757_v63 = vld [vmem:[#allocation3 + $0xc30] sm:$0xf0]  ;;  %3039 = vmatmul.bf16.vlgmr.msrb.gmra.mxu3 %v10074_v55  ;;  %v9226_v56 = vld [vmem:[#allocation3 + $0x534] sm:$0xf0]  ;;  %v6356_v0 = vor.u32 %v9098_v49, %v6355_v48 }
 0x193   :  { %v9381_v2 = vld [vmem:[#allocation3 + $0xa14] sm:$0xf]  ;;  %v7760_v15 = vor.u32 %v9445_v60, %v7757_v63  ;;  %3066 = vmatpush.bf16.msrb.mxu0 %v7248_v5  ;;  %v7156_v60 = vor.u32 %v9298_v46, %v7155_v45  ;;  %v6611_v63 = vld [vmem:[#allocation3 + $0x318] sm:$0xf]  ;;  %v6868_v4 = vor.u32 %v9226_v56, %v6867_v53 }
 0x194   :  { %v7501_v3 = vld [vmem:[#allocation3 + $0xa30] sm:$0xf0]  ;;  %3053 = vmatmul.bf16.vlgmr.msrb.gmra.mxu1 %v10078_v61  ;;  %v9162_v1 = vld [vmem:[#allocation3 + $0x334] sm:$0xf0] }
 0x195   :  { %v7504_v18 = vor.u32 %v9381_v2, %v7501_v3  ;;  %3101 = vmatpush.bf16.msra.mxu1 %v6452_v7  ;;  %3094 = vmatpush.bf16.msra.mxu3 %v7760_v15  ;;  %v7123_v2 = vld [vmem:[#allocation3 + $0x718] sm:$0xf]  ;;  %v10206_v56 = vpop.f32.mrf.mxu0 }
 0x196   :  { %3067 = vmatmul.bf16.vlgmr.msrb.gmra.mxu0 %v10114_v38  ;;  %v9290_v3 = vld [vmem:[#allocation3 + $0x734] sm:$0xf0] }
 0x197   :  { %3129 = vmatpush.bf16.msra.mxu0 %v6964_v13  ;;  %3080 = vmatpush.bf16.msra.mxu2 %v7504_v18  ;;  %v6323_v5 = vld [vmem:[#allocation3 + $0xd8] sm:$0xf]  ;;  %v6612_v13 = vor.u32 %v9162_v1, %v6611_v63  ;;  %v7124_v15 = vor.u32 %v9290_v3, %v7123_v2 }
 0x198   :  { %v9090_v7 = vld [vmem:[#allocation3 + $0xf4] sm:$0xf0] }
 0x199   :  { %3115 = vmatpush.bf16.msrb.mxu3 %v6708_v23  ;;  %3102 = vmatpush.bf16.msra.mxu1 %v6420_v27  ;;  %v9218_v11 = vld [vmem:[#allocation3 + $0x4f4] sm:$0xf0]  ;;  %v6324_v18 = vor.u32 %v9090_v7, %v6323_v5  ;;  %v10208_v5 = vpop.f32.mrf.mxu3 }
 0x19a   :  { %3081 = vmatmul.bf16.vlgmr.msra.gmra.mxu2 %v10116_v43  ;;  %v6579_v16 = vld [vmem:[#allocation3 + $0x2d8] sm:$0xf] }
 0x19b   :  { %3143 = vmatpush.bf16.msrb.mxu2 %v7220_v25  ;;  %3130 = vmatpush.bf16.msra.mxu0 %v6932_v31  ;;  %v9154_v19 = vld [vmem:[#allocation3 + $0x2f4] sm:$0xf0]  ;;  %v6836_v25 = vor.u32 %v9218_v11, %v6835_v10 }
 0x19c   :  { %v7091_v20 = vld [vmem:[#allocation3 + $0x6d8] sm:$0xf]  ;;  %v6580_v31 = vor.u32 %v9154_v19, %v6579_v16 }
 0x19d   :  { %3116 = vmatpush.bf16.msrb.mxu3 %v6676_v36  ;;  %3103 = vmatpush.bf16.msra.mxu1 %v6388_v40  ;;  %v9282_v23 = vld [vmem:[#allocation3 + $0x6f4] sm:$0xf0] }
 0x19e   :  { %v6291_v26 = vld [vmem:[#allocation3 + $0x98] sm:$0xf]  ;;  %v7092_v30 = vor.u32 %v9282_v23, %v7091_v20  ;;  %v10210_v20 = vpop.f32.mrf.mxu2  ;;  %v10212_v23 = vpop.f32.mrf.mxu1 }
 0x19f   :  { %3144 = vmatpush.bf16.msrb.mxu2 %v7188_v39  ;;  %3131 = vmatpush.bf16.msra.mxu0 %v6900_v47  ;;  %v9082_v27 = vld [vmem:[#allocation3 + $0xb4] sm:$0xf0] }
 0x1a0   :  { %v6803_v29 = vld [vmem:[#allocation3 + $0x498] sm:$0xf]  ;;  %v6292_v35 = vor.u32 %v9082_v27, %v6291_v26 }
 0x1a1   :  { %3117 = vmatpush.bf16.msrb.mxu3 %v6644_v58  ;;  %3104 = vmatpush.bf16.msra.mxu1 %v6356_v0  ;;  %v9210_v57 = vld [vmem:[#allocation3 + $0x4b4] sm:$0xf0] }
 0x1a2   :  { %v6547_v32 = vld [vmem:[#allocation3 + $0x298] sm:$0xf]  ;;  %v6804_v40 = vor.u32 %v9210_v57, %v6803_v29  ;;  %7774 = vmatmul.msk.bf16.vlgmr.msra.gmra.mxu3 %vm2509_vm0, %v10098_v51 }
 0x1a3   :  { %3145 = vmatpush.bf16.msrb.mxu2 %v7156_v60  ;;  %3132 = vmatpush.bf16.msra.mxu0 %v6868_v4  ;;  %v9146_v36 = vld [vmem:[#allocation3 + $0x2b4] sm:$0xf0] }
 0x1a4   :  { %v7059_v39 = vld [vmem:[#allocation3 + $0x698] sm:$0xf]  ;;  %v6548_v48 = vor.u32 %v9146_v36, %v6547_v32 }
 0x1a5   :  { %3118 = vmatpush.bf16.msrb.mxu3 %v6612_v13  ;;  %3105 = vmatpush.bf16.msra.mxu1 %v6324_v18  ;;  %v9274_v62 = vld [vmem:[#allocation3 + $0x6b4] sm:$0xf0] }
 0x1a6   :  { %v6259_v42 = vld [vmem:[#allocation3 + $0x58] sm:$0xf]  ;;  %v7060_v49 = vor.u32 %v9274_v62, %v7059_v39  ;;  %v6453_v39 = vld [vmem:[#allocation3 + $0x1f8] sm:$0xf0] }
 0x1a7   :  { %3146 = vmatpush.bf16.msrb.mxu2 %v7124_v15  ;;  %3133 = vmatpush.bf16.msra.mxu0 %v6836_v25  ;;  %v9074_v45 = vld [vmem:[#allocation3 + $0x74] sm:$0xf0]  ;;  %v9182_v62 = vld [vmem:[#allocation3 + $0x3dc] sm:$0xf] }
 0x1a8   :  { %v6771_v46 = vld [vmem:[#allocation3 + $0x458] sm:$0xf]  ;;  %v6260_v58 = vor.u32 %v9074_v45, %v6259_v42 }
 0x1a9   :  { %v9202_v47 = vld [vmem:[#allocation3 + $0x474] sm:$0xf0]  ;;  %3119 = vmatpush.bf16.msrb.mxu3 %v6580_v31  ;;  %3106 = vmatpush.bf16.msra.mxu1 %v6292_v35  ;;  %v9118_v35 = vld [vmem:[#allocation3 + $0x1dc] sm:$0xf] }
 0x1aa   :  { %v6515_v53 = vld [vmem:[#allocation3 + $0x258] sm:$0xf]  ;;  %v6772_v1 = vor.u32 %v9202_v47, %v6771_v46 }
 0x1ab   :  { %3147 = vmatpush.bf16.msrb.mxu2 %v7092_v30  ;;  %v9138_v60 = vld [vmem:[#allocation3 + $0x274] sm:$0xf0]  ;;  %3134 = vmatpush.bf16.msra.mxu0 %v6804_v40  ;;  %v6709_v40 = vld [vmem:[#allocation3 + $0x3f8] sm:$0xf0] }
 0x1ac   :  { %v7027_v63 = vld [vmem:[#allocation3 + $0x658] sm:$0xf]  ;;  %v6516_v13 = vor.u32 %v9138_v60, %v6515_v53  ;;  %v6456_v53 = vor.u32 %v9118_v35, %v6453_v39 }
 0x1ad   :  { %v9266_v0 = vld [vmem:[#allocation3 + $0x674] sm:$0xf0]  ;;  %3120 = vmatpush.bf16.msrb.mxu3 %v6548_v48  ;;  %3107 = vmatpush.bf16.msra.mxu1 %v6260_v58  ;;  %v10214_v48 = vpop.f32.mrf.mxu0  ;;  %v6712_v58 = vor.u32 %v9182_v62, %v6709_v40 }
 0x1ae   :  { %v6227_v2 = vld [vmem:[#allocation3 + $0x18] sm:$0xf]  ;;  %v7028_v15 = vor.u32 %v9266_v0, %v7027_v63  ;;  %v9110_v0 = vld [vmem:[#allocation3 + $0x19c] sm:$0xf] }
 0x1af   :  { %v9066_v3 = vld [vmem:[#allocation3 + $0x34] sm:$0xf0]  ;;  %3148 = vmatpush.bf16.msrb.mxu2 %v7060_v49  ;;  %3135 = vmatpush.bf16.msra.mxu0 %v6772_v1 }
 0x1b0   :  { %v6739_v4 = vld [vmem:[#allocation3 + $0x418] sm:$0xf]  ;;  %v6228_v25 = vor.u32 %v9066_v3, %v6227_v2  ;;  %v6421_v2 = vld [vmem:[#allocation3 + $0x1b8] sm:$0xf0] }
 0x1b1   :  { %v9194_v7 = vld [vmem:[#allocation3 + $0x434] sm:$0xf0]  ;;  %3121 = vmatpush.bf16.msrb.mxu3 %v6516_v13  ;;  %v9174_v3 = vld [vmem:[#allocation3 + $0x39c] sm:$0xf]  ;;  %v10218_v13 = vpop.f32.mrf.mxu1 }
 0x1b2   :  { %v7475_v10 = vld [vmem:[#allocation3 + $0x9d8] sm:$0xf]  ;;  %v6740_v57 = vor.u32 %v9194_v7, %v6739_v4  ;;  %3108 = vmatpush.bf16.msra.mxu1 %v6228_v25  ;;  %v6677_v4 = vld [vmem:[#allocation3 + $0x3b8] sm:$0xf0] }
 0x1b3   :  { %v9378_v11 = vld [vmem:[#allocation3 + $0x9f4] sm:$0xf0]  ;;  %3149 = vmatpush.bf16.msrb.mxu2 %v7028_v15 }
 0x1b4   :  { %v6483_v16 = vld [vmem:[#allocation3 + $0x218] sm:$0xf]  ;;  %v7476_v31 = vor.u32 %v9378_v11, %v7475_v10  ;;  %3136 = vmatpush.bf16.msra.mxu0 %v6740_v57  ;;  %v10216_v11 = vpop.f32.mrf.mxu3  ;;  %v6389_v57 = vld [vmem:[#allocation3 + $0x178] sm:$0xf0] }
 0x1b5   :  { %v7763_v18 = vld [vmem:[#allocation3 + $0xc18] sm:$0xf]  ;;  %3109 = vmatmul.bf16.vlgmr.msra.gmra.mxu1 %v10076_v59 }
 0x1b6   :  { %v9450_v19 = vld [vmem:[#allocation3 + $0xc34] sm:$0xf0]  ;;  %3157 = vmatpush.bf16.msrb.mxu1 %v7476_v31  ;;  %v9166_v31 = vld [vmem:[#allocation3 + $0x35c] sm:$0xf] }
 0x1b7   :  { %v9130_v26 = vld [vmem:[#allocation3 + $0x234] sm:$0xf0]  ;;  %v7764_v36 = vor.u32 %v9450_v19, %v7763_v18  ;;  %3137 = vmatmul.bf16.vlgmr.msra.gmra.mxu0 %v10074_v55  ;;  %v6680_v18 = vor.u32 %v9174_v3, %v6677_v4 }
 0x1b8   :  { %v6995_v27 = vld [vmem:[#allocation3 + $0x618] sm:$0xf]  ;;  %v6484_v42 = vor.u32 %v9130_v26, %v6483_v16  ;;  %v6424_v16 = vor.u32 %v9110_v0, %v6421_v2  ;;  %v9102_v26 = vld [vmem:[#allocation3 + $0x15c] sm:$0xf] }
 0x1b9   :  { %v9258_v29 = vld [vmem:[#allocation3 + $0x634] sm:$0xf0]  ;;  %3192 = vmatpush.bf16.msrb.mxu0 %v7764_v36  ;;  %v6392_v39 = vor.u32 %v9102_v26, %v6389_v57  ;;  %v6581_v26 = vld [vmem:[#allocation3 + $0x2f8] sm:$0xf0] }
 0x1ba   :  { %v7731_v30 = vld [vmem:[#allocation3 + $0xbd8] sm:$0xf]  ;;  %v6996_v45 = vor.u32 %v9258_v29, %v6995_v27  ;;  %3122 = vmatpush.bf16.msrb.mxu3 %v6484_v42  ;;  %v10221_v27 = vpop.f32.mrf.mxu2 }
 0x1bb   :  { %v9442_v32 = vld [vmem:[#allocation3 + $0xbf4] sm:$0xf0] }
 0x1bc   :  { %v7443_v46 = vld [vmem:[#allocation3 + $0x998] sm:$0xf]  ;;  %v7732_v49 = vor.u32 %v9442_v32, %v7731_v30  ;;  %3150 = vmatpush.bf16.msrb.mxu2 %v6996_v45  ;;  %v6645_v30 = vld [vmem:[#allocation3 + $0x378] sm:$0xf0]  ;;  %v10228_v0 = vpop.f32.mrf.mxu3 }
 0x1bd   :  { %v9370_v47 = vld [vmem:[#allocation3 + $0x9b4] sm:$0xf0]  ;;  %3213 = vmatpush.bf16.msra.mxu0 %v6712_v58  ;;  %3123 = vmatmul.bf16.vlgmr.msrb.gmra.mxu3 %v10088_v9  ;;  %v6648_v62 = vor.u32 %v9166_v31, %v6645_v30  ;;  %v9094_v45 = vld [vmem:[#allocation3 + $0x11c] sm:$0xf] }
 0x1be   :  { %v7699_v60 = vld [vmem:[#allocation3 + $0xb98] sm:$0xf]  ;;  %v7444_v1 = vor.u32 %v9370_v47, %v7443_v46  ;;  %3171 = vmatpush.bf16.msra.mxu3 %v7732_v49  ;;  %v10226_v46 = vpop.f32.mrf.mxu0  ;;  %v6357_v49 = vld [vmem:[#allocation3 + $0x138] sm:$0xf0] }
 0x1bf   :  { %v9434_v63 = vld [vmem:[#allocation3 + $0xbb4] sm:$0xf0]  ;;  %3151 = vmatmul.bf16.vlgmr.msrb.gmra.mxu2 %v10078_v61  ;;  %10750 = vst [vmem:[#allocation21_spill] sm:$0xff] %v10226_v46  ;;  %v6613_v58 = vld [vmem:[#allocation3 + $0x338] sm:$0xf0]  ;;  %v6360_v2 = vor.u32 %v9094_v45, %v6357_v49 }
 0x1c0   :  { %v7411_v7 = vld [vmem:[#allocation3 + $0x958] sm:$0xf]  ;;  %v7700_v15 = vor.u32 %v9434_v63, %v7699_v60  ;;  %3199 = vmatpush.bf16.msra.mxu2 %v6456_v53  ;;  %3158 = vmatpush.bf16.msrb.mxu1 %v7444_v1  ;;  %v9158_v53 = vld [vmem:[#allocation3 + $0x31c] sm:$0xf] }
 0x1c1   :  { %v9362_v10 = vld [vmem:[#allocation3 + $0x974] sm:$0xf0]  ;;  %3214 = vmatpush.bf16.msra.mxu0 %v6680_v18  ;;  %v6616_v3 = vor.u32 %v9158_v53, %v6613_v58  ;;  %v9142_v45 = vld [vmem:[#allocation3 + $0x29c] sm:$0xf] }
 0x1c2   :  { %v7667_v19 = vld [vmem:[#allocation3 + $0xb58] sm:$0xf]  ;;  %v7412_v29 = vor.u32 %v9362_v10, %v7411_v7  ;;  %3172 = vmatpush.bf16.msra.mxu3 %v7700_v15  ;;  %v9086_v10 = vld [vmem:[#allocation3 + $0xdc] sm:$0xf]  ;;  %v10230_v15 = vpop.f32.mrf.mxu1 }
 0x1c3   :  { %v9426_v25 = vld [vmem:[#allocation3 + $0xb74] sm:$0xf0]  ;;  %v7189_v46 = vld [vmem:[#allocation3 + $0x7b8] sm:$0xf0] }
 0x1c4   :  { %v7379_v32 = vld [vmem:[#allocation3 + $0x918] sm:$0xf]  ;;  %v7668_v36 = vor.u32 %v9426_v25, %v7667_v19  ;;  %3200 = vmatpush.bf16.msra.mxu2 %v6424_v16  ;;  %3159 = vmatpush.bf16.msrb.mxu1 %v7412_v29  ;;  %v10232_v16 = vpop.f32.mrf.mxu2  ;;  %v6325_v19 = vld [vmem:[#allocation3 + $0xf8] sm:$0xf0] }
 0x1c5   :  { %v9354_v35 = vld [vmem:[#allocation3 + $0x934] sm:$0xf0]  ;;  %3215 = vmatpush.bf16.msra.mxu0 %v6648_v62  ;;  %v9150_v25 = vld [vmem:[#allocation3 + $0x2dc] sm:$0xf]  ;;  %v6328_v30 = vor.u32 %v9086_v10, %v6325_v19 }
 0x1c6   :  { %v7635_v40 = vld [vmem:[#allocation3 + $0xb18] sm:$0xf]  ;;  %v7380_v47 = vor.u32 %v9354_v35, %v7379_v32  ;;  %3173 = vmatpush.bf16.msra.mxu3 %v7668_v36  ;;  %v6584_v32 = vor.u32 %v9150_v25, %v6581_v26  ;;  %v10234_v62 = vpop.f32.mrf.mxu0  ;;  %v9134_v19 = vld [vmem:[#allocation3 + $0x25c] sm:$0xf] }
 0x1c7   :  { %v9418_v42 = vld [vmem:[#allocation3 + $0xb34] sm:$0xf0]  ;;  %7775 = vmatmul.msk.bf16.vlgmr.msrb.gmra.mxu0 %vm2509_vm0, %v10098_v51  ;;  %v6517_v25 = vld [vmem:[#allocation3 + $0x278] sm:$0xf0] }
 0x1c8   :  { %v7347_v60 = vld [vmem:[#allocation3 + $0x8d8] sm:$0xf]  ;;  %v7636_v1 = vor.u32 %v9418_v42, %v7635_v40  ;;  %3201 = vmatpush.bf16.msra.mxu2 %v6392_v39  ;;  %3160 = vmatpush.bf16.msrb.mxu1 %v7380_v47  ;;  %v9078_v39 = vld [vmem:[#allocation3 + $0x9c] sm:$0xf] }
 0x1c9   :  { %v9346_v63 = vld [vmem:[#allocation3 + $0x8f4] sm:$0xf0]  ;;  %3216 = vmatpush.bf16.msra.mxu0 %v6616_v3  ;;  %v6293_v42 = vld [vmem:[#allocation3 + $0xb8] sm:$0xf0] }
 0x1ca   :  { %v7603_v4 = vld [vmem:[#allocation3 + $0xad8] sm:$0xf]  ;;  %v7348_v18 = vor.u32 %v9346_v63, %v7347_v60  ;;  %3174 = vmatpush.bf16.msra.mxu3 %v7636_v1  ;;  %v6549_v47 = vld [vmem:[#allocation3 + $0x2b8] sm:$0xf0]  ;;  %v6296_v60 = vor.u32 %v9078_v39, %v6293_v42 }
 0x1cb   :  { %v9410_v7 = vld [vmem:[#allocation3 + $0xaf4] sm:$0xf0]  ;;  %v6552_v63 = vor.u32 %v9142_v45, %v6549_v47  ;;  %v9070_v3 = vld [vmem:[#allocation3 + $0x5c] sm:$0xf] }
 0x1cc   :  { %v7315_v29 = vld [vmem:[#allocation3 + $0x898] sm:$0xf]  ;;  %v7604_v31 = vor.u32 %v9410_v7, %v7603_v4  ;;  %3202 = vmatpush.bf16.msra.mxu2 %v6360_v2  ;;  %3161 = vmatpush.bf16.msrb.mxu1 %v7348_v18  ;;  %v10238_v4 = vpop.f32.mrf.mxu3  ;;  %v10240_v7 = vpop.f32.mrf.mxu1  ;;  %v6261_v18 = vld [vmem:[#allocation3 + $0x78] sm:$0xf0] }
 0x1cd   :  { %v9338_v57 = vld [vmem:[#allocation3 + $0x8b4] sm:$0xf0]  ;;  %3217 = vmatpush.bf16.msra.mxu0 %v6584_v32  ;;  %v6965_v32 = vld [vmem:[#allocation3 + $0x5f8] sm:$0xf0] }
 0x1ce   :  { %v7571_v35 = vld [vmem:[#allocation3 + $0xa98] sm:$0xf]  ;;  %v7316_v40 = vor.u32 %v9338_v57, %v7315_v29  ;;  %3175 = vmatpush.bf16.msra.mxu3 %v7604_v31  ;;  %v10242_v57 = vpop.f32.mrf.mxu2  ;;  %v9062_v45 = vld [vmem:[#allocation3 + $0x1c] sm:$0xf]  ;;  %v2832_v55 = vpop.f32.mrf.mxu0 }
 0x1cf   :  { %v9402_v36 = vld [vmem:[#allocation3 + $0xab4] sm:$0xf0]  ;;  %v6485_v51 = vld [vmem:[#allocation3 + $0x238] sm:$0xf0] }
 0x1d0   :  { %v7283_v49 = vld [vmem:[#allocation3 + $0x858] sm:$0xf]  ;;  %v7572_v58 = vor.u32 %v9402_v36, %v7571_v35  ;;  %3203 = vmatpush.bf16.msra.mxu2 %v6328_v30  ;;  %3162 = vmatpush.bf16.msrb.mxu1 %v7316_v40  ;;  %v9246_v30 = vld [vmem:[#allocation3 + $0x5dc] sm:$0xf]  ;;  %v6264_v35 = vor.u32 %v9070_v3, %v6261_v18  ;;  %v6520_v36 = vor.u32 %v9134_v19, %v6517_v25 }
 0x1d1   :  { %v9330_v53 = vld [vmem:[#allocation3 + $0x874] sm:$0xf0]  ;;  %3218 = vmatpush.bf16.msra.mxu0 %v6552_v63  ;;  %v2539_v40 = vadd.f32 %v10144_v44, %v10142_v37  ;;  %v6968_v61 = vor.u32 %v9246_v30, %v6965_v32  ;;  %v7477_v63 = vld [vmem:[#allocation3 + $0x9f8] sm:$0xf0]  ;;  %v2637_v19 = vadd.f32 %v10174_v6, %v10168_v14 }
 0x1d2   :  { %v7539_v1 = vld [vmem:[#allocation3 + $0xa58] sm:$0xf]  ;;  %v7284_v10 = vor.u32 %v9330_v53, %v7283_v49  ;;  %3176 = vmatpush.bf16.msra.mxu3 %v7572_v58  ;;  %v6229_v49 = vld [vmem:[#allocation3 + $0x38] sm:$0xf0] }
 0x1d3   :  { %v9394_v2 = vld [vmem:[#allocation3 + $0xa74] sm:$0xf0]  ;;  %v9126_v53 = vld [vmem:[#allocation3 + $0x21c] sm:$0xf]  ;;  %v6232_v37 = vor.u32 %v9062_v45, %v6229_v49  ;;  %v2553_v25 = vadd.f32 %v10140_v12, %v2539_v40 }
 0x1d4   :  { %v7251_v26 = vld [vmem:[#allocation3 + $0x818] sm:$0xf]  ;;  %v7540_v31 = vor.u32 %v9394_v2, %v7539_v1  ;;  %3204 = vmatpush.bf16.msra.mxu2 %v6296_v60  ;;  %3163 = vmatpush.bf16.msrb.mxu1 %v7284_v10  ;;  %v9310_v58 = vld [vmem:[#allocation3 + $0x7dc] sm:$0xf]  ;;  %v2846_v6 = vpop.f32.mrf.mxu1 }
 0x1d5   :  { %v9322_v29 = vld [vmem:[#allocation3 + $0x834] sm:$0xf0]  ;;  %v7221_v1 = vld [vmem:[#allocation3 + $0x7f8] sm:$0xf0]  ;;  %3219 = vmatpush.bf16.msra.mxu0 %v6520_v36  ;;  %v2567_v40 = vadd.f32 %v10153_v22, %v2553_v25  ;;  %v2733_v25 = vadd.f32 %v10208_v5, %v10200_v28 }
 0x1d6   :  { %v7507_v39 = vld [vmem:[#allocation3 + $0xa18] sm:$0xf]  ;;  %v7252_v47 = vor.u32 %v9322_v29, %v7251_v26  ;;  %v9374_v2 = vld [vmem:[#allocation3 + $0x9dc] sm:$0xf]  ;;  %3177 = vmatpush.bf16.msra.mxu3 %v7540_v31  ;;  %v10249_v26 = vpop.f32.mrf.mxu3  ;;  %v6488_v29 = vor.u32 %v9126_v53, %v6485_v51  ;;  %v7224_v30 = vor.u32 %v9310_v58, %v7221_v1  ;;  %v2651_v31 = vadd.f32 %v10188_v33, %v2637_v19  ;;  %v10256_v33 = vpop.f32.mrf.mxu2 }
 0x1d7   :  { %v9386_v42 = vld [vmem:[#allocation3 + $0xa34] sm:$0xf0]  ;;  %v9438_v3 = vld [vmem:[#allocation3 + $0xbdc] sm:$0xf]  ;;  %v7480_v32 = vor.u32 %v9374_v2, %v7477_v63 }
 0x1d8   :  { %v7508_v60 = vor.u32 %v9386_v42, %v7507_v39  ;;  %v7733_v18 = vld [vmem:[#allocation3 + $0xbf8] sm:$0xf0]  ;;  %3205 = vmatpush.bf16.msra.mxu2 %v6264_v35  ;;  %3164 = vmatpush.bf16.msrb.mxu1 %v7252_v47  ;;  %v2665_v53 = vadd.f32 %v10193_v52, %v2651_v31  ;;  %v2833_v52 = vadd.f32 %v2832_v55, %v10242_v57 }
 0x1d9   :  { %v9238_v44 = vld [vmem:[#allocation3 + $0x59c] sm:$0xf]  ;;  %v7736_v39 = vor.u32 %v9438_v3, %v7733_v18  ;;  %3220 = vmatpush.bf16.msra.mxu0 %v6488_v29  ;;  %v2581_v18 = vadd.f32 %v10161_v41, %v2567_v40  ;;  %v2735_v29 = vadd.f32 %v10216_v11, %v10212_v23 }
 0x1da   :  { %v6933_v10 = vld [vmem:[#allocation3 + $0x5b8] sm:$0xf0]  ;;  %3178 = vmatpush.bf16.msra.mxu3 %v7508_v60 }
 0x1db   :  { %v9302_v42 = vld [vmem:[#allocation3 + $0x79c] sm:$0xf]  ;;  %v6936_v35 = vor.u32 %v9238_v44, %v6933_v10  ;;  %3165 = vmatmul.bf16.vlgmr.msrb.gmra.mxu1 %v10114_v38  ;;  %v3309_v10 = vld [vmem:[#allocation1 + $0x9] sm:$0xff] }
 0x1dc   :  { %3227 = vmatpush.bf16.msra.mxu1 %v6968_v61  ;;  %v9366_v14 = vld [vmem:[#allocation3 + $0x99c] sm:$0xf]  ;;  %3206 = vmatpush.bf16.msra.mxu2 %v6232_v37  ;;  %v2831_v61 = vadd.f32 %v10234_v62, %v10232_v16  ;;  %v7192_v47 = vor.u32 %v9302_v42, %v7189_v46  ;;  %v2679_v46 = vadd.f32 %v10178_v24, %v2665_v53 }
 0x1dd   :  { %v7445_v36 = vld [vmem:[#allocation3 + $0x9b8] sm:$0xf0]  ;;  %3269 = vmatpush.bf16.msrb.mxu0 %v7736_v39  ;;  %3179 = vmatmul.bf16.vlgmr.msra.gmra.mxu3 %v10116_v43 }
 0x1de   :  { %v9430_v45 = vld [vmem:[#allocation3 + $0xb9c] sm:$0xf]  ;;  %3241 = vmatpush.bf16.msrb.mxu3 %v7224_v30  ;;  %v7448_v58 = vor.u32 %v9366_v14, %v7445_v36  ;;  %3221 = vmatmul.bf16.vlgmr.msra.gmra.mxu0 %v10088_v9  ;;  %v2845_v41 = vadd.f32 %v10240_v7, %v2831_v61  ;;  %v10270_v30 = vpop.f32.mrf.mxu0  ;;  %v2860_v39 = vpop.f32.mrf.mxu3  ;;  %v2595_v7 = vadd.f32 %v10163_v54, %v2581_v18 }
 0x1df   :  { %v7701_v49 = vld [vmem:[#allocation3 + $0xbb8] sm:$0xf0]  ;;  %3207 = vmatmul.bf16.vlgmr.msra.gmra.mxu2 %v10076_v59  ;;  %v3319_v14 = vpack.i.b16 %v3309_v10, %v3309_v10 }
 0x1e0   :  { %v9230_v12 = vld [vmem:[#allocation3 + $0x55c] sm:$0xf]  ;;  %3255 = vmatpush.bf16.msrb.mxu2 %v7480_v32  ;;  %v7704_v1 = vor.u32 %v9430_v45, %v7701_v49  ;;  %3228 = vmatpush.bf16.msra.mxu1 %v6936_v35  ;;  %v2859_v32 = vadd.f32 %v10249_v26, %v2845_v41  ;;  %v2847_v35 = vadd.f32 %v2846_v6, %v2833_v52  ;;  %v10277_v26 = vpop.f32.mrf.mxu1  ;;  %v3310_v52 = vld [vmem:[#allocation1 + $0x12] sm:$0xff] }
 0x1e1   :  { %v6901_v51 = vld [vmem:[#allocation3 + $0x578] sm:$0xf0]  ;;  %v2693_v49 = vadd.f32 %v10202_v34, %v2679_v46  ;;  %v10284_v18 = vperm.slane %v3319_v14, 0 }
 0x1e2   :  { %v9294_v2 = vld [vmem:[#allocation3 + $0x75c] sm:$0xf]  ;;  %v6904_v22 = vor.u32 %v9230_v12, %v6901_v51  ;;  %3242 = vmatpush.bf16.msrb.mxu3 %v7192_v47  ;;  %3270 = vmatpush.bf16.msrb.mxu0 %v7704_v1  ;;  %v2747_v12 = vadd.f32 %v10196_v8, %v2733_v25  ;;  %v2749_v51 = vadd.f32 %v10206_v56, %v2735_v29 }
 0x1e3   :  { %v7157_v60 = vld [vmem:[#allocation3 + $0x778] sm:$0xf0]  ;;  %v2861_v61 = vadd.f32 %v2860_v39, %v2847_v35  ;;  %v2873_v1 = vadd.f32 %v10256_v33, %v2859_v32 }
 0x1e4   :  { %v9358_v63 = vld [vmem:[#allocation3 + $0x95c] sm:$0xf]  ;;  %v7160_v55 = vor.u32 %v9294_v2, %v7157_v60  ;;  %3256 = vmatpush.bf16.msrb.mxu2 %v7448_v58  ;;  %3229 = vmatpush.bf16.msra.mxu1 %v6904_v22  ;;  %v2874_v2 = vpop.f32.mrf.mxu2  ;;  %v2761_v46 = vadd.f32 %v10210_v20, %v2747_v12  ;;  %v2763_v33 = vadd.f32 %v10221_v27, %v2749_v51 }
 0x1e5   :  { %v7413_v3 = vld [vmem:[#allocation3 + $0x978] sm:$0xf0] }
 0x1e6   :  { %v9422_v16 = vld [vmem:[#allocation3 + $0xb5c] sm:$0xf]  ;;  %v7416_v24 = vor.u32 %v9358_v63, %v7413_v3  ;;  %3243 = vmatpush.bf16.msrb.mxu3 %v7160_v55  ;;  %v2609_v63 = vadd.f32 %v10151_v21, %v2595_v7  ;;  %v2707_v3 = vadd.f32 %v10198_v17, %v2693_v49  ;;  %v2775_v41 = vadd.f32 %v10218_v13, %v2761_v46 }
 0x1e7   :  { %v7669_v62 = vld [vmem:[#allocation3 + $0xb78] sm:$0xf0]  ;;  %v2887_v55 = vadd.f32 %v10270_v30, %v2873_v1 }
 0x1e8   :  { %v9222_v19 = vld [vmem:[#allocation3 + $0x51c] sm:$0xf]  ;;  %v7672_v59 = vor.u32 %v9422_v16, %v7669_v62  ;;  %3257 = vmatpush.bf16.msrb.mxu2 %v7416_v24  ;;  %v2888_v24 = vpop.f32.mrf.mxu0  ;;  %v2902_v49 = vpop.f32.mrf.mxu1 }
 0x1e9   :  { %v6869_v37 = vld [vmem:[#allocation3 + $0x538] sm:$0xf0] }
 0x1ea   :  { %v3308_v44 = vld [vmem:[#allocation1] sm:$0xff]  ;;  %v6872_v28 = vor.u32 %v9222_v19, %v6869_v37  ;;  %3271 = vmatpush.bf16.msrb.mxu0 %v7672_v59 }
 0x1eb   :  { %v9286_v57 = vld [vmem:[#allocation3 + $0x71c] sm:$0xf]  ;;  %v3316_v42 = vpack.i.b16 %v3308_v44, %v3308_v44  ;;  %v3311_v19 = vld [vmem:[#allocation1 + $0x1b] sm:$0xff]  ;;  %v2875_v44 = vadd.f32 %v2874_v2, %v2861_v61 }
 0x1ec   :  { %v7125_v9 = vld [vmem:[#allocation3 + $0x738] sm:$0xf0]  ;;  %3230 = vmatpush.bf16.msra.mxu1 %v6872_v28  ;;  %v2789_v28 = vadd.f32 %v10228_v0, %v2775_v41  ;;  %v2901_v0 = vadd.f32 %v10277_v26, %v2887_v55 }
 0x1ed   :  { %v9350_v31 = vld [vmem:[#allocation3 + $0x91c] sm:$0xf]  ;;  %v7128_v40 = vor.u32 %v9286_v57, %v7125_v9  ;;  %v10281_v22 = vperm.slane %v3316_v42, 0  ;;  %v10290_v9 = vpack.c.bf16 %v2707_v3, %v2609_v63 }
 0x1ee   :  { %v7381_v5 = vld [vmem:[#allocation3 + $0x938] sm:$0xf0]  ;;  %v2803_v2 = vadd.f32 %v10214_v48, %v2789_v28  ;;  %v9577_v28 = vld [vmem:[#allocation7 + $0x3ec] sm:$0xf0] }
 0x1ef   :  { %v9414_v23 = vld [vmem:[#allocation3 + $0xb1c] sm:$0xf]  ;;  %v7384_v47 = vor.u32 %v9350_v31, %v7381_v5  ;;  %3244 = vmatpush.bf16.msrb.mxu3 %v7128_v40  ;;  %v2777_v31 = vadd.f32 %v10230_v15, %v2763_v33  ;;  %v3322_v5 = vpack.i.b16 %v3310_v52, %v3310_v52  ;;  %v3356_v30 = vunpack.c.l.bf16 %v10281_v22 }
 0x1f0   :  { %v7637_v11 = vld [vmem:[#allocation3 + $0xb38] sm:$0xf0]  ;;  %v3340_v15 = vunpack.c.l.bf16 %v10182_v50 }
 0x1f1   :  { %v9214_v36 = vld [vmem:[#allocation3 + $0x4dc] sm:$0xf]  ;;  %v7640_v54 = vor.u32 %v9414_v23, %v7637_v11  ;;  %3258 = vmatpush.bf16.msrb.mxu2 %v7384_v47  ;;  %v3325_v23 = vpack.i.b16 %v3311_v19, %v3311_v19  ;;  %v2889_v11 = vadd.f32 %v2888_v24, %v2875_v44  ;;  %v3341_v47 = vunpack.c.h.bf16 %v10182_v50  ;;  %v9513_v24 = vld [vmem:[#allocation7 + $0x1ec] sm:$0xf0] }
 0x1f2   :  { %v6837_v45 = vld [vmem:[#allocation3 + $0x4f8] sm:$0xf0]  ;;  %v3364_v52 = vadd.f32 %v3356_v30, %v3340_v15 }
 0x1f3   :  { %v9278_v53 = vld [vmem:[#allocation3 + $0x6dc] sm:$0xf]  ;;  %v6840_v34 = vor.u32 %v9214_v36, %v6837_v45  ;;  %3272 = vmatpush.bf16.msrb.mxu0 %v7640_v54  ;;  %v3357_v45 = vunpack.c.l.bf16 %v10284_v18  ;;  %v3348_v54 = vunpack.c.l.bf16 %v10290_v9  ;;  %v10305_v26 = vperm.slane %v3325_v23, 0 }
 0x1f4   :  { %v7093_v58 = vld [vmem:[#allocation3 + $0x6f8] sm:$0xf0]  ;;  %v2903_v63 = vadd.f32 %v2902_v49, %v2889_v11  ;;  %v9541_v49 = vld [vmem:[#allocation7 + $0x2cc] sm:$0xf0] }
 0x1f5   :  { %v9342_v6 = vld [vmem:[#allocation3 + $0x8dc] sm:$0xf]  ;;  %v7096_v37 = vor.u32 %v9278_v53, %v7093_v58  ;;  %3231 = vmatpush.bf16.msra.mxu1 %v6840_v34  ;;  %v3349_v53 = vunpack.c.h.bf16 %v10290_v9  ;;  %v2791_v58 = vadd.f32 %v10238_v4, %v2777_v31  ;;  %v10303_v34 = vperm.slane %v3322_v5, 0  ;;  %v10310_v31 = vpop.f32.mrf.mxu2 }
 0x1f6   :  { %v7349_v8 = vld [vmem:[#allocation3 + $0x8f8] sm:$0xf0]  ;;  %v3365_v19 = vadd.f32 %v3357_v45, %v3341_v47  ;;  %v8259_v47 = vld [vmem:[#allocation7 + $0x3c0] sm:$0xf] }
 0x1f7   :  { %v9406_v60 = vld [vmem:[#allocation3 + $0xadc] sm:$0xf]  ;;  %v7352_v21 = vor.u32 %v9342_v6, %v7349_v8  ;;  %3245 = vmatpush.bf16.msrb.mxu3 %v7096_v37  ;;  %v10751_v37 = vld [vmem:[#allocation21_spill] sm:$0xff]  ;;  %v3373_v41 = vadd.f32 %v3357_v45, %v3349_v53  ;;  %v9509_v45 = vld [vmem:[#allocation7 + $0x1cc] sm:$0xf0] }
 0x1f8   :  { %v7605_v56 = vld [vmem:[#allocation3 + $0xaf8] sm:$0xf0]  ;;  %v2805_v44 = vadd.f32 %v10751_v37, %v2791_v58  ;;  %v10312_v11 = vpack.c.bf16 %v3365_v19, %v3364_v52  ;;  %v10329_v37 = vpop.f32.mrf.mxu3 }
 0x1f9   :  { %v9206_v16 = vld [vmem:[#allocation3 + $0x49c] sm:$0xf]  ;;  %v7608_v10 = vor.u32 %v9406_v60, %v7605_v56  ;;  %3259 = vmatpush.bf16.msrb.mxu2 %v7352_v21 }
 0x1fa   :  { %v6805_v62 = vld [vmem:[#allocation3 + $0x4b8] sm:$0xf0]  ;;  %v3302_v9 = vpack.c.bf16 %v2903_v63, %v2805_v44 }
 0x1fb   :  { %v9270_v25 = vld [vmem:[#allocation3 + $0x69c] sm:$0xf]  ;;  %v6808_v20 = vor.u32 %v9206_v16, %v6805_v62  ;;  %3273 = vmatpush.bf16.msrb.mxu0 %v7608_v10  ;;  %v3298_v62 = vpack.c.bf16 %v2901_v0, %v2803_v2  ;;  %v7891_v10 = vld [vmem:[#allocation7 + $0xe0] sm:$0xf] }
 0x1fc   :  { %v7061_v29 = vld [vmem:[#allocation3 + $0x6b8] sm:$0xf0]  ;;  %v8131_v0 = vld [vmem:[#allocation7 + $0x2c0] sm:$0xf] }
 0x1fd   :  { %v9334_v17 = vld [vmem:[#allocation3 + $0x89c] sm:$0xf]  ;;  %v7064_v13 = vor.u32 %v9270_v25, %v7061_v29  ;;  %3232 = vmatpush.bf16.msra.mxu1 %v6808_v20  ;;  %v9481_v25 = vld [vmem:[#allocation7 + $0xec] sm:$0xf0]  ;;  %v8019_v29 = vld [vmem:[#allocation7 + $0x1e0] sm:$0xf]  ;;  %v3342_v5 = vunpack.c.l.bf16 %v3298_v62  ;;  %v3343_v23 = vunpack.c.h.bf16 %v3298_v62  ;;  %v10331_v44 = vpop.f32.mrf.mxu2 }
 0x1fe   :  { %v7317_v27 = vld [vmem:[#allocation3 + $0x8b8] sm:$0xf0]  ;;  %v8147_v20 = vld [vmem:[#allocation7 + $0x2e0] sm:$0xf] }
 0x1ff   :  { %v9398_v59 = vld [vmem:[#allocation3 + $0xa9c] sm:$0xf]  ;;  %v7320_v7 = vor.u32 %v9334_v17, %v7317_v27  ;;  %3246 = vmatpush.bf16.msrb.mxu3 %v7064_v13  ;;  %v3372_v17 = vadd.f32 %v3356_v30, %v3348_v54  ;;  %v9545_v27 = vld [vmem:[#allocation7 + $0x2ec] sm:$0xf0]  ;;  %v7892_v30 = vor.u32 %v9481_v25, %v7891_v10  ;;  %v7971_v25 = vld [vmem:[#allocation7 + $0x180] sm:$0xf] }
 0x200   :  { %v7573_v57 = vld [vmem:[#allocation3 + $0xab8] sm:$0xf0]  ;;  %v9573_v54 = vld [vmem:[#allocation7 + $0x3cc] sm:$0xf0] }
 0x201   :  { %v9198_v32 = vld [vmem:[#allocation3 + $0x45c] sm:$0xf]  ;;  %v7576_v42 = vor.u32 %v9398_v59, %v7573_v57  ;;  %3260 = vmatpush.bf16.msrb.mxu2 %v7320_v7  ;;  %v3358_v59 = vunpack.c.l.bf16 %v10303_v34  ;;  %v3359_v57 = vunpack.c.l.bf16 %v10305_v26  ;;  %v8020_v7 = vor.u32 %v9513_v24, %v8019_v29  ;;  %v7859_v26 = vld [vmem:[#allocation7 + $0xa0] sm:$0xf]  ;;  %v9469_v10 = vld [vmem:[#allocation7 + $0x8c] sm:$0xf0] }
 0x202   :  { %v6773_v39 = vld [vmem:[#allocation3 + $0x478] sm:$0xf0]  ;;  %v8132_v34 = vor.u32 %v9541_v49, %v8131_v0  ;;  %v8260_v63 = vor.u32 %v9573_v54, %v8259_v47  ;;  %v9529_v0 = vld [vmem:[#allocation7 + $0x26c] sm:$0xf0]  ;;  %v8211_v47 = vld [vmem:[#allocation7 + $0x360] sm:$0xf] }
 0x203   :  { %v9262_v14 = vld [vmem:[#allocation3 + $0x65c] sm:$0xf]  ;;  %v6776_v12 = vor.u32 %v9198_v32, %v6773_v39  ;;  %3274 = vmatpush.bf16.msrb.mxu0 %v7576_v42  ;;  %v8275_v39 = vld [vmem:[#allocation7 + $0x3e0] sm:$0xf]  ;;  %v8148_v42 = vor.u32 %v9545_v27, %v8147_v20  ;;  %v3366_v53 = vadd.f32 %v3358_v59, %v3342_v5  ;;  %v3367_v58 = vadd.f32 %v3359_v57, %v3343_v23  ;;  %v9561_v54 = vld [vmem:[#allocation7 + $0x36c] sm:$0xf0] }
 0x204   :  { %v7029_v35 = vld [vmem:[#allocation3 + $0x678] sm:$0xf0]  ;;  %v8276_v15 = vor.u32 %v9577_v28, %v8275_v39  ;;  %v9549_v49 = vld [vmem:[#allocation7 + $0x30c] sm:$0xf0]  ;;  %v8403_v28 = vld [vmem:[#allocation7 + $0x4e0] sm:$0xf] }
 0x205   :  { %v9326_v36 = vld [vmem:[#allocation3 + $0x85c] sm:$0xf]  ;;  %v7032_v8 = vor.u32 %v9262_v14, %v7029_v35  ;;  %3233 = vmatpush.bf16.msra.mxu1 %v6776_v12  ;;  %v7875_v14 = vld [vmem:[#allocation7 + $0xc0] sm:$0xf]  ;;  %v9477_v35 = vld [vmem:[#allocation7 + $0xcc] sm:$0xf0]  ;;  %v10314_v12 = vpack.c.bf16 %v3373_v41, %v3372_v17 }
 0x206   :  { %v7285_v51 = vld [vmem:[#allocation3 + $0x878] sm:$0xf0]  ;;  %v9501_v17 = vld [vmem:[#allocation7 + $0x18c] sm:$0xf0]  ;;  %v8099_v41 = vld [vmem:[#allocation7 + $0x280] sm:$0xf] }
 0x207   :  { %v9390_v40 = vld [vmem:[#allocation3 + $0xa5c] sm:$0xf]  ;;  %v7288_v50 = vor.u32 %v9326_v36, %v7285_v51  ;;  %3247 = vmatpush.bf16.msrb.mxu3 %v7032_v8  ;;  %v8003_v36 = vld [vmem:[#allocation7 + $0x1c0] sm:$0xf]  ;;  %v3350_v51 = vunpack.c.l.bf16 %v3302_v9  ;;  %v9473_v8 = vld [vmem:[#allocation7 + $0xac] sm:$0xf0]  ;;  %v3397_v27 = vunpack.c.h.bf16 %v10314_v12 }
 0x208   :  { %v7541_v61 = vld [vmem:[#allocation3 + $0xa78] sm:$0xf0]  ;;  %v8004_v2 = vor.u32 %v9509_v45, %v8003_v36  ;;  %v7860_v52 = vor.u32 %v9473_v8, %v7859_v26  ;;  %v8083_v45 = vld [vmem:[#allocation7 + $0x260] sm:$0xf] }
 0x209   :  { %v9190_v6 = vld [vmem:[#allocation3 + $0x41c] sm:$0xf]  ;;  %v7544_v22 = vor.u32 %v9390_v40, %v7541_v61  ;;  %3261 = vmatpush.bf16.msrb.mxu2 %v7288_v50  ;;  %v3351_v40 = vunpack.c.h.bf16 %v3302_v9  ;;  %v10752_v61 = vld [vmem:[#allocation18_spill] sm:$0xff]  ;;  %v9505_v50 = vld [vmem:[#allocation7 + $0x1ac] sm:$0xf0]  ;;  %vm10353_vm4 = vcmp.gt.f32.partialorder %v3397_v27, 0.0  ;;  %v8084_v26 = vor.u32 %v9529_v0, %v8083_v45 }
 0x20a   :  { %v6741_v1 = vld [vmem:[#allocation3 + $0x438] sm:$0xf0]  ;;  %v8227_v9 = vld [vmem:[#allocation7 + $0x380] sm:$0xf] }
 0x20b   :  { %v9446_v60 = vld [vmem:[#allocation3 + $0xc1c] sm:$0xf]  ;;  %v6744_v18 = vor.u32 %v9190_v6, %v6741_v1  ;;  %3275 = vmatpush.bf16.msrb.mxu0 %v7544_v22  ;;  %v7876_v6 = vor.u32 %v9477_v35, %v7875_v14  ;;  %v3388_v1 = vunpack.c.l.bf16 %v10312_v11  ;;  %v8115_v22 = vld [vmem:[#allocation7 + $0x2a0] sm:$0xf]  ;;  %v3375_v62 = vadd.f32 %v3359_v57, %v3351_v40  ;;  %v10342_v57 = vpop.f32.mrf.mxu1  ;;  %v9465_v14 = vld [vmem:[#allocation7 + $0x6c] sm:$0xf0] }
 0x20c   :  { %v7765_v56 = vld [vmem:[#allocation3 + $0xc38] sm:$0xf0]  ;;  %v7955_v35 = vld [vmem:[#allocation7 + $0x160] sm:$0xf] }
 0x20d   :  { %v9254_v3 = vld [vmem:[#allocation3 + $0x61c] sm:$0xf]  ;;  %v7768_v21 = vor.u32 %v9446_v60, %v7765_v56  ;;  %3234 = vmatpush.bf16.msra.mxu1 %v6744_v18  ;;  %v7987_v60 = vld [vmem:[#allocation7 + $0x1a0] sm:$0xf]  ;;  %vm10325_vm1 = vcmp.gt.f32.partialorder %v3388_v1, 0.0  ;;  %v10337_v20 = vmul.f32 0.20019531, %v3388_v1 }
 0x20e   :  { %v6997_v16 = vld [vmem:[#allocation3 + $0x638] sm:$0xf0]  ;;  %v8243_v18 = vld [vmem:[#allocation7 + $0x3a0] sm:$0xf] }
 0x20f   :  { %v9318_v4 = vld [vmem:[#allocation3 + $0x81c] sm:$0xf]  ;;  %v7000_v55 = vor.u32 %v9254_v3, %v6997_v16  ;;  %v9537_v3 = vld [vmem:[#allocation7 + $0x2ac] sm:$0xf0]  ;;  %v3389_v16 = vunpack.c.h.bf16 %v10312_v11  ;;  %v7811_v8 = vld [vmem:[#allocation7 + $0x40] sm:$0xf] }
 0x210   :  { %v7253_v48 = vld [vmem:[#allocation3 + $0x838] sm:$0xf0]  ;;  %3235 = vmatmul.bf16.vlgmr.msra.gmra.mxu1 %v10752_v61 }
 0x211   :  { %v9382_v46 = vld [vmem:[#allocation3 + $0xa1c] sm:$0xf]  ;;  %v7256_v32 = vor.u32 %v9318_v4, %v7253_v48  ;;  %3290 = vmatpush.bf16.msrb.mxu1 %v7768_v21  ;;  %3248 = vmatpush.bf16.msrb.mxu3 %v7000_v55  ;;  %v3374_v4 = vadd.f32 %v3358_v59, %v3350_v51  ;;  %v9569_v48 = vld [vmem:[#allocation7 + $0x3ac] sm:$0xf0]  ;;  %v7843_v21 = vld [vmem:[#allocation7 + $0x80] sm:$0xf] }
 0x212   :  { %v7509_v33 = vld [vmem:[#allocation3 + $0xa38] sm:$0xf0]  ;;  %v8244_v29 = vor.u32 %v9569_v48, %v8243_v18  ;;  %v9533_v55 = vld [vmem:[#allocation7 + $0x28c] sm:$0xf0]  ;;  %vm10333_vm2 = vcmp.gt.f32.partialorder %v3389_v16, 0.0  ;;  %v10344_v39 = vmul.f32 0.20019531, %v3389_v16  ;;  %v7844_v23 = vor.u32 %v9469_v10, %v7843_v21 }
 0x213   :  { %v7512_v13 = vor.u32 %v9382_v46, %v7509_v33  ;;  %3262 = vmatpush.bf16.msrb.mxu2 %v7256_v32  ;;  %v10753_v56 = vld [vmem:[#allocation19_spill] sm:$0xff]  ;;  %v3396_v46 = vunpack.c.l.bf16 %v10314_v12  ;;  %v10323_v33 = vpack.c.bf16 %v3367_v58, %v3366_v53  ;;  %v10340_v59 = vpack.c.bf16 %v3375_v62, %v3374_v4  ;;  %v10370_v62 = vpop.f32.mrf.mxu3  ;;  %v10762_v18 = vld [vmem:[#allocation20_spill] sm:$0xff]  ;;  %v8195_v48 = vld [vmem:[#allocation7 + $0x340] sm:$0xf]  ;;  %v10386_v10 = vpop.f32.mrf.mxu1 }
 0x214   :  { %3249 = vmatmul.bf16.vlgmr.msrb.gmra.mxu3 %v10753_v56  ;;  %v9565_v32 = vld [vmem:[#allocation7 + $0x38c] sm:$0xf0]  ;;  %v10361_v53 = vmul.f32 0.20019531, %v3397_v27  ;;  %v7939_v56 = vld [vmem:[#allocation7 + $0x140] sm:$0xf]  ;;  %vm3444_vm5 = vmpackc.low %vm10333_vm2, %vm10325_vm1 }
 0x215   :  { %3276 = vmatpush.bf16.msrb.mxu0 %v7512_v13  ;;  %5036 = vmatpush.bf16.msra.mxu3 %v7892_v30  ;;  %vm10346_vm3 = vcmp.gt.f32.partialorder %v3396_v46, 0.0  ;;  %v3390_v5 = vunpack.c.l.bf16 %v10323_v33  ;;  %v10351_v13 = vpop.f32.mrf.mxu0  ;;  %v7972_v30 = vor.u32 %v9501_v17, %v7971_v25  ;;  %v8228_v36 = vor.u32 %v9565_v32, %v8227_v9  ;;  %v7795_v17 = vld [vmem:[#allocation7 + $0x20] sm:$0xf]  ;;  %v9489_v32 = vld [vmem:[#allocation7 + $0x12c] sm:$0xf0] }
 0x216   :  { %5050 = vmatpush.bf16.msra.mxu1 %v8020_v7  ;;  %3263 = vmatmul.bf16.vlgmr.msrb.gmra.mxu2 %v10114_v38  ;;  %v7988_v38 = vor.u32 %v9505_v50, %v7987_v60  ;;  %v8100_v7 = vor.u32 %v9533_v55, %v8099_v41  ;;  %v10357_v51 = vmul.f32 0.20019531, %v3396_v46  ;;  %v3398_v40 = vunpack.c.l.bf16 %v10340_v59  ;;  %v9461_v60 = vld [vmem:[#allocation7 + $0x4c] sm:$0xf0]  ;;  %v7923_v55 = vld [vmem:[#allocation7 + $0x120] sm:$0xf]  ;;  %vm3448_vm8 = vmpackc.low %vm10353_vm4, %vm10346_vm3 }
 0x217   :  { %5064 = vmatpush.bf16.msra.mxu2 %v8148_v42  ;;  %v7827_v42 = vld [vmem:[#allocation7 + $0x60] sm:$0xf]  ;;  %v3399_v61 = vunpack.c.h.bf16 %v10340_v59  ;;  %v3391_v58 = vunpack.c.h.bf16 %v10323_v33  ;;  %v9493_v50 = vld [vmem:[#allocation7 + $0x14c] sm:$0xf0]  ;;  %v7812_v21 = vor.u32 %v9461_v60, %v7811_v8  ;;  %vm10400_vm9 = vcmp.gt.f32.partialorder %v3390_v5, 0.0 }
 0x218   :  { %3277 = vmatmul.bf16.vlgmr.msrb.gmra.mxu0 %v10116_v43  ;;  %v8116_v43 = vor.u32 %v9537_v3, %v8115_v22  ;;  %v7828_v1 = vor.u32 %v9465_v14, %v7827_v42  ;;  %v8067_v22 = vld [vmem:[#allocation7 + $0x240] sm:$0xf]  ;;  %v9525_v3 = vld [vmem:[#allocation7 + $0x24c] sm:$0xf0]  ;;  %v3430_v16 = vmul.f32 0.20019531, %v3398_v40  ;;  %vm10378_vm6 = vcmp.gt.f32.partialorder %v3398_v40, 0.0 }
 0x219   :  { %5078 = vmatpush.bf16.msra.mxu0 %v8276_v15  ;;  %5037 = vmatpush.bf16.msra.mxu3 %v7876_v6  ;;  %v9497_v15 = vld [vmem:[#allocation7 + $0x16c] sm:$0xf0]  ;;  %v10366_v6 = vmul.f32 0.20019531, %v3390_v5  ;;  %v3431_v4 = vmul.f32 0.20019531, %v3399_v61  ;;  %vm10382_vm7 = vcmp.gt.f32.partialorder %v3399_v61, 0.0  ;;  %v7940_v25 = vor.u32 %v9493_v50, %v7939_v56 }
 0x21a   :  { %5051 = vmatpush.bf16.msra.mxu1 %v8004_v2  ;;  %v10368_v2 = vpop.f32.mrf.mxu2  ;;  %v9557_v46 = vld [vmem:[#allocation7 + $0x34c] sm:$0xf0]  ;;  %v3440_v27 = vpack.c.bf16 %v10361_v53, %v10357_v51  ;;  %v8179_v14 = vld [vmem:[#allocation7 + $0x320] sm:$0xf]  ;;  %vm10404_vm10 = vcmp.gt.f32.partialorder %v3391_v58, 0.0  ;;  %vm3449_vm11 = vmpackc.low %vm10382_vm7, %vm10378_vm6 }
 0x21b   :  { %5065 = vmatpush.bf16.msra.mxu2 %v8132_v34  ;;  %v7956_v34 = vor.u32 %v9497_v15, %v7955_v35  ;;  %v9457_v41 = vld [vmem:[#allocation7 + $0x2c] sm:$0xf0]  ;;  %v8196_v9 = vor.u32 %v9557_v46, %v8195_v48  ;;  %v7779_v51 = vld [vmem:[#allocation7] sm:$0xf]  ;;  %vm3445_vm12 = vmpackc.low %vm10404_vm10, %vm10400_vm9 }
 0x21c   :  { %v9553_v35 = vld [vmem:[#allocation7 + $0x32c] sm:$0xf0]  ;;  %v7796_v0 = vor.u32 %v9457_v41, %v7795_v17  ;;  %v7907_v61 = vld [vmem:[#allocation7 + $0x100] sm:$0xf] }
 0x21d   :  { %5079 = vmatpush.bf16.msra.mxu0 %v8260_v63  ;;  %5038 = vmatpush.bf16.msra.mxu3 %v7860_v52  ;;  %v8212_v63 = vor.u32 %v9561_v54, %v8211_v47  ;;  %v3423_v52 = vmul.f32 0.20019531, %v3391_v58  ;;  %v10394_v42 = vpop.f32.mrf.mxu0  ;;  %v9453_v40 = vld [vmem:[#allocation7 + $0xc] sm:$0xf0]  ;;  %v3456_v54 = vsel %vm3448_vm8, %v10314_v12, %v3440_v27  ;;  %v8180_v53 = vor.u32 %v9553_v35, %v8179_v14  ;;  %v8035_v58 = vld [vmem:[#allocation7 + $0x200] sm:$0xf] }
 0x21e   :  { %5052 = vmatpush.bf16.msra.mxu1 %v7988_v38  ;;  %v9485_v47 = vld [vmem:[#allocation7 + $0x10c] sm:$0xf0]  ;;  %v8531_v56 = vld [vmem:[#allocation7 + $0x5e0] sm:$0xf]  ;;  %v3732_v19 = vunpack.c.l.b16 %v3456_v54 }
 0x21f   :  { %5066 = vmatpush.bf16.msra.mxu2 %v8116_v43  ;;  %v9609_v60 = vld [vmem:[#allocation7 + $0x4ec] sm:$0xf0]  ;;  %v7908_v24 = vor.u32 %v9485_v47, %v7907_v61  ;;  %v8387_v43 = vld [vmem:[#allocation7 + $0x4c0] sm:$0xf] }
 0x220   :  { %7776 = vmatmul.msk.bf16.vlgmr.msrb.gmra.mxu1 %vm2509_vm0, %v10762_v18  ;;  %v8404_v18 = vor.u32 %v9609_v60, %v8403_v28  ;;  %v9637_v17 = vld [vmem:[#allocation7 + $0x5cc] sm:$0xf0]  ;;  %v8371_v14 = vld [vmem:[#allocation7 + $0x4a0] sm:$0xf] }
 0x221   :  { %5080 = vmatpush.bf16.msra.mxu0 %v8244_v29  ;;  %5039 = vmatpush.bf16.msra.mxu3 %v7844_v23  ;;  %v8068_v29 = vor.u32 %v9525_v3, %v8067_v22  ;;  %v8051_v23 = vld [vmem:[#allocation7 + $0x220] sm:$0xf]  ;;  %v10440_v22 = vpop.f32.mrf.mxu1  ;;  %v9601_v35 = vld [vmem:[#allocation7 + $0x4ac] sm:$0xf0] }
 0x222   :  { %5053 = vmatpush.bf16.msra.mxu1 %v7972_v30  ;;  %v9521_v30 = vld [vmem:[#allocation7 + $0x22c] sm:$0xf0]  ;;  %v10427_v8 = vpop.f32.mrf.mxu2 }
 0x223   :  { %5067 = vmatpush.bf16.msra.mxu2 %v8100_v7  ;;  %v3441_v7 = vpack.c.bf16 %v3431_v4, %v3430_v16  ;;  %v8052_v5 = vor.u32 %v9521_v30, %v8051_v23  ;;  %v3733_v16 = vunpack.c.h.b16 %v3456_v54  ;;  %v9633_v15 = vld [vmem:[#allocation7 + $0x5ac] sm:$0xf0] }
 0x224   :  { %v9629_v61 = vld [vmem:[#allocation7 + $0x58c] sm:$0xf0] }
 0x225   :  { %5081 = vmatpush.bf16.msra.mxu0 %v8228_v36  ;;  %5040 = vmatpush.bf16.msra.mxu3 %v7828_v1  ;;  %v3436_v36 = vpack.c.bf16 %v10344_v39, %v10337_v20  ;;  %v3437_v20 = vpack.c.bf16 %v3423_v52, %v10366_v6  ;;  %v7924_v39 = vor.u32 %v9489_v32, %v7923_v55  ;;  %v9517_v1 = vld [vmem:[#allocation7 + $0x20c] sm:$0xf0]  ;;  %v3012_v48 = vpop.f32.mrf.mxu0 }
 0x226   :  { %5054 = vmatpush.bf16.msra.mxu1 %v7956_v34  ;;  %v8163_v34 = vld [vmem:[#allocation7 + $0x300] sm:$0xf]  ;;  %v3457_v6 = vsel %vm3449_vm11, %v10340_v59, %v3441_v7  ;;  %v7780_v59 = vor.u32 %v9453_v40, %v7779_v51  ;;  %v8036_v3 = vor.u32 %v9517_v1, %v8035_v58  ;;  %v9593_v1 = vld [vmem:[#allocation7 + $0x46c] sm:$0xf0] }
 0x227   :  { %5068 = vmatpush.bf16.msra.mxu2 %v8084_v26  ;;  %v10425_v26 = vpop.f32.mrf.mxu3  ;;  %v3452_v12 = vsel %vm3444_vm5, %v10312_v11, %v3436_v36  ;;  %v3453_v50 = vsel %vm3445_vm12, %v10323_v33, %v3437_v20  ;;  %v8164_v11 = vor.u32 %v9549_v49, %v8163_v34  ;;  %v3734_v4 = vunpack.c.l.b16 %v3457_v6  ;;  %v8499_v36 = vld [vmem:[#allocation7 + $0x5a0] sm:$0xf]  ;;  %v9625_v28 = vld [vmem:[#allocation7 + $0x56c] sm:$0xf0] }
 0x228   :  { %v3724_v46 = vunpack.c.l.b16 %v3452_v12  ;;  %v3735_v52 = vunpack.c.h.b16 %v3457_v6  ;;  %v3725_v33 = vunpack.c.h.b16 %v3452_v12  ;;  %v3727_v55 = vunpack.c.h.b16 %v3453_v50  ;;  %v8483_v40 = vld [vmem:[#allocation7 + $0x580] sm:$0xf] }
 0x229   :  { %5082 = vmatpush.bf16.msra.mxu0 %v8212_v63  ;;  %5041 = vmatpush.bf16.msra.mxu3 %v7812_v21  ;;  %v9641_v63 = vld [vmem:[#allocation7 + $0x5ec] sm:$0xf0]  ;;  %v10456_v51 = vpop.f32.mrf.mxu1  ;;  %v8500_v20 = vor.u32 %v9633_v15, %v8499_v36  ;;  %v8339_v58 = vld [vmem:[#allocation7 + $0x460] sm:$0xf]  ;;  %v2929_v34 = vadd.f32 %v10342_v57, %v10329_v37  ;;  %v2931_v37 = vadd.f32 %v10386_v10, %v10370_v62 }
 0x22a   :  { %5055 = vmatpush.bf16.msra.mxu1 %v7940_v25  ;;  %v8532_v38 = vor.u32 %v9641_v63, %v8531_v56  ;;  %v9605_v21 = vld [vmem:[#allocation7 + $0x4cc] sm:$0xf0]  ;;  %v3726_v25 = vunpack.c.l.b16 %v3453_v50  ;;  %v10442_v41 = vpack.c.b16 %v3732_v19, %v3724_v46  ;;  %v10444_v27 = vpack.c.b16 %v3733_v16, %v3725_v33  ;;  %v3026_v30 = vpop.f32.mrf.mxu2  ;;  %v8467_v49 = vld [vmem:[#allocation7 + $0x560] sm:$0xf] }
 0x22b   :  { %5069 = vmatpush.bf16.msra.mxu2 %v8068_v29  ;;  %v8515_v29 = vld [vmem:[#allocation7 + $0x5c0] sm:$0xf]  ;;  %v8388_v32 = vor.u32 %v9605_v21, %v8387_v43  ;;  %v10449_v23 = vpack.c.b16 %v3735_v52, %v3727_v55  ;;  %v3027_v6 = vadd.f32 %v3026_v30, %v3012_v48  ;;  %v8468_v63 = vor.u32 %v9625_v28, %v8467_v49  ;;  %v9621_v16 = vld [vmem:[#allocation7 + $0x54c] sm:$0xf0]  ;;  %v9475_v28 = vld [vmem:[#allocation7 + $0xc4] sm:$0xf] }
 0x22c   :  { %v8516_v7 = vor.u32 %v9637_v17, %v8515_v29  ;;  %v8323_v50 = vld [vmem:[#allocation7 + $0x440] sm:$0xf]  ;;  %v9585_v46 = vld [vmem:[#allocation7 + $0x42c] sm:$0xf0]  ;;  %v2945_v62 = vadd.f32 %v10331_v44, %v2931_v37  ;;  %v9471_v37 = vld [vmem:[#allocation7 + $0xa4] sm:$0xf] }
 0x22d   :  { %5083 = vmatpush.bf16.msra.mxu0 %v8196_v9  ;;  %5042 = vmatpush.bf16.msra.mxu3 %v7796_v0  ;;  %v10446_v9 = vpack.c.b16 %v3734_v4, %v3726_v25  ;;  %v8372_v0 = vor.u32 %v9601_v35, %v8371_v14  ;;  %v3014_v47 = vpop.f32.mrf.mxu0  ;;  %v8307_v48 = vld [vmem:[#allocation7 + $0x420] sm:$0xf]  ;;  %v9617_v21 = vld [vmem:[#allocation7 + $0x52c] sm:$0xf0] }
 0x22e   :  { %5056 = vmatpush.bf16.msra.mxu1 %v7924_v39  ;;  %v8355_v39 = vld [vmem:[#allocation7 + $0x480] sm:$0xf]  ;;  %v3312_v33 = vld [vmem:[#allocation1 + $0x24] sm:$0xff]  ;;  %v8308_v55 = vor.u32 %v9585_v46, %v8307_v48  ;;  %v9503_v48 = vld [vmem:[#allocation7 + $0x1a4] sm:$0xf] }
 0x22f   :  { %5070 = vmatpush.bf16.msra.mxu2 %v8052_v5  ;;  %v10453_v45 = vpop.f32.mrf.mxu3  ;;  %v9597_v5 = vld [vmem:[#allocation7 + $0x48c] sm:$0xf0]  ;;  %v8435_v43 = vld [vmem:[#allocation7 + $0x520] sm:$0xf]  ;;  %v3328_v30 = vpack.i.b16 %v3312_v33, %v3312_v33 }
 0x230   :  { %v8356_v54 = vor.u32 %v9597_v5, %v8355_v39  ;;  %v3313_v25 = vld [vmem:[#allocation1 + $0x2d] sm:$0xff]  ;;  %v9581_v14 = vld [vmem:[#allocation7 + $0x40c] sm:$0xf0]  ;;  %v7893_v39 = vld [vmem:[#allocation7 + $0xf0] sm:$0xf0] }
 0x231   :  { %5084 = vmatpush.bf16.msra.mxu0 %v8180_v53  ;;  %5043 = vmatpush.bf16.msra.mxu3 %v7780_v59  ;;  %v8484_v53 = vor.u32 %v9629_v61, %v8483_v40  ;;  %v8340_v59 = vor.u32 %v9593_v1, %v8339_v58  ;;  %v3054_v56 = vpop.f32.mrf.mxu1  ;;  %v3331_v15 = vpack.i.b16 %v3313_v25, %v3313_v25  ;;  %v8021_v40 = vld [vmem:[#allocation7 + $0x1f0] sm:$0xf0]  ;;  %v9467_v25 = vld [vmem:[#allocation7 + $0x84] sm:$0xf] }
 0x232   :  { %5057 = vmatpush.bf16.msra.mxu1 %v7908_v24  ;;  %v3028_v60 = vpop.f32.mrf.mxu2  ;;  %v9589_v24 = vld [vmem:[#allocation7 + $0x44c] sm:$0xf0] }
 0x233   :  { %5071 = vmatpush.bf16.msra.mxu2 %v8036_v3  ;;  %v2943_v3 = vadd.f32 %v10310_v31, %v2929_v34  ;;  %v8324_v4 = vor.u32 %v9589_v24, %v8323_v50  ;;  %v3029_v17 = vadd.f32 %v3028_v60, %v3014_v47  ;;  %v2959_v47 = vadd.f32 %v10394_v42, %v2945_v62  ;;  %v7877_v60 = vld [vmem:[#allocation7 + $0xd0] sm:$0xf0] }
 0x234   :  { %5044 = vmatmul.bf16.vlgmr.msra.gmra.mxu3 %v10442_v41  ;;  %v7973_v62 = vld [vmem:[#allocation7 + $0x190] sm:$0xf0] }
 0x235   :  { %5085 = vmatpush.bf16.msra.mxu0 %v8164_v11  ;;  %5092 = vmatpush.bf16.msrb.mxu3 %v8404_v18  ;;  %v8451_v11 = vld [vmem:[#allocation7 + $0x540] sm:$0xf]  ;;  %v3068_v57 = vpop.f32.mrf.mxu0  ;;  %v2957_v52 = vadd.f32 %v10351_v13, %v2943_v3  ;;  %v2973_v42 = vadd.f32 %v10453_v45, %v2959_v47  ;;  %v7880_v3 = vor.u32 %v9475_v28, %v7877_v60  ;;  %v7813_v47 = vld [vmem:[#allocation7 + $0x50] sm:$0xf0]  ;;  %v9599_v60 = vld [vmem:[#allocation7 + $0x4a4] sm:$0xf] }
 0x236   :  { %5106 = vmatpush.bf16.msrb.mxu1 %v8532_v38  ;;  %5072 = vmatmul.bf16.vlgmr.msra.gmra.mxu2 %v10446_v9  ;;  %v8452_v18 = vor.u32 %v9621_v16, %v8451_v11  ;;  %v8419_v13 = vld [vmem:[#allocation7 + $0x500] sm:$0xf]  ;;  %v7797_v28 = vld [vmem:[#allocation7 + $0x30] sm:$0xf0] }
 0x237   :  { %5058 = vmatmul.bf16.vlgmr.msra.gmra.mxu1 %v10444_v27  ;;  %v3040_v12 = vpop.f32.mrf.mxu3  ;;  %v2971_v29 = vadd.f32 %v10425_v26, %v2957_v52  ;;  %v9511_v26 = vld [vmem:[#allocation7 + $0x1e4] sm:$0xf]  ;;  %v2987_v45 = vadd.f32 %v10456_v51, %v2973_v42 }
 0x238   :  { %5086 = vmatmul.bf16.vlgmr.msra.gmra.mxu0 %v10449_v23  ;;  %v3041_v19 = vadd.f32 %v3040_v12, %v3027_v6  ;;  %v10470_v6 = vperm.slane %v3331_v15, 0  ;;  %v8024_v49 = vor.u32 %v9511_v26, %v8021_v40  ;;  %v7829_v15 = vld [vmem:[#allocation7 + $0x70] sm:$0xf0]  ;;  %v9487_v42 = vld [vmem:[#allocation7 + $0x124] sm:$0xf] }
 0x239   :  { %5093 = vmatpush.bf16.msrb.mxu3 %v8388_v32  ;;  %v8436_v32 = vor.u32 %v9617_v21, %v8435_v43  ;;  %v3056_v5 = vpop.f32.mrf.mxu1  ;;  %v2985_v61 = vadd.f32 %v10440_v22, %v2971_v29  ;;  %v8005_v22 = vld [vmem:[#allocation7 + $0x1d0] sm:$0xf0] }
 0x23a   :  { %5107 = vmatpush.bf16.msrb.mxu1 %v8516_v7  ;;  %v3055_v38 = vadd.f32 %v3054_v56, %v3041_v19  ;;  %v3082_v10 = vpop.f32.mrf.mxu2  ;;  %v8291_v7 = vld [vmem:[#allocation7 + $0x400] sm:$0xf]  ;;  %v9507_v56 = vld [vmem:[#allocation7 + $0x1c4] sm:$0xf]  ;;  %v3361_v16 = vunpack.c.l.bf16 %v10470_v6  ;;  %v7845_v29 = vld [vmem:[#allocation7 + $0x90] sm:$0xf0] }
 0x23b   :  { %v8292_v44 = vor.u32 %v9581_v14, %v8291_v7  ;;  %v7848_v51 = vor.u32 %v9467_v25, %v7845_v29  ;;  %v9705_v29 = vld [vmem:[#allocation7 + $0x7ec] sm:$0xf0] }
 0x23c   :  { %v3069_v35 = vadd.f32 %v3068_v57, %v3055_v38  ;;  %v7861_v57 = vld [vmem:[#allocation7 + $0xb0] sm:$0xf0] }
 0x23d   :  { %5094 = vmatpush.bf16.msrb.mxu3 %v8372_v0  ;;  %v9613_v0 = vld [vmem:[#allocation7 + $0x50c] sm:$0xf0]  ;;  %v3070_v12 = vpop.f32.mrf.mxu0  ;;  %v7864_v38 = vor.u32 %v9471_v37, %v7861_v57  ;;  %v8357_v37 = vld [vmem:[#allocation7 + $0x490] sm:$0xf0] }
 0x23e   :  { %5108 = vmatpush.bf16.msrb.mxu1 %v8500_v20  ;;  %v9479_v20 = vld [vmem:[#allocation7 + $0xe4] sm:$0xf]  ;;  %v3083_v1 = vadd.f32 %v3082_v10, %v3069_v35  ;;  %v3001_v10 = vadd.f32 %v10427_v8, %v2987_v45 }
 0x23f   :  { %v3042_v31 = vpop.f32.mrf.mxu3  ;;  %v7896_v58 = vor.u32 %v9479_v20, %v7893_v39  ;;  %v7957_v20 = vld [vmem:[#allocation7 + $0x170] sm:$0xf0] }
 0x240   :  { %v3043_v36 = vadd.f32 %v3042_v31, %v3029_v17 }
 0x241   :  { %5095 = vmatpush.bf16.msrb.mxu3 %v8356_v54  ;;  %v10468_v54 = vperm.slane %v3328_v30, 0 }
 0x242   :  { %5109 = vmatpush.bf16.msrb.mxu1 %v8484_v53  ;;  %v8420_v53 = vor.u32 %v9613_v0, %v8419_v13  ;;  %v3057_v34 = vadd.f32 %v3056_v5, %v3043_v36  ;;  %v9463_v36 = vld [vmem:[#allocation7 + $0x64] sm:$0xf] }
 0x243   :  { %v3360_v24 = vunpack.c.l.bf16 %v10468_v54  ;;  %v9495_v0 = vld [vmem:[#allocation7 + $0x164] sm:$0xf]  ;;  %v7832_v26 = vor.u32 %v9463_v36, %v7829_v15 }
 0x244   :  { %v3071_v19 = vadd.f32 %v3070_v12, %v3057_v34  ;;  %v7960_v8 = vor.u32 %v9495_v0, %v7957_v20 }
 0x245   :  { %5096 = vmatpush.bf16.msrb.mxu3 %v8340_v59 }
 0x246   :  { %5110 = vmatpush.bf16.msrb.mxu1 %v8468_v63  ;;  %v2999_v63 = vadd.f32 %v10368_v2, %v2985_v61  ;;  %v7989_v2 = vld [vmem:[#allocation7 + $0x1b0] sm:$0xf0] }
 0x247   :  { %v3096_v59 = vpop.f32.mrf.mxu3  ;;  %v7992_v31 = vor.u32 %v9503_v48, %v7989_v2  ;;  %v10498_v48 = vpop.f32.mrf.mxu0  ;;  %v8659_v2 = vld [vmem:[#allocation7 + $0x6e0] sm:$0xf] }
 0x248   :  { %v3097_v50 = vadd.f32 %v3096_v59, %v3083_v1  ;;  %v7941_v1 = vld [vmem:[#allocation7 + $0x150] sm:$0xf0] }
 0x249   :  { %5097 = vmatpush.bf16.msrb.mxu3 %v8324_v4  ;;  %v8008_v4 = vor.u32 %v9507_v56, %v8005_v22 }
 0x24a   :  { %5111 = vmatpush.bf16.msrb.mxu1 %v8452_v18  ;;  %v3299_v11 = vpack.c.bf16 %v3097_v50, %v2999_v63  ;;  %v3084_v18 = vpop.f32.mrf.mxu2  ;;  %v7925_v50 = vld [vmem:[#allocation7 + $0x130] sm:$0xf0] }
 0x24b   :  { %v3085_v43 = vadd.f32 %v3084_v18, %v3071_v19  ;;  %v7781_v19 = vld [vmem:[#allocation7 + $0x10] sm:$0xf0] }
 0x24c   :  { %v3344_v46 = vunpack.c.l.bf16 %v3299_v11  ;;  %v3345_v52 = vunpack.c.h.bf16 %v3299_v11  ;;  %v9483_v11 = vld [vmem:[#allocation7 + $0x104] sm:$0xf] }
 0x24d   :  { %5098 = vmatpush.bf16.msrb.mxu3 %v8308_v55  ;;  %v9499_v55 = vld [vmem:[#allocation7 + $0x184] sm:$0xf] }
 0x24e   :  { %5112 = vmatpush.bf16.msrb.mxu1 %v8436_v32  ;;  %v3368_v21 = vadd.f32 %v3360_v24, %v3344_v46  ;;  %v3369_v33 = vadd.f32 %v3361_v16, %v3345_v52  ;;  %v7976_v35 = vor.u32 %v9499_v55, %v7973_v62  ;;  %v7928_v46 = vor.u32 %v9487_v42, %v7925_v50  ;;  %v9607_v52 = vld [vmem:[#allocation7 + $0x4e4] sm:$0xf]  ;;  %v8643_v62 = vld [vmem:[#allocation7 + $0x6c0] sm:$0xf]  ;;  %v9661_v50 = vld [vmem:[#allocation7 + $0x68c] sm:$0xf0] }
 0x24f   :  { %v3098_v17 = vpop.f32.mrf.mxu3  ;;  %v8611_v42 = vld [vmem:[#allocation7 + $0x680] sm:$0xf] }
 0x250   :  { %v3382_v32 = vpack.c.bf16 %v3369_v33, %v3368_v21  ;;  %v3099_v30 = vadd.f32 %v3098_v17, %v3085_v43  ;;  %v8787_v43 = vld [vmem:[#allocation7 + $0x7e0] sm:$0xf]  ;;  %v8405_v33 = vld [vmem:[#allocation7 + $0x4f0] sm:$0xf0] }
 0x251   :  { %5099 = vmatpush.bf16.msrb.mxu3 %v8292_v44  ;;  %v9459_v44 = vld [vmem:[#allocation7 + $0x44] sm:$0xf]  ;;  %v8533_v17 = vld [vmem:[#allocation7 + $0x5f0] sm:$0xf0]  ;;  %v8788_v55 = vor.u32 %v9705_v29, %v8787_v43  ;;  %v8408_v20 = vor.u32 %v9607_v52, %v8405_v33  ;;  %v8723_v52 = vld [vmem:[#allocation7 + $0x760] sm:$0xf] }
 0x252   :  { %5113 = vmatpush.bf16.msrb.mxu1 %v8420_v53  ;;  %v3392_v7 = vunpack.c.l.bf16 %v3382_v32  ;;  %v3393_v14 = vunpack.c.h.bf16 %v3382_v32  ;;  %v3303_v13 = vpack.c.bf16 %v3099_v30, %v3001_v10  ;;  %v7816_v6 = vor.u32 %v9459_v44, %v7813_v47  ;;  %v8517_v44 = vld [vmem:[#allocation7 + $0x5d0] sm:$0xf0]  ;;  %v9689_v43 = vld [vmem:[#allocation7 + $0x76c] sm:$0xf0]  ;;  %v10518_v29 = vpop.f32.mrf.mxu2 }
 0x253   :  { %5134 = vmatpush.bf16.msrb.mxu0 %v8788_v55 }
 0x254   :  { %v3352_v39 = vunpack.c.l.bf16 %v3303_v13  ;;  %v3353_v5 = vunpack.c.h.bf16 %v3303_v13  ;;  %v3424_v40 = vmul.f32 0.20019531, %v3392_v7  ;;  %v3425_v61 = vmul.f32 0.20019531, %v3393_v14  ;;  %v9701_v13 = vld [vmem:[#allocation7 + $0x7cc] sm:$0xf0] }
 0x255   :  { %5148 = vmatpush.bf16.msra.mxu3 %v7896_v58  ;;  %v9491_v58 = vld [vmem:[#allocation7 + $0x144] sm:$0xf]  ;;  %vm10478_vm13 = vcmp.gt.f32.partialorder %v3392_v7, 0.0  ;;  %vm10482_vm14 = vcmp.gt.f32.partialorder %v3393_v14, 0.0  ;;  %v9669_v7 = vld [vmem:[#allocation7 + $0x6cc] sm:$0xf0] }
 0x256   :  { %5162 = vmatpush.bf16.msra.mxu1 %v8024_v49  ;;  %v3376_v54 = vadd.f32 %v3360_v24, %v3352_v39  ;;  %v3377_v53 = vadd.f32 %v3361_v16, %v3353_v5  ;;  %v9455_v49 = vld [vmem:[#allocation7 + $0x24] sm:$0xf]  ;;  %v3438_v59 = vpack.c.bf16 %v3425_v61, %v3424_v40  ;;  %v7944_v56 = vor.u32 %v9491_v58, %v7941_v1  ;;  %v7909_v16 = vld [vmem:[#allocation7 + $0x110] sm:$0xf0]  ;;  %vm3446_vm15 = vmpackc.low %vm10482_vm14, %vm10478_vm13  ;;  %v10508_v1 = vpop.f32.mrf.mxu1 }
 0x257   :  { %v7800_v24 = vor.u32 %v9455_v49, %v7797_v28  ;;  %v7912_v30 = vor.u32 %v9483_v11, %v7909_v16  ;;  %v8771_v14 = vld [vmem:[#allocation7 + $0x7c0] sm:$0xf]  ;;  %v8644_v0 = vor.u32 %v9669_v7, %v8643_v62  ;;  %v9603_v39 = vld [vmem:[#allocation7 + $0x4c4] sm:$0xf]  ;;  %v8389_v61 = vld [vmem:[#allocation7 + $0x4d0] sm:$0xf0]  ;;  %v10511_v49 = vpop.f32.mrf.mxu0 }
 0x258   :  { %v3386_v34 = vpack.c.bf16 %v3377_v53, %v3376_v54  ;;  %v3454_v45 = vsel %vm3446_vm15, %v3382_v32, %v3438_v59  ;;  %v8772_v47 = vor.u32 %v9701_v13, %v8771_v14  ;;  %v8627_v54 = vld [vmem:[#allocation7 + $0x6a0] sm:$0xf]  ;;  %v9665_v53 = vld [vmem:[#allocation7 + $0x6ac] sm:$0xf0]  ;;  %v8392_v28 = vor.u32 %v9603_v39, %v8389_v61  ;;  %v8373_v59 = vld [vmem:[#allocation7 + $0x4b0] sm:$0xf0] }
 0x259   :  { %5149 = vmatpush.bf16.msra.mxu3 %v7880_v3  ;;  %v9451_v3 = vld [vmem:[#allocation7 + $0x4] sm:$0xf]  ;;  %v3729_v36 = vunpack.c.h.b16 %v3454_v45  ;;  %v8755_v58 = vld [vmem:[#allocation7 + $0x7a0] sm:$0xf]  ;;  %v8376_v11 = vor.u32 %v9599_v60, %v8373_v59  ;;  %v8341_v62 = vld [vmem:[#allocation7 + $0x470] sm:$0xf0] }
 0x25a   :  { %5163 = vmatpush.bf16.msra.mxu1 %v8008_v4  ;;  %v3400_v22 = vunpack.c.l.bf16 %v3386_v34  ;;  %v3401_v63 = vunpack.c.h.bf16 %v3386_v34  ;;  %v7784_v32 = vor.u32 %v9451_v3, %v7781_v19  ;;  %5135 = vmatpush.bf16.msrb.mxu0 %v8772_v47  ;;  %v8612_v3 = vor.u32 %v9661_v50, %v8611_v42  ;;  %v9693_v19 = vld [vmem:[#allocation7 + $0x78c] sm:$0xf0]  ;;  %v9595_v16 = vld [vmem:[#allocation7 + $0x484] sm:$0xf]  ;;  %v8707_v14 = vld [vmem:[#allocation7 + $0x740] sm:$0xf] }
 0x25b   :  { %v9653_v7 = vld [vmem:[#allocation7 + $0x64c] sm:$0xf0]  ;;  %v9619_v39 = vld [vmem:[#allocation7 + $0x544] sm:$0xf]  ;;  %v8691_v47 = vld [vmem:[#allocation7 + $0x720] sm:$0xf] }
 0x25c   :  { %vm10490_vm0 = vcmp.gt.f32.partialorder %v3400_v22, 0.0  ;;  %vm10494_vm1 = vcmp.gt.f32.partialorder %v3401_v63, 0.0  ;;  %v3432_v57 = vmul.f32 0.20019531, %v3400_v22  ;;  %v3433_v18 = vmul.f32 0.20019531, %v3401_v63  ;;  %v8501_v22 = vld [vmem:[#allocation7 + $0x5b0] sm:$0xf0] }
 0x25d   :  { %5150 = vmatpush.bf16.msra.mxu3 %v7864_v38  ;;  %v9673_v38 = vld [vmem:[#allocation7 + $0x6ec] sm:$0xf0]  ;;  %vm3450_vm2 = vmpackc.low %vm10494_vm1, %vm10490_vm0  ;;  %v8309_v60 = vld [vmem:[#allocation7 + $0x430] sm:$0xf0] }
 0x25e   :  { %5164 = vmatpush.bf16.msra.mxu1 %v7992_v31  ;;  %v3442_v21 = vpack.c.bf16 %v3433_v18, %v3432_v57  ;;  %v9639_v31 = vld [vmem:[#allocation7 + $0x5e4] sm:$0xf]  ;;  %v8660_v25 = vor.u32 %v9673_v38, %v8659_v2  ;;  %v8485_v18 = vld [vmem:[#allocation7 + $0x590] sm:$0xf0]  ;;  %v8547_v42 = vld [vmem:[#allocation7 + $0x600] sm:$0xf] }
 0x25f   :  { %v8536_v40 = vor.u32 %v9639_v31, %v8533_v17  ;;  %v9627_v57 = vld [vmem:[#allocation7 + $0x584] sm:$0xf]  ;;  %v10516_v33 = vpop.f32.mrf.mxu0  ;;  %v8360_v31 = vor.u32 %v9595_v16, %v8357_v37  ;;  %v10520_v17 = vpop.f32.mrf.mxu1  ;;  %v8437_v59 = vld [vmem:[#allocation7 + $0x530] sm:$0xf0]  ;;  %v9645_v50 = vld [vmem:[#allocation7 + $0x60c] sm:$0xf0] }
 0x260   :  { %v3458_v10 = vsel %vm3450_vm2, %v3386_v34, %v3442_v21  ;;  %5120 = vmatpush.bf16.msrb.mxu2 %v8660_v25  ;;  %v8628_v34 = vor.u32 %v9665_v53, %v8627_v54  ;;  %v10514_v21 = vpop.f32.mrf.mxu3  ;;  %v9591_v25 = vld [vmem:[#allocation7 + $0x464] sm:$0xf]  ;;  %v8488_v55 = vor.u32 %v9627_v57, %v8485_v18  ;;  %v9681_v53 = vld [vmem:[#allocation7 + $0x72c] sm:$0xf0]  ;;  %v8149_v37 = vld [vmem:[#allocation7 + $0x2f0] sm:$0xf0] }
 0x261   :  { %5151 = vmatpush.bf16.msra.mxu3 %v7848_v51  ;;  %v3728_v51 = vunpack.c.l.b16 %v3454_v45  ;;  %v3737_v15 = vunpack.c.h.b16 %v3458_v10  ;;  %v8595_v45 = vld [vmem:[#allocation7 + $0x660] sm:$0xf]  ;;  %v9677_v16 = vld [vmem:[#allocation7 + $0x70c] sm:$0xf0]  ;;  %v8293_v18 = vld [vmem:[#allocation7 + $0x410] sm:$0xf0] }
 0x262   :  { %5165 = vmatpush.bf16.msra.mxu1 %v7976_v35  ;;  %v3736_v35 = vunpack.c.l.b16 %v3458_v10  ;;  %v9623_v10 = vld [vmem:[#allocation7 + $0x564] sm:$0xf] }
 0x264   :  { %v10504_v5 = vpack.c.b16 %v3736_v35, %v3728_v51  ;;  %5121 = vmatpush.bf16.msrb.mxu2 %v8644_v0  ;;  %v8579_v51 = vld [vmem:[#allocation7 + $0x640] sm:$0xf]  ;;  %v9685_v35 = vld [vmem:[#allocation7 + $0x74c] sm:$0xf0] }
 0x265   :  { %5152 = vmatpush.bf16.msra.mxu3 %v7832_v26  ;;  %v10506_v26 = vpack.c.b16 %v3737_v15, %v3729_v36  ;;  %v8580_v13 = vor.u32 %v9653_v7, %v8579_v51  ;;  %v8344_v36 = vor.u32 %v9591_v25, %v8341_v62  ;;  %v9587_v15 = vld [vmem:[#allocation7 + $0x444] sm:$0xf]  ;;  %v8708_v61 = vor.u32 %v9685_v35, %v8707_v14  ;;  %v8027_v62 = vld [vmem:[#allocation7 + $0x1e8] sm:$0xf]  ;;  %v8133_v51 = vld [vmem:[#allocation7 + $0x2d0] sm:$0xf0] }
 0x266   :  { %5166 = vmatpush.bf16.msra.mxu1 %v7960_v8  ;;  %v9635_v8 = vld [vmem:[#allocation7 + $0x5c4] sm:$0xf]  ;;  %5100 = vmatmul.bf16.vlgmr.msrb.gmra.mxu3 %v10504_v5  ;;  %v8261_v35 = vld [vmem:[#allocation7 + $0x3d0] sm:$0xf0] }
 0x267   :  { %5114 = vmatmul.bf16.vlgmr.msrb.gmra.mxu1 %v10506_v26  ;;  %v8520_v12 = vor.u32 %v9635_v8, %v8517_v44  ;;  %v8563_v8 = vld [vmem:[#allocation7 + $0x620] sm:$0xf]  ;;  %v9649_v44 = vld [vmem:[#allocation7 + $0x62c] sm:$0xf0]  ;;  %v9571_v7 = vld [vmem:[#allocation7 + $0x3c4] sm:$0xf] }
 0x268   :  { %5122 = vmatpush.bf16.msrb.mxu2 %v8628_v34  ;;  %v8564_v54 = vor.u32 %v9649_v44, %v8563_v8  ;;  %v9583_v34 = vld [vmem:[#allocation7 + $0x424] sm:$0xf]  ;;  %v8264_v8 = vor.u32 %v9571_v7, %v8261_v35  ;;  %v10548_v7 = vld [vmem:[#allocation1 + $0x3f] sm:$0xff] }
 0x269   :  { %5153 = vmatpush.bf16.msra.mxu3 %v7816_v6  ;;  %v9697_v6 = vld [vmem:[#allocation7 + $0x7ac] sm:$0xf0]  ;;  %v8312_v57 = vor.u32 %v9583_v34, %v8309_v60  ;;  %v9567_v60 = vld [vmem:[#allocation7 + $0x3a4] sm:$0xf]  ;;  %v8213_v35 = vld [vmem:[#allocation7 + $0x370] sm:$0xf0] }
 0x26a   :  { %5167 = vmatpush.bf16.msra.mxu1 %v7944_v56  ;;  %v9631_v56 = vld [vmem:[#allocation7 + $0x5a4] sm:$0xf]  ;;  %v8756_v63 = vor.u32 %v9697_v6, %v8755_v58  ;;  %v10524_v6 = vpop.f32.mrf.mxu1 }
 0x26b   :  { %v8504_v4 = vor.u32 %v9631_v56, %v8501_v22  ;;  %v8692_v56 = vor.u32 %v9681_v53, %v8691_v47  ;;  %v10526_v22 = vpop.f32.mrf.mxu3  ;;  %v9535_v53 = vld [vmem:[#allocation7 + $0x2a4] sm:$0xf] }
 0x26c   :  { %5136 = vmatpush.bf16.msrb.mxu0 %v8756_v63  ;;  %5123 = vmatpush.bf16.msrb.mxu2 %v8612_v3  ;;  %v10528_v63 = vpop.f32.mrf.mxu0  ;;  %v10530_v3 = vpop.f32.mrf.mxu2 }
 0x26d   :  { %5154 = vmatpush.bf16.msra.mxu3 %v7800_v24  ;;  %v8739_v24 = vld [vmem:[#allocation7 + $0x780] sm:$0xf] }
 0x26e   :  { %5168 = vmatpush.bf16.msra.mxu1 %v7928_v46  ;;  %v8740_v2 = vor.u32 %v9693_v19, %v8739_v24  ;;  %v9657_v46 = vld [vmem:[#allocation7 + $0x66c] sm:$0xf0]  ;;  %v8675_v24 = vld [vmem:[#allocation7 + $0x700] sm:$0xf]  ;;  %v9579_v19 = vld [vmem:[#allocation7 + $0x404] sm:$0xf] }
 0x26f   :  { %v8596_v38 = vor.u32 %v9657_v46, %v8595_v45  ;;  %v9575_v45 = vld [vmem:[#allocation7 + $0x3e4] sm:$0xf]  ;;  %v8277_v46 = vld [vmem:[#allocation7 + $0x3f0] sm:$0xf0]  ;;  %v8676_v25 = vor.u32 %v9677_v16, %v8675_v24  ;;  %v8296_v14 = vor.u32 %v9579_v19, %v8293_v18  ;;  %v7995_v24 = vld [vmem:[#allocation7 + $0x1a8] sm:$0xf] }
 0x270   :  { %5137 = vmatpush.bf16.msrb.mxu0 %v8740_v2  ;;  %v9506_v19 = vld [vmem:[#allocation7 + $0x1b4] sm:$0xf0]  ;;  %v9531_v16 = vld [vmem:[#allocation7 + $0x284] sm:$0xf]  ;;  %v8229_v18 = vld [vmem:[#allocation7 + $0x390] sm:$0xf0] }
 0x271   :  { %5155 = vmatpush.bf16.msra.mxu3 %v7784_v32  ;;  %v8469_v32 = vld [vmem:[#allocation7 + $0x570] sm:$0xf0]  ;;  %5124 = vmatpush.bf16.msrb.mxu2 %v8596_v38  ;;  %v9611_v38 = vld [vmem:[#allocation7 + $0x504] sm:$0xf] }
 0x272   :  { %5169 = vmatpush.bf16.msra.mxu1 %v7912_v30  ;;  %v8724_v30 = vor.u32 %v9689_v43, %v8723_v52  ;;  %v8472_v0 = vor.u32 %v9623_v10, %v8469_v32  ;;  %v8421_v43 = vld [vmem:[#allocation7 + $0x510] sm:$0xf0]  ;;  %v9514_v10 = vld [vmem:[#allocation7 + $0x1f4] sm:$0xf0]  ;;  %v8280_v32 = vor.u32 %v9575_v45, %v8277_v46  ;;  %v10534_v44 = vpop.f32.mrf.mxu1  ;;  %v7851_v45 = vld [vmem:[#allocation7 + $0x88] sm:$0xf] }
 0x273   :  { %v9470_v46 = vld [vmem:[#allocation7 + $0x94] sm:$0xf0] }
 0x274   :  { %5138 = vmatpush.bf16.msrb.mxu0 %v8724_v30  ;;  %v9539_v30 = vld [vmem:[#allocation7 + $0x2c4] sm:$0xf]  ;;  %v10536_v47 = vpop.f32.mrf.mxu2  ;;  %v10538_v34 = vpop.f32.mrf.mxu0 }
 0x275   :  { %5204 = vmatpush.bf16.msrb.mxu3 %v8408_v20  ;;  %v8325_v20 = vld [vmem:[#allocation7 + $0x450] sm:$0xf0]  ;;  %5125 = vmatpush.bf16.msrb.mxu2 %v8580_v13  ;;  %v8136_v13 = vor.u32 %v9539_v30, %v8133_v51  ;;  %v3125_v30 = vadd.f32 %v10514_v21, %v10508_v1  ;;  %v9498_v1 = vld [vmem:[#allocation7 + $0x174] sm:$0xf0] }
 0x276   :  { %5218 = vmatpush.bf16.msrb.mxu1 %v8536_v40  ;;  %v8453_v40 = vld [vmem:[#allocation7 + $0x550] sm:$0xf0]  ;;  %5156 = vmatmul.bf16.vlgmr.msra.gmra.mxu3 %v10442_v41  ;;  %v8328_v58 = vor.u32 %v9587_v15, %v8325_v20  ;;  %v8028_v20 = vor.u32 %v9514_v10, %v8027_v62  ;;  %v9527_v62 = vld [vmem:[#allocation7 + $0x264] sm:$0xf] }
 0x277   :  { %5170 = vmatmul.bf16.vlgmr.msra.gmra.mxu1 %v10444_v27  ;;  %v8085_v10 = vld [vmem:[#allocation7 + $0x270] sm:$0xf0] }
 0x278   :  { %5139 = vmatpush.bf16.msrb.mxu0 %v8708_v61  ;;  %v8011_v61 = vld [vmem:[#allocation7 + $0x1c8] sm:$0xf] }
 0x279   :  { %5205 = vmatpush.bf16.msrb.mxu3 %v8392_v28  ;;  %v8456_v28 = vor.u32 %v9619_v39, %v8453_v40  ;;  %5126 = vmatpush.bf16.msrb.mxu2 %v8564_v54  ;;  %v7883_v39 = vld [vmem:[#allocation7 + $0xc8] sm:$0xf]  ;;  %v9478_v40 = vld [vmem:[#allocation7 + $0xd4] sm:$0xf0] }
 0x27a   :  { %5219 = vmatpush.bf16.msrb.mxu1 %v8520_v12  ;;  %v9615_v12 = vld [vmem:[#allocation7 + $0x524] sm:$0xf]  ;;  %v9510_v54 = vld [vmem:[#allocation7 + $0x1d4] sm:$0xf0] }
 0x27b   :  { %v8440_v52 = vor.u32 %v9615_v12, %v8437_v59  ;;  %v8245_v12 = vld [vmem:[#allocation7 + $0x3b0] sm:$0xf0]  ;;  %v7884_v59 = vor.u32 %v9478_v40, %v7883_v39 }
 0x27c   :  { %5140 = vmatpush.bf16.msrb.mxu0 %v8692_v56  ;;  %v7867_v56 = vld [vmem:[#allocation7 + $0xa8] sm:$0xf]  ;;  %v10552_v39 = vpop.f32.mrf.mxu0 }
 0x27d   :  { %5206 = vmatpush.bf16.msrb.mxu3 %v8376_v11  ;;  %v8548_v11 = vor.u32 %v9645_v50, %v8547_v42  ;;  %v8012_v42 = vor.u32 %v9510_v54, %v8011_v61  ;;  %v9474_v50 = vld [vmem:[#allocation7 + $0xb4] sm:$0xf0]  ;;  %v9523_v54 = vld [vmem:[#allocation7 + $0x244] sm:$0xf] }
 0x27e   :  { %5220 = vmatpush.bf16.msrb.mxu1 %v8504_v4  ;;  %v9543_v4 = vld [vmem:[#allocation7 + $0x2e4] sm:$0xf]  ;;  %v9466_v61 = vld [vmem:[#allocation7 + $0x74] sm:$0xf0] }
 0x27f   :  { %v8152_v2 = vor.u32 %v9543_v4, %v8149_v37  ;;  %5127 = vmatpush.bf16.msrb.mxu2 %v8548_v11  ;;  %v8248_v11 = vor.u32 %v9567_v60, %v8245_v12  ;;  %v8101_v4 = vld [vmem:[#allocation7 + $0x290] sm:$0xf0]  ;;  %v9563_v37 = vld [vmem:[#allocation7 + $0x384] sm:$0xf] }
 0x280   :  { %5141 = vmatpush.bf16.msrb.mxu0 %v8676_v25  ;;  %v8232_v25 = vor.u32 %v9563_v37, %v8229_v18  ;;  %v8197_v12 = vld [vmem:[#allocation7 + $0x350] sm:$0xf0] }
 0x281   :  { %5207 = vmatpush.bf16.msrb.mxu3 %v8360_v31  ;;  %v7899_v31 = vld [vmem:[#allocation7 + $0xe8] sm:$0xf]  ;;  %v8053_v18 = vld [vmem:[#allocation7 + $0x230] sm:$0xf0] }
 0x282   :  { %5221 = vmatpush.bf16.msrb.mxu1 %v8488_v55  ;;  %v9482_v55 = vld [vmem:[#allocation7 + $0xf4] sm:$0xf0] }
 0x283   :  { %5176 = vmatpush.bf16.msra.mxu2 %v8152_v2  ;;  %v7900_v15 = vor.u32 %v9482_v55, %v7899_v31  ;;  %v7868_v2 = vor.u32 %v9474_v50, %v7867_v56  ;;  %v10542_v31 = vld [vmem:[#allocation1 + $0x36] sm:$0xff] }
 0x284   :  { %5190 = vmatpush.bf16.msra.mxu0 %v8280_v32  ;;  %v9559_v32 = vld [vmem:[#allocation7 + $0x364] sm:$0xf] }
 0x285   :  { %5208 = vmatpush.bf16.msrb.mxu3 %v8344_v36  ;;  %v8424_v36 = vor.u32 %v9611_v38, %v8421_v43  ;;  %v7979_v38 = vld [vmem:[#allocation7 + $0x188] sm:$0xf]  ;;  %v9502_v43 = vld [vmem:[#allocation7 + $0x194] sm:$0xf0]  ;;  %v8216_v21 = vor.u32 %v9559_v32, %v8213_v35 }
 0x286   :  { %5222 = vmatpush.bf16.msrb.mxu1 %v8472_v0  ;;  %v10532_v0 = vpop.f32.mrf.mxu3  ;;  %v7980_v40 = vor.u32 %v9502_v43, %v7979_v38  ;;  %v7931_v32 = vld [vmem:[#allocation7 + $0x128] sm:$0xf] }
 0x287   :  { %5177 = vmatpush.bf16.msra.mxu2 %v8136_v13  ;;  %v8088_v13 = vor.u32 %v9527_v62, %v8085_v10 }
 0x288   :  { %5191 = vmatpush.bf16.msra.mxu0 %v8264_v8  ;;  %v7963_v8 = vld [vmem:[#allocation7 + $0x168] sm:$0xf] }
 0x289   :  { %5209 = vmatpush.bf16.msrb.mxu3 %v8328_v58  ;;  %v8117_v58 = vld [vmem:[#allocation7 + $0x2b0] sm:$0xf0]  ;;  %v7964_v50 = vor.u32 %v9498_v1, %v7963_v8 }
 0x28a   :  { %5223 = vmatpush.bf16.msrb.mxu1 %v8456_v28  ;;  %v8120_v28 = vor.u32 %v9535_v53, %v8117_v58  ;;  %v8069_v53 = vld [vmem:[#allocation7 + $0x250] sm:$0xf0]  ;;  %v9555_v58 = vld [vmem:[#allocation7 + $0x344] sm:$0xf] }
 0x28b   :  { %v8072_v60 = vor.u32 %v9523_v54, %v8069_v53  ;;  %v8165_v8 = vld [vmem:[#allocation7 + $0x310] sm:$0xf0]  ;;  %v7787_v53 = vld [vmem:[#allocation7 + $0x8] sm:$0xf] }
 0x28c   :  { %5178 = vmatpush.bf16.msra.mxu2 %v8120_v28  ;;  %5192 = vmatpush.bf16.msra.mxu0 %v8248_v11  ;;  %v3139_v28 = vadd.f32 %v10498_v48, %v3125_v30  ;;  %v9494_v11 = vld [vmem:[#allocation7 + $0x154] sm:$0xf0] }
 0x28d   :  { %5210 = vmatpush.bf16.msrb.mxu3 %v8312_v57  ;;  %v8104_v57 = vor.u32 %v9531_v16, %v8101_v4  ;;  %v3236_v55 = vpop.f32.mrf.mxu1  ;;  %v8200_v16 = vor.u32 %v9555_v58, %v8197_v12  ;;  %v3127_v4 = vadd.f32 %v10526_v22, %v10520_v17  ;;  %v3337_v17 = vpack.i.b16 %v10548_v7, %v10548_v7  ;;  %v7803_v22 = vld [vmem:[#allocation7 + $0x28] sm:$0xf]  ;;  %v9490_v30 = vld [vmem:[#allocation7 + $0x134] sm:$0xf0] }
 0x28e   :  { %5224 = vmatpush.bf16.msrb.mxu1 %v8440_v52  ;;  %v7996_v52 = vor.u32 %v9506_v19, %v7995_v24  ;;  %v10546_v51 = vpop.f32.mrf.mxu3  ;;  %v9462_v24 = vld [vmem:[#allocation7 + $0x54] sm:$0xf0]  ;;  %v7947_v19 = vld [vmem:[#allocation7 + $0x148] sm:$0xf] }
 0x28f   :  { %v10571_v54 = vperm.slane %v3337_v17, 0  ;;  %v9454_v58 = vld [vmem:[#allocation7 + $0x14] sm:$0xf0] }
 0x290   :  { %5179 = vmatpush.bf16.msra.mxu2 %v8104_v57  ;;  %5193 = vmatpush.bf16.msra.mxu0 %v8232_v25  ;;  %v9519_v57 = vld [vmem:[#allocation7 + $0x224] sm:$0xf]  ;;  %v3334_v25 = vpack.i.b16 %v10542_v31, %v10542_v31  ;;  %v8037_v31 = vld [vmem:[#allocation7 + $0x210] sm:$0xf0]  ;;  %v9638_v17 = vld [vmem:[#allocation7 + $0x5d4] sm:$0xf0] }
 0x291   :  { %5211 = vmatpush.bf16.msrb.mxu3 %v8296_v14  ;;  %v5488_v14 = vld [vmem:[#allocation8] sm:$0xf] }
 0x292   :  { %5225 = vmatpush.bf16.msrb.mxu1 %v8424_v36  ;;  %v10550_v36 = vpop.f32.mrf.mxu2  ;;  %5490 = vst [vmem:[#allocation1] ss:$9 sm:$0xff] %v5488_v14 }
 0x294   :  { %5212 = vmatmul.bf16.vlgmr.msrb.gmra.mxu3 %v10504_v5  ;;  %5180 = vmatpush.bf16.msra.mxu2 %v8088_v13  ;;  %v3141_v13 = vadd.f32 %v10511_v49, %v3127_v4  ;;  %v7932_v49 = vor.u32 %v9490_v30, %v7931_v32  ;;  %v8379_v30 = vld [vmem:[#allocation7 + $0x4a8] sm:$0xf] }
 0x295   :  { %5260 = vmatpush.bf16.msra.mxu3 %v7900_v15  ;;  %5226 = vmatmul.bf16.vlgmr.msrb.gmra.mxu1 %v10506_v26  ;;  %v7852_v15 = vor.u32 %v9470_v46, %v7851_v45  ;;  %v3238_v48 = vpop.f32.mrf.mxu1  ;;  %v8056_v45 = vor.u32 %v9519_v57, %v8053_v18  ;;  %v8181_v46 = vld [vmem:[#allocation7 + $0x330] sm:$0xf0]  ;;  %v3278_v10 = vpop.f32.mrf.mxu0  ;;  %v7788_v57 = vor.u32 %v9454_v58, %v7787_v53 }
 0x296   :  { %5274 = vmatpush.bf16.msra.mxu1 %v8028_v20  ;;  %v7835_v20 = vld [vmem:[#allocation7 + $0x68] sm:$0xf]  ;;  %5194 = vmatpush.bf16.msra.mxu0 %v8216_v21  ;;  %v10569_v21 = vperm.slane %v3334_v25, 0 }
 0x297   :  { %v7836_v56 = vor.u32 %v9466_v61, %v7835_v20  ;;  %v9547_v20 = vld [vmem:[#allocation7 + $0x304] sm:$0xf]  ;;  %v8523_v25 = vld [vmem:[#allocation7 + $0x5c8] sm:$0xf] }
 0x298   :  { %5181 = vmatpush.bf16.msra.mxu2 %v8072_v60  ;;  %v8168_v60 = vor.u32 %v9547_v20, %v8165_v8  ;;  %v3362_v4 = vunpack.c.l.bf16 %v10569_v21  ;;  %v8524_v32 = vor.u32 %v9638_v17, %v8523_v25  ;;  %v8491_v21 = vld [vmem:[#allocation7 + $0x588] sm:$0xf]  ;;  %v9703_v25 = vld [vmem:[#allocation7 + $0x7e4] sm:$0xf]  ;;  %v8789_v17 = vld [vmem:[#allocation7 + $0x7f0] sm:$0xf0] }
 0x299   :  { %5261 = vmatpush.bf16.msra.mxu3 %v7884_v59  ;;  %v3223_v59 = vadd.f32 %v10538_v34, %v10536_v47  ;;  %v3153_v47 = vadd.f32 %v10518_v29, %v3139_v28  ;;  %v3250_v34 = vpop.f32.mrf.mxu3  ;;  %v7948_v29 = vor.u32 %v9494_v11, %v7947_v19  ;;  %v7915_v28 = vld [vmem:[#allocation7 + $0x108] sm:$0xf]  ;;  %v9642_v11 = vld [vmem:[#allocation7 + $0x5f4] sm:$0xf0] }
 0x29a   :  { %5275 = vmatpush.bf16.msra.mxu1 %v8012_v42  ;;  %v7819_v42 = vld [vmem:[#allocation7 + $0x48] sm:$0xf]  ;;  %v3264_v38 = vpop.f32.mrf.mxu2  ;;  %5195 = vmatpush.bf16.msra.mxu0 %v8200_v16 }
 0x29b   :  { %v3237_v37 = vadd.f32 %v3236_v55, %v3223_v59  ;;  %v7820_v43 = vor.u32 %v9462_v24, %v7819_v42  ;;  %v9458_v55 = vld [vmem:[#allocation7 + $0x34] sm:$0xf0]  ;;  %v3167_v62 = vadd.f32 %v10524_v6, %v3153_v47  ;;  %v3225_v6 = vadd.f32 %v10552_v39, %v10550_v36  ;;  %v8411_v42 = vld [vmem:[#allocation7 + $0x4e8] sm:$0xf] }
 0x29c   :  { %5182 = vmatpush.bf16.msra.mxu2 %v8056_v45  ;;  %v9610_v36 = vld [vmem:[#allocation7 + $0x4f4] sm:$0xf0]  ;;  %v8539_v19 = vld [vmem:[#allocation7 + $0x5e8] sm:$0xf] }
 0x29d   :  { %5262 = vmatpush.bf16.msra.mxu3 %v7868_v2  ;;  %v9551_v2 = vld [vmem:[#allocation7 + $0x324] sm:$0xf]  ;;  %v3181_v7 = vadd.f32 %v10532_v0, %v3167_v62  ;;  %v3155_v0 = vadd.f32 %v10530_v3, %v3141_v13  ;;  %v3239_v12 = vadd.f32 %v3238_v48, %v3225_v6  ;;  %v3292_v59 = vpop.f32.mrf.mxu1  ;;  %v3363_v48 = vunpack.c.l.bf16 %v10571_v54  ;;  %v8395_v45 = vld [vmem:[#allocation7 + $0x4c8] sm:$0xf]  ;;  %v9630_v54 = vld [vmem:[#allocation7 + $0x594] sm:$0xf0] }
 0x29e   :  { %5276 = vmatpush.bf16.msra.mxu1 %v7996_v52  ;;  %v3251_v52 = vadd.f32 %v3250_v34, %v3237_v37  ;;  %v8184_v14 = vor.u32 %v9551_v2, %v8181_v46  ;;  %v8412_v47 = vor.u32 %v9610_v36, %v8411_v42  ;;  %v8540_v34 = vor.u32 %v9642_v11, %v8539_v19  ;;  %v9606_v46 = vld [vmem:[#allocation7 + $0x4d4] sm:$0xf0]  ;;  %v8475_v42 = vld [vmem:[#allocation7 + $0x568] sm:$0xf]  ;;  %v7885_v11 = vld [vmem:[#allocation7 + $0xd8] sm:$0xf0] }
 0x29f   :  { %v3195_v39 = vadd.f32 %v10516_v33, %v3181_v7  ;;  %v3169_v16 = vadd.f32 %v10534_v44, %v3155_v0  ;;  %v3280_v44 = vpop.f32.mrf.mxu0  ;;  %v8492_v58 = vor.u32 %v9630_v54, %v8491_v21  ;;  %v9626_v36 = vld [vmem:[#allocation7 + $0x574] sm:$0xf0]  ;;  %v8427_v54 = vld [vmem:[#allocation7 + $0x508] sm:$0xf] }
 0x2a0   :  { %v3265_v35 = vadd.f32 %v3264_v38, %v3251_v52  ;;  %5196 = vmatpush.bf16.msra.mxu0 %v8184_v14  ;;  %v9602_v14 = vld [vmem:[#allocation7 + $0x4b4] sm:$0xf0]  ;;  %v8476_v19 = vor.u32 %v9626_v36, %v8475_v42  ;;  %v8629_v42 = vld [vmem:[#allocation7 + $0x6b0] sm:$0xf0]  ;;  %v9695_v36 = vld [vmem:[#allocation7 + $0x7a4] sm:$0xf] }
 0x2a1   :  { %5263 = vmatpush.bf16.msra.mxu3 %v7852_v15  ;;  %v9515_v15 = vld [vmem:[#allocation7 + $0x204] sm:$0xf]  ;;  %v3252_v24 = vpop.f32.mrf.mxu3  ;;  %v3183_v52 = vadd.f32 %v10546_v51, %v3169_v16  ;;  %v8380_v7 = vor.u32 %v9602_v14, %v8379_v30  ;;  %v9582_v21 = vld [vmem:[#allocation7 + $0x414] sm:$0xf0] }
 0x2a2   :  { %5277 = vmatpush.bf16.msra.mxu1 %v7980_v40  ;;  %v7804_v40 = vor.u32 %v9458_v55, %v7803_v22  ;;  %v8040_v61 = vor.u32 %v9515_v15, %v8037_v31  ;;  %v3279_v1 = vadd.f32 %v3278_v10, %v3265_v35  ;;  %v3253_v37 = vadd.f32 %v3252_v24, %v3239_v12  ;;  %v3266_v18 = vpop.f32.mrf.mxu2  ;;  %v8507_v15 = vld [vmem:[#allocation7 + $0x5a8] sm:$0xf]  ;;  %v9634_v31 = vld [vmem:[#allocation7 + $0x5b4] sm:$0xf0] }
 0x2a3   :  { %v8396_v10 = vor.u32 %v9606_v46, %v8395_v45  ;;  %v3197_v13 = vadd.f32 %v10528_v63, %v3183_v52  ;;  %v8508_v6 = vor.u32 %v9634_v31, %v8507_v15  ;;  %v9667_v15 = vld [vmem:[#allocation7 + $0x6c4] sm:$0xf]  ;;  %v8645_v31 = vld [vmem:[#allocation7 + $0x6d0] sm:$0xf0] }
 0x2a4   :  { %5183 = vmatpush.bf16.msra.mxu2 %v8040_v61  ;;  %5197 = vmatpush.bf16.msra.mxu0 %v8168_v60  ;;  %v3267_v33 = vadd.f32 %v3266_v18, %v3253_v37  ;;  %v9594_v60 = vld [vmem:[#allocation7 + $0x474] sm:$0xf0] }
 0x2a5   :  { %5264 = vmatpush.bf16.msra.mxu3 %v7836_v56  ;;  %v9486_v56 = vld [vmem:[#allocation7 + $0x114] sm:$0xf0] }
 0x2a6   :  { %5278 = vmatpush.bf16.msra.mxu1 %v7964_v50  ;;  %v3293_v50 = vadd.f32 %v3292_v59, %v3279_v1  ;;  %v7916_v2 = vor.u32 %v9486_v56, %v7915_v28  ;;  %v3281_v22 = vadd.f32 %v3280_v44, %v3267_v33  ;;  %v9598_v1 = vld [vmem:[#allocation7 + $0x494] sm:$0xf0]  ;;  %v8347_v28 = vld [vmem:[#allocation7 + $0x468] sm:$0xf] }
 0x2a7   :  { %v8348_v24 = vor.u32 %v9594_v60, %v8347_v28  ;;  %v9622_v18 = vld [vmem:[#allocation7 + $0x554] sm:$0xf0]  ;;  %v8029_v28 = vld [vmem:[#allocation7 + $0x1f8] sm:$0xf0]  ;;  %v8648_v60 = vor.u32 %v9667_v15, %v8645_v31  ;;  %v9683_v15 = vld [vmem:[#allocation7 + $0x744] sm:$0xf] }
 0x2a8   :  { %v3300_v3 = vpack.c.bf16 %v3293_v50, %v3195_v39  ;;  %v8709_v31 = vld [vmem:[#allocation7 + $0x750] sm:$0xf0] }
 0x2a9   :  { %5265 = vmatpush.bf16.msra.mxu3 %v7820_v43 }
 0x2aa   :  { %5279 = vmatpush.bf16.msra.mxu1 %v7948_v29  ;;  %v3346_v38 = vunpack.c.l.bf16 %v3300_v3  ;;  %v3347_v43 = vunpack.c.h.bf16 %v3300_v3  ;;  %v3294_v29 = vpop.f32.mrf.mxu1  ;;  %v9590_v3 = vld [vmem:[#allocation7 + $0x454] sm:$0xf0] }
 0x2ab   :  { %v3295_v35 = vadd.f32 %v3294_v29, %v3281_v22  ;;  %v8315_v22 = vld [vmem:[#allocation7 + $0x428] sm:$0xf]  ;;  %v9618_v29 = vld [vmem:[#allocation7 + $0x534] sm:$0xf0] }
 0x2ac   :  { %v3370_v55 = vadd.f32 %v3362_v4, %v3346_v38  ;;  %v3371_v62 = vadd.f32 %v3363_v48, %v3347_v43  ;;  %v9671_v38 = vld [vmem:[#allocation7 + $0x6e4] sm:$0xf]  ;;  %v8661_v43 = vld [vmem:[#allocation7 + $0x6f0] sm:$0xf0] }
 0x2ad   :  { %5266 = vmatpush.bf16.msra.mxu3 %v7804_v40  ;;  %v3304_v20 = vpack.c.bf16 %v3295_v35, %v3197_v13  ;;  %v8363_v40 = vld [vmem:[#allocation7 + $0x488] sm:$0xf]  ;;  %v8792_v35 = vor.u32 %v9703_v25, %v8789_v17  ;;  %v8597_v25 = vld [vmem:[#allocation7 + $0x670] sm:$0xf0]  ;;  %v9687_v17 = vld [vmem:[#allocation7 + $0x764] sm:$0xf] }
 0x2ae   :  { %5280 = vmatpush.bf16.msra.mxu1 %v7932_v49  ;;  %v3383_v51 = vpack.c.bf16 %v3371_v62, %v3370_v55  ;;  %v8364_v53 = vor.u32 %v9598_v1, %v8363_v40  ;;  %v9586_v62 = vld [vmem:[#allocation7 + $0x434] sm:$0xf0]  ;;  %v8299_v1 = vld [vmem:[#allocation7 + $0x408] sm:$0xf] }
 0x2af   :  { %v3354_v63 = vunpack.c.l.bf16 %v3304_v20  ;;  %v3355_v49 = vunpack.c.h.bf16 %v3304_v20  ;;  %v9699_v20 = vld [vmem:[#allocation7 + $0x7c4] sm:$0xf] }
 0x2b0   :  { %v3394_v61 = vunpack.c.l.bf16 %v3383_v51  ;;  %v3395_v8 = vunpack.c.h.bf16 %v3383_v51 }
 0x2b1   :  { %5267 = vmatpush.bf16.msra.mxu3 %v7788_v57  ;;  %v3378_v59 = vadd.f32 %v3362_v4, %v3354_v63  ;;  %v3379_v56 = vadd.f32 %v3363_v48, %v3355_v49  ;;  %v8331_v4 = vld [vmem:[#allocation7 + $0x448] sm:$0xf]  ;;  %v9614_v63 = vld [vmem:[#allocation7 + $0x514] sm:$0xf0]  ;;  %v9480_v49 = vld [vmem:[#allocation7 + $0xec] sm:$0xf] }
 0x2b2   :  { %5281 = vmatpush.bf16.msra.mxu1 %v7916_v2  ;;  %v3426_v0 = vmul.f32 0.20019531, %v3394_v61  ;;  %v3427_v12 = vmul.f32 0.20019531, %v3395_v8  ;;  %vm10582_vm3 = vcmp.gt.f32.partialorder %v3394_v61, 0.0  ;;  %vm10586_vm4 = vcmp.gt.f32.partialorder %v3395_v8, 0.0  ;;  %v8459_v48 = vld [vmem:[#allocation7 + $0x548] sm:$0xf] }
 0x2b3   :  { %v3387_v39 = vpack.c.bf16 %v3379_v56, %v3378_v59  ;;  %vm3447_vm7 = vmpackc.low %vm10586_vm4, %vm10582_vm3  ;;  %v8332_v45 = vor.u32 %v9590_v3, %v8331_v4  ;;  %v8460_v44 = vor.u32 %v9622_v18, %v8459_v48  ;;  %v8316_v61 = vor.u32 %v9586_v62, %v8315_v22  ;;  %v9659_v3 = vld [vmem:[#allocation7 + $0x684] sm:$0xf]  ;;  %v8613_v48 = vld [vmem:[#allocation7 + $0x690] sm:$0xf0] }
 0x2b4   :  { %5268 = vmatmul.bf16.vlgmr.msra.gmra.mxu3 %v10442_v41  ;;  %v3439_v16 = vpack.c.bf16 %v3427_v12, %v3426_v0  ;;  %v9663_v12 = vld [vmem:[#allocation7 + $0x6a4] sm:$0xf]  ;;  %v8300_v59 = vor.u32 %v9582_v21, %v8299_v1  ;;  %v8428_v56 = vor.u32 %v9614_v63, %v8427_v54  ;;  %v8741_v2 = vld [vmem:[#allocation7 + $0x790] sm:$0xf0]  ;;  %v9496_v1 = vld [vmem:[#allocation7 + $0x16c] sm:$0xf]  ;;  %v8712_v63 = vor.u32 %v9683_v15, %v8709_v31 }
 0x2b5   :  { %5316 = vmatpush.bf16.msrb.mxu3 %v8412_v47  ;;  %5282 = vmatmul.bf16.vlgmr.msra.gmra.mxu1 %v10444_v27  ;;  %v3402_v37 = vunpack.c.l.bf16 %v3387_v39  ;;  %v3403_v57 = vunpack.c.h.bf16 %v3387_v39  ;;  %v9691_v18 = vld [vmem:[#allocation7 + $0x784] sm:$0xf]  ;;  %v8725_v22 = vld [vmem:[#allocation7 + $0x770] sm:$0xf0]  ;;  %v7965_v21 = vld [vmem:[#allocation7 + $0x178] sm:$0xf0] }
 0x2b6   :  { %5330 = vmatpush.bf16.msrb.mxu1 %v8540_v34  ;;  %v3455_v46 = vsel %vm3447_vm7, %v3383_v51, %v3439_v16  ;;  %v8664_v51 = vor.u32 %v9671_v38, %v8661_v43  ;;  %v9508_v16 = vld [vmem:[#allocation7 + $0x1cc] sm:$0xf]  ;;  %v8744_v38 = vor.u32 %v9691_v18, %v8741_v2  ;;  %v9655_v43 = vld [vmem:[#allocation7 + $0x664] sm:$0xf]  ;;  %v7805_v2 = vld [vmem:[#allocation7 + $0x38] sm:$0xf0] }
 0x2b7   :  { %vm10590_vm5 = vcmp.gt.f32.partialorder %v3402_v37, 0.0  ;;  %vm10594_vm6 = vcmp.gt.f32.partialorder %v3403_v57, 0.0  ;;  %v3434_v33 = vmul.f32 0.20019531, %v3402_v37  ;;  %v3435_v34 = vmul.f32 0.20019531, %v3403_v57  ;;  %v8013_v37 = vld [vmem:[#allocation7 + $0x1d8] sm:$0xf0] }
 0x2b8   :  { %vm3451_vm8 = vmpackc.low %vm10594_vm6, %vm10590_vm5  ;;  %v3731_v14 = vunpack.c.h.b16 %v3455_v46  ;;  %v8632_v57 = vor.u32 %v9663_v12, %v8629_v42  ;;  %v9460_v12 = vld [vmem:[#allocation7 + $0x4c] sm:$0xf]  ;;  %v7949_v42 = vld [vmem:[#allocation7 + $0x158] sm:$0xf0] }
 0x2b9   :  { %5317 = vmatpush.bf16.msrb.mxu3 %v8396_v10  ;;  %v3443_v52 = vpack.c.bf16 %v3435_v34, %v3434_v33  ;;  %v8443_v10 = vld [vmem:[#allocation7 + $0x528] sm:$0xf]  ;;  %v8016_v33 = vor.u32 %v9508_v16, %v8013_v37  ;;  %v9472_v34 = vld [vmem:[#allocation7 + $0xac] sm:$0xf]  ;;  %v9546_v37 = vld [vmem:[#allocation7 + $0x2f4] sm:$0xf0] }
 0x2ba   :  { %5331 = vmatpush.bf16.msrb.mxu1 %v8524_v32  ;;  %v3730_v32 = vunpack.c.l.b16 %v3455_v46  ;;  %v8444_v8 = vor.u32 %v9618_v29, %v8443_v10  ;;  %v9504_v46 = vld [vmem:[#allocation7 + $0x1ac] sm:$0xf]  ;;  %v7853_v29 = vld [vmem:[#allocation7 + $0x98] sm:$0xf0]  ;;  %v8155_v16 = vld [vmem:[#allocation7 + $0x2e8] sm:$0xf] }
 0x2bb   :  { %v3459_v55 = vsel %vm3451_vm8, %v3387_v39, %v3443_v52  ;;  %v8757_v39 = vld [vmem:[#allocation7 + $0x7b0] sm:$0xf0]  ;;  %v7997_v52 = vld [vmem:[#allocation7 + $0x1b8] sm:$0xf0]  ;;  %v9468_v10 = vld [vmem:[#allocation7 + $0x8c] sm:$0xf] }
 0x2bc   :  { %v3738_v30 = vunpack.c.l.b16 %v3459_v55  ;;  %v3739_v13 = vunpack.c.h.b16 %v3459_v55  ;;  %v8760_v4 = vor.u32 %v9695_v36, %v8757_v39  ;;  %v8000_v62 = vor.u32 %v9504_v46, %v7997_v52  ;;  %v9456_v18 = vld [vmem:[#allocation7 + $0x2c] sm:$0xf]  ;;  %v8123_v15 = vld [vmem:[#allocation7 + $0x2a8] sm:$0xf] }
 0x2bd   :  { %5318 = vmatpush.bf16.msrb.mxu3 %v8380_v7  ;;  %v8156_v46 = vor.u32 %v9546_v37, %v8155_v16  ;;  %v8091_v16 = vld [vmem:[#allocation7 + $0x268] sm:$0xf]  ;;  %v9530_v37 = vld [vmem:[#allocation7 + $0x274] sm:$0xf0] }
 0x2be   :  { %5332 = vmatpush.bf16.msrb.mxu1 %v8508_v6  ;;  %v10606_v7 = vpack.c.b16 %v3738_v30, %v3730_v32  ;;  %v10608_v40 = vpack.c.b16 %v3739_v13, %v3731_v14  ;;  %v8773_v6 = vld [vmem:[#allocation7 + $0x7d0] sm:$0xf0]  ;;  %v9500_v32 = vld [vmem:[#allocation7 + $0x18c] sm:$0xf]  ;;  %v7981_v30 = vld [vmem:[#allocation7 + $0x198] sm:$0xf0]  ;;  %v8600_v14 = vor.u32 %v9655_v43, %v8597_v25  ;;  %v8728_v13 = vor.u32 %v9687_v17, %v8725_v22 }
 0x2bf   :  { %v8776_v0 = vor.u32 %v9699_v20, %v8773_v6  ;;  %v7856_v20 = vor.u32 %v9468_v10, %v7853_v29  ;;  %v7837_v6 = vld [vmem:[#allocation7 + $0x78] sm:$0xf0]  ;;  %v8267_v43 = vld [vmem:[#allocation7 + $0x3c8] sm:$0xf]  ;;  %v7808_v25 = vor.u32 %v9456_v18, %v7805_v2  ;;  %v9574_v22 = vld [vmem:[#allocation7 + $0x3d4] sm:$0xf0] }
 0x2c0   :  { %5128 = vmatmul.bf16.vlgmr.msrb.gmra.mxu2 %v10606_v7  ;;  %5142 = vmatmul.bf16.vlgmr.msrb.gmra.mxu0 %v10608_v40  ;;  %v9484_v10 = vld [vmem:[#allocation7 + $0x10c] sm:$0xf]  ;;  %v7917_v29 = vld [vmem:[#allocation7 + $0x118] sm:$0xf0] }
 0x2c1   :  { %5319 = vmatpush.bf16.msrb.mxu3 %v8364_v53  ;;  %v7901_v53 = vld [vmem:[#allocation7 + $0xf8] sm:$0xf0]  ;;  %5232 = vmatpush.bf16.msrb.mxu2 %v8664_v51  ;;  %v9651_v51 = vld [vmem:[#allocation7 + $0x644] sm:$0xf]  ;;  %v9596_v18 = vld [vmem:[#allocation7 + $0x48c] sm:$0xf] }
 0x2c2   :  { %5333 = vmatpush.bf16.msrb.mxu1 %v8492_v58  ;;  %v9512_v58 = vld [vmem:[#allocation7 + $0x1ec] sm:$0xf]  ;;  %5246 = vmatpush.bf16.msrb.mxu0 %v8792_v35  ;;  %v7904_v50 = vor.u32 %v9480_v49, %v7901_v53  ;;  %v8581_v35 = vld [vmem:[#allocation7 + $0x650] sm:$0xf0]  ;;  %v9647_v49 = vld [vmem:[#allocation7 + $0x624] sm:$0xf] }
 0x2c3   :  { %v8584_v54 = vor.u32 %v9651_v51, %v8581_v35  ;;  %v8565_v53 = vld [vmem:[#allocation7 + $0x630] sm:$0xf0]  ;;  %v8268_v35 = vor.u32 %v9574_v22, %v8267_v43  ;;  %v8365_v2 = vld [vmem:[#allocation7 + $0x498] sm:$0xf0]  ;;  %v9592_v43 = vld [vmem:[#allocation7 + $0x46c] sm:$0xf] }
 0x2c4   :  { %v8568_v36 = vor.u32 %v9647_v49, %v8565_v53  ;;  %v9636_v49 = vld [vmem:[#allocation7 + $0x5cc] sm:$0xf]  ;;  %v8525_v53 = vld [vmem:[#allocation7 + $0x5d8] sm:$0xf0] }
 0x2c5   :  { %5320 = vmatpush.bf16.msrb.mxu3 %v8348_v24  ;;  %v8032_v24 = vor.u32 %v9512_v58, %v8029_v28  ;;  %5233 = vmatpush.bf16.msrb.mxu2 %v8648_v60  ;;  %v9679_v58 = vld [vmem:[#allocation7 + $0x724] sm:$0xf]  ;;  %v8693_v28 = vld [vmem:[#allocation7 + $0x730] sm:$0xf0]  ;;  %v8477_v22 = vld [vmem:[#allocation7 + $0x578] sm:$0xf0] }
 0x2c6   :  { %5334 = vmatpush.bf16.msrb.mxu1 %v8476_v19  ;;  %v9476_v19 = vld [vmem:[#allocation7 + $0xcc] sm:$0xf]  ;;  %5247 = vmatpush.bf16.msrb.mxu0 %v8776_v0  ;;  %v7968_v0 = vor.u32 %v9496_v1, %v7965_v21  ;;  %v8696_v39 = vor.u32 %v9679_v58, %v8693_v28 }
 0x2c7   :  { %v7888_v47 = vor.u32 %v9476_v19, %v7885_v11  ;;  %v9675_v19 = vld [vmem:[#allocation7 + $0x704] sm:$0xf]  ;;  %v8677_v11 = vld [vmem:[#allocation7 + $0x710] sm:$0xf0] }
 0x2c9   :  { %5321 = vmatpush.bf16.msrb.mxu3 %v8332_v45  ;;  %v7869_v45 = vld [vmem:[#allocation7 + $0xb8] sm:$0xf0]  ;;  %5234 = vmatpush.bf16.msrb.mxu2 %v8632_v57 }
 0x2ca   :  { %5335 = vmatpush.bf16.msrb.mxu1 %v8460_v44  ;;  %5248 = vmatpush.bf16.msrb.mxu0 %v8760_v4  ;;  %v8616_v44 = vor.u32 %v9659_v3, %v8613_v48  ;;  %v7872_v55 = vor.u32 %v9472_v34, %v7869_v45  ;;  %v8283_v3 = vld [vmem:[#allocation7 + $0x3e8] sm:$0xf]  ;;  %v9578_v48 = vld [vmem:[#allocation7 + $0x3f4] sm:$0xf0]  ;;  %v8680_v45 = vor.u32 %v9675_v19, %v8677_v11 }
 0x2cb   :  { %v8284_v52 = vor.u32 %v9578_v48, %v8283_v3 }
 0x2cd   :  { %5322 = vmatpush.bf16.msrb.mxu3 %v8316_v61  ;;  %5235 = vmatpush.bf16.msrb.mxu2 %v8616_v44  ;;  %v7984_v61 = vor.u32 %v9500_v32, %v7981_v30  ;;  %v8139_v44 = vld [vmem:[#allocation7 + $0x2c8] sm:$0xf]  ;;  %v9608_v32 = vld [vmem:[#allocation7 + $0x4ec] sm:$0xf]  ;;  %v8413_v30 = vld [vmem:[#allocation7 + $0x4f8] sm:$0xf0] }
 0x2ce   :  { %5336 = vmatpush.bf16.msrb.mxu1 %v8444_v8  ;;  %5249 = vmatpush.bf16.msrb.mxu0 %v8744_v38  ;;  %v9464_v8 = vld [vmem:[#allocation7 + $0x6c] sm:$0xf]  ;;  %v9542_v38 = vld [vmem:[#allocation7 + $0x2d4] sm:$0xf0]  ;;  %v8416_v1 = vor.u32 %v9608_v32, %v8413_v30  ;;  %v8187_v32 = vld [vmem:[#allocation7 + $0x328] sm:$0xf] }
 0x2cf   :  { %v7840_v60 = vor.u32 %v9464_v8, %v7837_v6  ;;  %v8140_v51 = vor.u32 %v9542_v38, %v8139_v44  ;;  %v8251_v8 = vld [vmem:[#allocation7 + $0x3a8] sm:$0xf]  ;;  %v9570_v6 = vld [vmem:[#allocation7 + $0x3b4] sm:$0xf0] }
 0x2d0   :  { %5184 = vmatmul.bf16.vlgmr.msra.gmra.mxu2 %v10446_v9  ;;  %5198 = vmatmul.bf16.vlgmr.msra.gmra.mxu0 %v10449_v23  ;;  %v8252_v28 = vor.u32 %v9570_v6, %v8251_v8  ;;  %v9558_v44 = vld [vmem:[#allocation7 + $0x354] sm:$0xf0]  ;;  %v8043_v8 = vld [vmem:[#allocation7 + $0x208] sm:$0xf] }
 0x2d1   :  { %5323 = vmatpush.bf16.msrb.mxu3 %v8300_v59  ;;  %5236 = vmatpush.bf16.msrb.mxu2 %v8600_v14  ;;  %v7821_v59 = vld [vmem:[#allocation7 + $0x58] sm:$0xf0]  ;;  %v9640_v14 = vld [vmem:[#allocation7 + $0x5ec] sm:$0xf]  ;;  %v9554_v30 = vld [vmem:[#allocation7 + $0x334] sm:$0xf0] }
 0x2d2   :  { %5337 = vmatpush.bf16.msrb.mxu1 %v8428_v56  ;;  %5250 = vmatpush.bf16.msrb.mxu0 %v8728_v13  ;;  %v9492_v56 = vld [vmem:[#allocation7 + $0x14c] sm:$0xf]  ;;  %v7824_v57 = vor.u32 %v9460_v12, %v7821_v59  ;;  %v8541_v13 = vld [vmem:[#allocation7 + $0x5f8] sm:$0xf0]  ;;  %v8235_v12 = vld [vmem:[#allocation7 + $0x388] sm:$0xf] }
 0x2d3   :  { %v7952_v4 = vor.u32 %v9492_v56, %v7949_v42  ;;  %v8544_v21 = vor.u32 %v9640_v14, %v8541_v13  ;;  %v9566_v59 = vld [vmem:[#allocation7 + $0x394] sm:$0xf0]  ;;  %v8528_v42 = vor.u32 %v9636_v49, %v8525_v53 }
 0x2d4   :  { %5324 = vmatmul.bf16.vlgmr.msrb.gmra.mxu3 %v10504_v5  ;;  %v8236_v11 = vor.u32 %v9566_v59, %v8235_v12  ;;  %v9518_v6 = vld [vmem:[#allocation7 + $0x214] sm:$0xf0]  ;;  %v9616_v12 = vld [vmem:[#allocation7 + $0x52c] sm:$0xf]  ;;  %v8445_v59 = vld [vmem:[#allocation7 + $0x538] sm:$0xf0] }
 0x2d5   :  { %5372 = vmatpush.bf16.msra.mxu3 %v7904_v50  ;;  %5338 = vmatmul.bf16.vlgmr.msrb.gmra.mxu1 %v10506_v26  ;;  %v9643_v50 = vld [vmem:[#allocation7 + $0x604] sm:$0xf] }
 0x2d6   :  { %5386 = vmatpush.bf16.msra.mxu1 %v8032_v24  ;;  %5237 = vmatpush.bf16.msrb.mxu2 %v8584_v54  ;;  %v8549_v24 = vld [vmem:[#allocation7 + $0x610] sm:$0xf0]  ;;  %v9604_v54 = vld [vmem:[#allocation7 + $0x4cc] sm:$0xf] }
 0x2d7   :  { %5251 = vmatpush.bf16.msrb.mxu0 %v8712_v63  ;;  %v8552_v34 = vor.u32 %v9643_v50, %v8549_v24  ;;  %v8397_v63 = vld [vmem:[#allocation7 + $0x4d8] sm:$0xf0]  ;;  %v9632_v50 = vld [vmem:[#allocation7 + $0x5ac] sm:$0xf] }
 0x2d8   :  { %v8400_v56 = vor.u32 %v9604_v54, %v8397_v63  ;;  %v8509_v24 = vld [vmem:[#allocation7 + $0x5b8] sm:$0xf0]  ;;  %v8667_v54 = vld [vmem:[#allocation7 + $0x6e8] sm:$0xf]  ;;  %v9674_v63 = vld [vmem:[#allocation7 + $0x6f4] sm:$0xf0] }
 0x2d9   :  { %5373 = vmatpush.bf16.msra.mxu3 %v7888_v47  ;;  %v9488_v47 = vld [vmem:[#allocation7 + $0x12c] sm:$0xf]  ;;  %v8512_v48 = vor.u32 %v9632_v50, %v8509_v24  ;;  %v8651_v50 = vld [vmem:[#allocation7 + $0x6c8] sm:$0xf]  ;;  %v9670_v24 = vld [vmem:[#allocation7 + $0x6d4] sm:$0xf0] }
 0x2da   :  { %5387 = vmatpush.bf16.msra.mxu1 %v8016_v33  ;;  %v7933_v33 = vld [vmem:[#allocation7 + $0x138] sm:$0xf0]  ;;  %5238 = vmatpush.bf16.msrb.mxu2 %v8568_v36  ;;  %v9600_v36 = vld [vmem:[#allocation7 + $0x4ac] sm:$0xf] }
 0x2db   :  { %5252 = vmatpush.bf16.msrb.mxu0 %v8696_v39  ;;  %v7936_v17 = vor.u32 %v9488_v47, %v7933_v33  ;;  %v8381_v39 = vld [vmem:[#allocation7 + $0x4b8] sm:$0xf0]  ;;  %v9628_v47 = vld [vmem:[#allocation7 + $0x58c] sm:$0xf] }
 0x2dc   :  { %v8384_v3 = vor.u32 %v9600_v36, %v8381_v39  ;;  %v8493_v33 = vld [vmem:[#allocation7 + $0x598] sm:$0xf0]  ;;  %v8668_v36 = vor.u32 %v9674_v63, %v8667_v54  ;;  %v8683_v54 = vld [vmem:[#allocation7 + $0x708] sm:$0xf]  ;;  %v9678_v63 = vld [vmem:[#allocation7 + $0x714] sm:$0xf0] }
 0x2dd   :  { %5374 = vmatpush.bf16.msra.mxu3 %v7872_v55  ;;  %v9452_v55 = vld [vmem:[#allocation7 + $0xc] sm:$0xf]  ;;  %v8496_v38 = vor.u32 %v9628_v47, %v8493_v33  ;;  %v8635_v47 = vld [vmem:[#allocation7 + $0x6a8] sm:$0xf] }
 0x2de   :  { %5388 = vmatpush.bf16.msra.mxu1 %v8000_v62  ;;  %v7789_v62 = vld [vmem:[#allocation7 + $0x18] sm:$0xf0]  ;;  %5239 = vmatpush.bf16.msrb.mxu2 %v8552_v34  ;;  %v8092_v34 = vor.u32 %v9530_v37, %v8091_v16  ;;  %v8779_v16 = vld [vmem:[#allocation7 + $0x7c8] sm:$0xf]  ;;  %v9702_v37 = vld [vmem:[#allocation7 + $0x7d4] sm:$0xf0] }
 0x2df   :  { %5253 = vmatpush.bf16.msrb.mxu0 %v8680_v45  ;;  %v7792_v31 = vor.u32 %v9452_v55, %v7789_v62 }
 0x2e1   :  { %5375 = vmatpush.bf16.msra.mxu3 %v7856_v20  ;;  %v7920_v20 = vor.u32 %v9484_v10, %v7917_v29  ;;  %5240 = vmatmul.bf16.vlgmr.msrb.gmra.mxu2 %v10606_v7  ;;  %v8059_v10 = vld [vmem:[#allocation7 + $0x228] sm:$0xf]  ;;  %v9522_v29 = vld [vmem:[#allocation7 + $0x234] sm:$0xf0] }
 0x2e2   :  { %5389 = vmatpush.bf16.msra.mxu1 %v7984_v61  ;;  %5288 = vmatpush.bf16.msra.mxu2 %v8156_v46  ;;  %v9538_v61 = vld [vmem:[#allocation7 + $0x2b4] sm:$0xf0]  ;;  %v8075_v46 = vld [vmem:[#allocation7 + $0x248] sm:$0xf] }
 0x2e3   :  { %5302 = vmatpush.bf16.msra.mxu0 %v8284_v52  ;;  %v8124_v58 = vor.u32 %v9538_v61, %v8123_v15  ;;  %v9526_v52 = vld [vmem:[#allocation7 + $0x254] sm:$0xf0]  ;;  %v9620_v15 = vld [vmem:[#allocation7 + $0x54c] sm:$0xf]  ;;  %v8188_v61 = vor.u32 %v9554_v30, %v8187_v32 }
 0x2e4   :  { %5254 = vmatmul.bf16.vlgmr.msrb.gmra.mxu0 %v10608_v40  ;;  %v8076_v55 = vor.u32 %v9526_v52, %v8075_v46  ;;  %v8763_v46 = vld [vmem:[#allocation7 + $0x7a8] sm:$0xf]  ;;  %v9698_v52 = vld [vmem:[#allocation7 + $0x7b4] sm:$0xf0] }
 0x2e5   :  { %5376 = vmatpush.bf16.msra.mxu3 %v7840_v60  ;;  %v8107_v60 = vld [vmem:[#allocation7 + $0x288] sm:$0xf] }
 0x2e6   :  { %5390 = vmatpush.bf16.msra.mxu1 %v7968_v0  ;;  %5289 = vmatpush.bf16.msra.mxu2 %v8140_v51  ;;  %v9534_v0 = vld [vmem:[#allocation7 + $0x294] sm:$0xf0]  ;;  %v9588_v51 = vld [vmem:[#allocation7 + $0x44c] sm:$0xf] }
 0x2e7   :  { %5303 = vmatpush.bf16.msra.mxu0 %v8268_v35  ;;  %v8108_v19 = vor.u32 %v9534_v0, %v8107_v60  ;;  %v8333_v35 = vld [vmem:[#allocation7 + $0x458] sm:$0xf0]  ;;  %v9584_v60 = vld [vmem:[#allocation7 + $0x42c] sm:$0xf] }
 0x2e8   :  { %v8336_v49 = vor.u32 %v9588_v51, %v8333_v35  ;;  %v8317_v0 = vld [vmem:[#allocation7 + $0x438] sm:$0xf0]  ;;  %v8715_v51 = vld [vmem:[#allocation7 + $0x748] sm:$0xf]  ;;  %v9686_v35 = vld [vmem:[#allocation7 + $0x754] sm:$0xf0] }
 0x2e9   :  { %5377 = vmatpush.bf16.msra.mxu3 %v7824_v57  ;;  %v8219_v57 = vld [vmem:[#allocation7 + $0x368] sm:$0xf] }
 0x2ea   :  { %5391 = vmatpush.bf16.msra.mxu1 %v7952_v4  ;;  %5290 = vmatpush.bf16.msra.mxu2 %v8124_v58  ;;  %v9562_v4 = vld [vmem:[#allocation7 + $0x374] sm:$0xf0]  ;;  %v8795_v58 = vld [vmem:[#allocation7 + $0x7e8] sm:$0xf] }
 0x2eb   :  { %5304 = vmatpush.bf16.msra.mxu0 %v8252_v28  ;;  %v8220_v45 = vor.u32 %v9562_v4, %v8219_v57  ;;  %v9706_v28 = vld [vmem:[#allocation7 + $0x7f4] sm:$0xf0]  ;;  %v9580_v57 = vld [vmem:[#allocation7 + $0x40c] sm:$0xf]  ;;  %v8301_v4 = vld [vmem:[#allocation7 + $0x418] sm:$0xf0] }
 0x2ec   :  { %v8796_v39 = vor.u32 %v9706_v28, %v8795_v58  ;;  %v8304_v33 = vor.u32 %v9580_v57, %v8301_v4  ;;  %v9576_v58 = vld [vmem:[#allocation7 + $0x3ec] sm:$0xf]  ;;  %v8285_v28 = vld [vmem:[#allocation7 + $0x3f8] sm:$0xf0] }
 0x2ed   :  { %5378 = vmatpush.bf16.msra.mxu3 %v7808_v25  ;;  %v8349_v25 = vld [vmem:[#allocation7 + $0x478] sm:$0xf0] }
 0x2ee   :  { %5392 = vmatpush.bf16.msra.mxu1 %v7936_v17  ;;  %5291 = vmatpush.bf16.msra.mxu2 %v8108_v19  ;;  %v9624_v17 = vld [vmem:[#allocation7 + $0x56c] sm:$0xf]  ;;  %v8352_v14 = vor.u32 %v9592_v43, %v8349_v25  ;;  %v8320_v19 = vor.u32 %v9584_v60, %v8317_v0  ;;  %v8747_v43 = vld [vmem:[#allocation7 + $0x788] sm:$0xf]  ;;  %v9694_v25 = vld [vmem:[#allocation7 + $0x794] sm:$0xf0]  ;;  %v8684_v0 = vor.u32 %v9678_v63, %v8683_v54  ;;  %v10636_v63 = vpop.f32.mrf.mxu2 }
 0x2ef   :  { %5305 = vmatpush.bf16.msra.mxu0 %v8236_v11  ;;  %v8480_v13 = vor.u32 %v9624_v17, %v8477_v22  ;;  %v8448_v11 = vor.u32 %v9616_v12, %v8445_v59  ;;  %v8748_v22 = vor.u32 %v9694_v25, %v8747_v43  ;;  %v8288_v59 = vor.u32 %v9576_v58, %v8285_v28  ;;  %v10628_v43 = vpop.f32.mrf.mxu1  ;;  %v8077_v25 = vld [vmem:[#allocation7 + $0x258] sm:$0xf0]  ;;  %v9668_v58 = vld [vmem:[#allocation7 + $0x6cc] sm:$0xf] }
 0x2f0   :  { %v8653_v28 = vld [vmem:[#allocation7 + $0x6d8] sm:$0xf0] }
 0x2f1   :  { %5379 = vmatpush.bf16.msra.mxu3 %v7792_v31  ;;  %v8461_v31 = vld [vmem:[#allocation7 + $0x558] sm:$0xf0] }
 0x2f2   :  { %5393 = vmatpush.bf16.msra.mxu1 %v7920_v20  ;;  %5292 = vmatpush.bf16.msra.mxu2 %v8092_v34  ;;  %v8060_v20 = vor.u32 %v9522_v29, %v8059_v10  ;;  %v8464_v53 = vor.u32 %v9620_v15, %v8461_v31  ;;  %v8731_v10 = vld [vmem:[#allocation7 + $0x768] sm:$0xf]  ;;  %v9690_v29 = vld [vmem:[#allocation7 + $0x774] sm:$0xf0]  ;;  %v8716_v31 = vor.u32 %v9686_v35, %v8715_v51 }
 0x2f3   :  { %5306 = vmatpush.bf16.msra.mxu0 %v8220_v45  ;;  %v9666_v45 = vld [vmem:[#allocation7 + $0x6b4] sm:$0xf0]  ;;  %v8732_v30 = vor.u32 %v9690_v29, %v8731_v10  ;;  %v9520_v10 = vld [vmem:[#allocation7 + $0x22c] sm:$0xf]  ;;  %v8061_v29 = vld [vmem:[#allocation7 + $0x238] sm:$0xf0] }
 0x2f4   :  { %5380 = vmatmul.bf16.vlgmr.msra.gmra.mxu3 %v10442_v41  ;;  %v8203_v41 = vld [vmem:[#allocation7 + $0x348] sm:$0xf]  ;;  %v8064_v51 = vor.u32 %v9520_v10, %v8061_v29  ;;  %v9688_v10 = vld [vmem:[#allocation7 + $0x76c] sm:$0xf]  ;;  %v8733_v29 = vld [vmem:[#allocation7 + $0x778] sm:$0xf0] }
 0x2f5   :  { %5428 = vmatpush.bf16.msrb.mxu3 %v8416_v1  ;;  %5394 = vmatmul.bf16.vlgmr.msra.gmra.mxu1 %v10444_v27  ;;  %v8368_v27 = vor.u32 %v9596_v18, %v8365_v2  ;;  %v8204_v62 = vor.u32 %v9558_v44, %v8203_v41  ;;  %v8171_v1 = vld [vmem:[#allocation7 + $0x308] sm:$0xf]  ;;  %v8652_v18 = vor.u32 %v9670_v24, %v8651_v50 }
 0x2f6   :  { %5442 = vmatpush.bf16.msrb.mxu1 %v8544_v21  ;;  %5293 = vmatpush.bf16.msra.mxu2 %v8076_v55  ;;  %v9550_v21 = vld [vmem:[#allocation7 + $0x314] sm:$0xf0]  ;;  %v8780_v2 = vor.u32 %v9702_v37, %v8779_v16  ;;  %v8636_v41 = vor.u32 %v9666_v45, %v8635_v47  ;;  %v8764_v44 = vor.u32 %v9698_v52, %v8763_v46  ;;  %v8603_v55 = vld [vmem:[#allocation7 + $0x668] sm:$0xf]  ;;  %v9568_v16 = vld [vmem:[#allocation7 + $0x3ac] sm:$0xf]  ;;  %v10626_v45 = vpop.f32.mrf.mxu3 }
 0x2f7   :  { %5307 = vmatpush.bf16.msra.mxu0 %v8204_v62  ;;  %v9658_v62 = vld [vmem:[#allocation7 + $0x674] sm:$0xf0]  ;;  %v8253_v37 = vld [vmem:[#allocation7 + $0x3b8] sm:$0xf0]  ;;  %v9560_v52 = vld [vmem:[#allocation7 + $0x36c] sm:$0xf] }
 0x2f8   :  { %v8604_v32 = vor.u32 %v9658_v62, %v8603_v55  ;;  %v8256_v4 = vor.u32 %v9568_v16, %v8253_v37  ;;  %v8093_v46 = vld [vmem:[#allocation7 + $0x278] sm:$0xf0]  ;;  %v8923_v16 = vld [vmem:[#allocation10 + $0xf0] sm:$0xf] }
 0x2f9   :  { %5429 = vmatpush.bf16.msrb.mxu3 %v8400_v56  ;;  %v8044_v56 = vor.u32 %v9518_v6, %v8043_v8  ;;  %v9682_v8 = vld [vmem:[#allocation7 + $0x734] sm:$0xf0] }
 0x2fa   :  { %5443 = vmatpush.bf16.msrb.mxu1 %v8528_v42  ;;  %5294 = vmatpush.bf16.msra.mxu2 %v8060_v20  ;;  %v8172_v42 = vor.u32 %v9550_v21, %v8171_v1  ;;  %v8571_v20 = vld [vmem:[#allocation7 + $0x628] sm:$0xf]  ;;  %v9646_v21 = vld [vmem:[#allocation7 + $0x614] sm:$0xf0] }
 0x2fb   :  { %5308 = vmatpush.bf16.msra.mxu0 %v8188_v61  ;;  %v9650_v61 = vld [vmem:[#allocation7 + $0x634] sm:$0xf0]  ;;  %v8555_v1 = vld [vmem:[#allocation7 + $0x608] sm:$0xf] }
 0x2fc   :  { %v8556_v60 = vor.u32 %v9646_v21, %v8555_v1  ;;  %v10634_v1 = vpop.f32.mrf.mxu1 }
 0x2fd   :  { %5430 = vmatpush.bf16.msrb.mxu3 %v8384_v3  ;;  %v9612_v3 = vld [vmem:[#allocation7 + $0x50c] sm:$0xf] }
 0x2fe   :  { %5444 = vmatpush.bf16.msrb.mxu1 %v8512_v48  ;;  %v8429_v48 = vld [vmem:[#allocation7 + $0x518] sm:$0xf0]  ;;  %5295 = vmatpush.bf16.msra.mxu2 %v8044_v56  ;;  %v9540_v56 = vld [vmem:[#allocation7 + $0x2cc] sm:$0xf] }
 0x2ff   :  { %5309 = vmatpush.bf16.msra.mxu0 %v8172_v42  ;;  %v8432_v34 = vor.u32 %v9612_v3, %v8429_v48  ;;  %v8141_v42 = vld [vmem:[#allocation7 + $0x2d8] sm:$0xf0]  ;;  %v9532_v3 = vld [vmem:[#allocation7 + $0x28c] sm:$0xf] }
 0x300   :  { %v8144_v50 = vor.u32 %v9540_v56, %v8141_v42  ;;  %v8109_v48 = vld [vmem:[#allocation7 + $0x298] sm:$0xf0]  ;;  %v8656_v42 = vor.u32 %v9668_v58, %v8653_v28 }
 0x301   :  { %5431 = vmatpush.bf16.msrb.mxu3 %v8368_v27  ;;  %5296 = vmatmul.bf16.vlgmr.msra.gmra.mxu2 %v10446_v9  ;;  %v8619_v27 = vld [vmem:[#allocation7 + $0x688] sm:$0xf]  ;;  %v8112_v47 = vor.u32 %v9532_v3, %v8109_v48  ;;  %v9660_v3 = vld [vmem:[#allocation7 + $0x68c] sm:$0xf] }
 0x302   :  { %5445 = vmatpush.bf16.msrb.mxu1 %v8496_v38  ;;  %5344 = vmatpush.bf16.msrb.mxu2 %v8668_v36  ;;  %v9662_v38 = vld [vmem:[#allocation7 + $0x694] sm:$0xf0]  ;;  %v9572_v36 = vld [vmem:[#allocation7 + $0x3cc] sm:$0xf] }
 0x303   :  { %5358 = vmatpush.bf16.msrb.mxu0 %v8796_v39  ;;  %v8620_v17 = vor.u32 %v9662_v38, %v8619_v27  ;;  %v8269_v39 = vld [vmem:[#allocation7 + $0x3d8] sm:$0xf0]  ;;  %v9524_v38 = vld [vmem:[#allocation7 + $0x24c] sm:$0xf] }
 0x304   :  { %5310 = vmatmul.bf16.vlgmr.msra.gmra.mxu0 %v10449_v23  ;;  %v8272_v24 = vor.u32 %v9572_v36, %v8269_v39  ;;  %v8080_v55 = vor.u32 %v9524_v38, %v8077_v25  ;;  %v8637_v39 = vld [vmem:[#allocation7 + $0x6b8] sm:$0xf0]  ;;  %v10642_v37 = vpop.f32.mrf.mxu1 }
 0x305   :  { %5432 = vmatpush.bf16.msrb.mxu3 %v8352_v14  ;;  %v8587_v14 = vld [vmem:[#allocation7 + $0x648] sm:$0xf] }
 0x306   :  { %5446 = vmatpush.bf16.msrb.mxu1 %v8480_v13  ;;  %5345 = vmatpush.bf16.msrb.mxu2 %v8652_v18  ;;  %v9654_v13 = vld [vmem:[#allocation7 + $0x654] sm:$0xf0]  ;;  %v9564_v18 = vld [vmem:[#allocation7 + $0x38c] sm:$0xf] }
 0x307   :  { %5359 = vmatpush.bf16.msrb.mxu0 %v8780_v2  ;;  %v8588_v15 = vor.u32 %v9654_v13, %v8587_v14  ;;  %v8237_v2 = vld [vmem:[#allocation7 + $0x398] sm:$0xf0]  ;;  %v10630_v14 = vpop.f32.mrf.mxu0  ;;  %v10632_v13 = vpop.f32.mrf.mxu3 }
 0x309   :  { %5433 = vmatpush.bf16.msrb.mxu3 %v8336_v49  ;;  %v9544_v49 = vld [vmem:[#allocation7 + $0x2ec] sm:$0xf] }
 0x30a   :  { %5447 = vmatpush.bf16.msrb.mxu1 %v8464_v53  ;;  %5346 = vmatpush.bf16.msrb.mxu2 %v8636_v41  ;;  %v8157_v53 = vld [vmem:[#allocation7 + $0x2f8] sm:$0xf0] }
 0x30b   :  { %5360 = vmatpush.bf16.msrb.mxu0 %v8764_v44  ;;  %v8160_v12 = vor.u32 %v9544_v49, %v8157_v53  ;;  %v8221_v41 = vld [vmem:[#allocation7 + $0x378] sm:$0xf0] }
 0x30c   :  { %v8224_v27 = vor.u32 %v9560_v52, %v8221_v41  ;;  %v9720_v52 = vld [vmem:[#allocation10 + $0x64] sm:$0xf0]  ;;  %v8915_v41 = vld [vmem:[#allocation10 + $0xe0] sm:$0xf] }
 0x30d   :  { %5434 = vmatpush.bf16.msrb.mxu3 %v8320_v19  ;;  %v9536_v19 = vld [vmem:[#allocation7 + $0x2ac] sm:$0xf] }
 0x30e   :  { %5448 = vmatpush.bf16.msrb.mxu1 %v8448_v11  ;;  %5347 = vmatpush.bf16.msrb.mxu2 %v8620_v17  ;;  %v8125_v11 = vld [vmem:[#allocation7 + $0x2b8] sm:$0xf0]  ;;  %v9556_v17 = vld [vmem:[#allocation7 + $0x34c] sm:$0xf] }
 0x30f   :  { %5361 = vmatpush.bf16.msrb.mxu0 %v8748_v22  ;;  %v8128_v57 = vor.u32 %v9536_v19, %v8125_v11  ;;  %v8205_v22 = vld [vmem:[#allocation7 + $0x358] sm:$0xf0]  ;;  %v10640_v56 = vpop.f32.mrf.mxu0  ;;  %v8859_v19 = vld [vmem:[#allocation10 + $0x70] sm:$0xf] }
 0x310   :  { %v8208_v62 = vor.u32 %v9556_v17, %v8205_v22  ;;  %v9722_v11 = vld [vmem:[#allocation10 + $0x74] sm:$0xf0] }
 0x311   :  { %5435 = vmatpush.bf16.msrb.mxu3 %v8304_v33  ;;  %v8240_v33 = vor.u32 %v9564_v18, %v8237_v2 }
 0x312   :  { %5449 = vmatpush.bf16.msrb.mxu1 %v8432_v34  ;;  %5348 = vmatpush.bf16.msrb.mxu2 %v8604_v32  ;;  %v9528_v34 = vld [vmem:[#allocation7 + $0x26c] sm:$0xf] }
 0x313   :  { %5362 = vmatpush.bf16.msrb.mxu0 %v8732_v30  ;;  %v8096_v44 = vor.u32 %v9528_v34, %v8093_v46  ;;  %v9552_v32 = vld [vmem:[#allocation7 + $0x32c] sm:$0xf]  ;;  %v8189_v30 = vld [vmem:[#allocation7 + $0x338] sm:$0xf0]  ;;  %v8851_v46 = vld [vmem:[#allocation10 + $0x60] sm:$0xf] }
 0x314   :  { %5436 = vmatmul.bf16.vlgmr.msrb.gmra.mxu3 %v10504_v5  ;;  %v8699_v5 = vld [vmem:[#allocation7 + $0x728] sm:$0xf]  ;;  %v8192_v35 = vor.u32 %v9552_v32, %v8189_v30  ;;  %v8749_v34 = vld [vmem:[#allocation7 + $0x798] sm:$0xf0]  ;;  %v8843_v32 = vld [vmem:[#allocation10 + $0x50] sm:$0xf] }
 0x315   :  { %5450 = vmatmul.bf16.vlgmr.msrb.gmra.mxu1 %v10506_v26  ;;  %v8572_v26 = vor.u32 %v9650_v61, %v8571_v20  ;;  %v8700_v6 = vor.u32 %v9682_v8, %v8699_v5  ;;  %v9548_v20 = vld [vmem:[#allocation7 + $0x30c] sm:$0xf]  ;;  %v8173_v61 = vld [vmem:[#allocation7 + $0x318] sm:$0xf0] }
 0x316   :  { %5349 = vmatpush.bf16.msrb.mxu2 %v8588_v15  ;;  %v9516_v15 = vld [vmem:[#allocation7 + $0x20c] sm:$0xf]  ;;  %v8669_v8 = vld [vmem:[#allocation7 + $0x6f8] sm:$0xf0]  ;;  %v8176_v54 = vor.u32 %v9548_v20, %v8173_v61  ;;  %v10652_v61 = vpop.f32.mrf.mxu1 }
 0x317   :  { %5363 = vmatpush.bf16.msrb.mxu0 %v8716_v31  ;;  %v8045_v31 = vld [vmem:[#allocation7 + $0x218] sm:$0xf0]  ;;  %v9672_v5 = vld [vmem:[#allocation7 + $0x6ec] sm:$0xf] }
 0x318   :  { %v8048_v21 = vor.u32 %v9516_v15, %v8045_v31  ;;  %v8672_v49 = vor.u32 %v9672_v5, %v8669_v8  ;;  %v9718_v30 = vld [vmem:[#allocation10 + $0x54] sm:$0xf0]  ;;  %v9652_v31 = vld [vmem:[#allocation7 + $0x64c] sm:$0xf]  ;;  %v8736_v8 = vor.u32 %v9688_v10, %v8733_v29 }
 0x319   :  { %v9734_v15 = vld [vmem:[#allocation10 + $0xd4] sm:$0xf0] }
 0x31a   :  { %5350 = vmatpush.bf16.msrb.mxu2 %v8572_v26  ;;  %v9704_v26 = vld [vmem:[#allocation7 + $0x7ec] sm:$0xf] }
 0x31b   :  { %5364 = vmatpush.bf16.msrb.mxu0 %v8700_v6  ;;  %v8797_v6 = vld [vmem:[#allocation7 + $0x7f8] sm:$0xf0] }
 0x31c   :  { %v8800_v53 = vor.u32 %v9704_v26, %v8797_v6  ;;  %v8589_v26 = vld [vmem:[#allocation7 + $0x658] sm:$0xf0]  ;;  %v9684_v6 = vld [vmem:[#allocation7 + $0x74c] sm:$0xf] }
 0x31e   :  { %5351 = vmatpush.bf16.msrb.mxu2 %v8556_v60  ;;  %v9700_v60 = vld [vmem:[#allocation7 + $0x7cc] sm:$0xf] }
 0x31f   :  { %5365 = vmatpush.bf16.msrb.mxu0 %v8684_v0  ;;  %v8781_v0 = vld [vmem:[#allocation7 + $0x7d8] sm:$0xf0] }
 0x320   :  { %v8784_v36 = vor.u32 %v9700_v60, %v8781_v0  ;;  %v9732_v60 = vld [vmem:[#allocation10 + $0xc4] sm:$0xf0] }
 0x321   :  { %5352 = vmatmul.bf16.vlgmr.msrb.gmra.mxu2 %v10606_v7  ;;  %v9648_v0 = vld [vmem:[#allocation7 + $0x62c] sm:$0xf] }
 0x322   :  { %5400 = vmatpush.bf16.msra.mxu2 %v8160_v12  ;;  %5366 = vmatmul.bf16.vlgmr.msrb.gmra.mxu0 %v10608_v40  ;;  %v10638_v12 = vpop.f32.mrf.mxu3 }
 0x323   :  { %5414 = vmatpush.bf16.msra.mxu0 %v8288_v59  ;;  %v9664_v59 = vld [vmem:[#allocation7 + $0x6ac] sm:$0xf] }
 0x324   :  { %v8640_v18 = vor.u32 %v9664_v59, %v8637_v39 }
 0x326   :  { %5401 = vmatpush.bf16.msra.mxu2 %v8144_v50  ;;  %v9696_v50 = vld [vmem:[#allocation7 + $0x7ac] sm:$0xf] }
 0x327   :  { %5415 = vmatpush.bf16.msra.mxu0 %v8272_v24  ;;  %v8765_v24 = vld [vmem:[#allocation7 + $0x7b8] sm:$0xf0] }
 0x328   :  { %v8768_v2 = vor.u32 %v9696_v50, %v8765_v24  ;;  %v8573_v50 = vld [vmem:[#allocation7 + $0x638] sm:$0xf0]  ;;  %v9680_v24 = vld [vmem:[#allocation7 + $0x72c] sm:$0xf] }
 0x32a   :  { %5402 = vmatpush.bf16.msra.mxu2 %v8128_v57  ;;  %v8860_v57 = vor.u32 %v9722_v11, %v8859_v19  ;;  %v10648_v25 = vpop.f32.mrf.mxu3  ;;  %v8701_v19 = vld [vmem:[#allocation7 + $0x738] sm:$0xf0]  ;;  %v8827_v11 = vld [vmem:[#allocation10 + $0x30] sm:$0xf] }
 0x32b   :  { %5416 = vmatpush.bf16.msra.mxu0 %v8256_v4  ;;  %v9738_v4 = vld [vmem:[#allocation10 + $0xf4] sm:$0xf0] }
 0x32c   :  { %v8924_v48 = vor.u32 %v9738_v4, %v8923_v16  ;;  %5971 = vmatpush.bf16.msra.mxu3 %v8860_v57  ;;  %v9714_v16 = vld [vmem:[#allocation10 + $0x34] sm:$0xf0]  ;;  %v8891_v57 = vld [vmem:[#allocation10 + $0xb0] sm:$0xf] }
 0x32e   :  { %5403 = vmatpush.bf16.msra.mxu2 %v8112_v47  ;;  %v8621_v47 = vld [vmem:[#allocation7 + $0x698] sm:$0xf0]  ;;  %5985 = vmatpush.bf16.msra.mxu1 %v8924_v48 }
 0x32f   :  { %5417 = vmatpush.bf16.msra.mxu0 %v8240_v33  ;;  %v9692_v33 = vld [vmem:[#allocation7 + $0x78c] sm:$0xf]  ;;  %v8624_v22 = vor.u32 %v9660_v3, %v8621_v47  ;;  %v8828_v3 = vor.u32 %v9714_v16, %v8827_v11  ;;  %v9730_v48 = vld [vmem:[#allocation10 + $0xb4] sm:$0xf0]  ;;  %v8704_v47 = vor.u32 %v9680_v24, %v8701_v19  ;;  %v9719_v11 = vld [vmem:[#allocation10 + $0x64] sm:$0xf] }
 0x330   :  { %v8853_v16 = vld [vmem:[#allocation10 + $0x68] sm:$0xf0] }
 0x332   :  { %5404 = vmatpush.bf16.msra.mxu2 %v8096_v44  ;;  %v10646_v44 = vpop.f32.mrf.mxu2  ;;  %v5157_v4 = vpop.f32.mrf.mxu3 }
 0x333   :  { %5418 = vmatpush.bf16.msra.mxu0 %v8224_v27  ;;  %v9656_v27 = vld [vmem:[#allocation7 + $0x66c] sm:$0xf] }
 0x336   :  { %5405 = vmatpush.bf16.msra.mxu2 %v8080_v55  ;;  %v8752_v55 = vor.u32 %v9692_v33, %v8749_v34  ;;  %v9644_v33 = vld [vmem:[#allocation7 + $0x60c] sm:$0xf]  ;;  %v8557_v34 = vld [vmem:[#allocation7 + $0x618] sm:$0xf0] }
 0x337   :  { %5419 = vmatpush.bf16.msra.mxu0 %v8208_v62  ;;  %v8605_v62 = vld [vmem:[#allocation7 + $0x678] sm:$0xf0]  ;;  %v8560_v10 = vor.u32 %v9644_v33, %v8557_v34  ;;  %v9717_v33 = vld [vmem:[#allocation10 + $0x54] sm:$0xf]  ;;  %v8845_v34 = vld [vmem:[#allocation10 + $0x58] sm:$0xf0] }
 0x338   :  { %v8608_v5 = vor.u32 %v9656_v27, %v8605_v62 }
 0x33a   :  { %5406 = vmatpush.bf16.msra.mxu2 %v8064_v51  ;;  %v8907_v51 = vld [vmem:[#allocation10 + $0xd0] sm:$0xf] }
 0x33b   :  { %5420 = vmatpush.bf16.msra.mxu0 %v8192_v35  ;;  %v8844_v35 = vor.u32 %v9718_v30, %v8843_v32  ;;  %v8908_v20 = vor.u32 %v9734_v15, %v8907_v51  ;;  %v8811_v32 = vld [vmem:[#allocation10 + $0x10] sm:$0xf]  ;;  %v9710_v30 = vld [vmem:[#allocation10 + $0x14] sm:$0xf0] }
 0x33c   :  { %v8875_v51 = vld [vmem:[#allocation10 + $0x90] sm:$0xf]  ;;  %v8812_v15 = vor.u32 %v9710_v30, %v8811_v32  ;;  %v9731_v32 = vld [vmem:[#allocation10 + $0xc4] sm:$0xf] }
 0x33d   :  { %v10650_v17 = vpop.f32.mrf.mxu0 }
 0x33e   :  { %5407 = vmatpush.bf16.msra.mxu2 %v8048_v21  ;;  %v8717_v21 = vld [vmem:[#allocation7 + $0x758] sm:$0xf0] }
 0x33f   :  { %5421 = vmatpush.bf16.msra.mxu0 %v8176_v54  ;;  %v8835_v54 = vld [vmem:[#allocation10 + $0x40] sm:$0xf]  ;;  %v8720_v39 = vor.u32 %v9684_v6, %v8717_v21  ;;  %v9708_v6 = vld [vmem:[#allocation10 + $0x4] sm:$0xf0] }
 0x340   :  { %v8867_v21 = vld [vmem:[#allocation10 + $0x80] sm:$0xf] }
 0x341   :  { %5408 = vmatmul.bf16.vlgmr.msra.gmra.mxu2 %v10446_v9  ;;  %v8852_v9 = vor.u32 %v9720_v52, %v8851_v46  ;;  %v9676_v46 = vld [vmem:[#allocation7 + $0x70c] sm:$0xf]  ;;  %v8685_v52 = vld [vmem:[#allocation7 + $0x718] sm:$0xf0] }
 0x342   :  { %5456 = vmatpush.bf16.msrb.mxu2 %v8672_v49  ;;  %5422 = vmatmul.bf16.vlgmr.msra.gmra.mxu0 %v10449_v23  ;;  %v9736_v23 = vld [vmem:[#allocation10 + $0xe4] sm:$0xf0]  ;;  %v8688_v29 = vor.u32 %v9676_v46, %v8685_v52  ;;  %v9733_v46 = vld [vmem:[#allocation10 + $0xd4] sm:$0xf] }
 0x343   :  { %5470 = vmatpush.bf16.msrb.mxu0 %v8800_v53  ;;  %v8916_v38 = vor.u32 %v9736_v23, %v8915_v41  ;;  %5972 = vmatpush.bf16.msra.mxu3 %v8852_v9  ;;  %v9716_v49 = vld [vmem:[#allocation10 + $0x44] sm:$0xf0]  ;;  %v8899_v53 = vld [vmem:[#allocation10 + $0xc0] sm:$0xf]  ;;  %v10654_v58 = vpop.f32.mrf.mxu2  ;;  %v5171_v23 = vpop.f32.mrf.mxu1 }
 0x344   :  { %v8836_v28 = vor.u32 %v9716_v49, %v8835_v54  ;;  %v8900_v59 = vor.u32 %v9732_v60, %v8899_v53  ;;  %v8819_v41 = vld [vmem:[#allocation10 + $0x20] sm:$0xf]  ;;  %v9712_v9 = vld [vmem:[#allocation10 + $0x24] sm:$0xf0]  ;;  %v8861_v60 = vld [vmem:[#allocation10 + $0x78] sm:$0xf0] }
 0x345   :  { %5986 = vmatpush.bf16.msra.mxu1 %v8916_v38  ;;  %v8820_v38 = vor.u32 %v9712_v9, %v8819_v41  ;;  %v9724_v53 = vld [vmem:[#allocation10 + $0x84] sm:$0xf0]  ;;  %v8848_v9 = vor.u32 %v9717_v33, %v8845_v34 }
 0x346   :  { %5457 = vmatpush.bf16.msrb.mxu2 %v8656_v42  ;;  %v10656_v42 = vpop.f32.mrf.mxu0 }
 0x347   :  { %5471 = vmatpush.bf16.msrb.mxu0 %v8784_v36  ;;  %5973 = vmatpush.bf16.msra.mxu3 %v8844_v35  ;;  %v8592_v36 = vor.u32 %v9652_v31, %v8589_v26  ;;  %v9726_v31 = vld [vmem:[#allocation10 + $0x94] sm:$0xf0]  ;;  %v8803_v26 = vld [vmem:[#allocation10] sm:$0xf] }
 0x348   :  { %v8804_v49 = vor.u32 %v9708_v6, %v8803_v26 }
 0x349   :  { %5987 = vmatpush.bf16.msra.mxu1 %v8908_v20  ;;  %v8876_v20 = vor.u32 %v9726_v31, %v8875_v51 }
 0x34a   :  { %5458 = vmatpush.bf16.msrb.mxu2 %v8640_v18  ;;  %v8892_v18 = vor.u32 %v9730_v48, %v8891_v57  ;;  %v9735_v57 = vld [vmem:[#allocation10 + $0xe4] sm:$0xf] }
 0x34b   :  { %5472 = vmatpush.bf16.msrb.mxu0 %v8768_v2  ;;  %5974 = vmatpush.bf16.msra.mxu3 %v8836_v28  ;;  %v8576_v2 = vor.u32 %v9648_v0, %v8573_v50  ;;  %v10658_v27 = vpop.f32.mrf.mxu2  ;;  %v9721_v28 = vld [vmem:[#allocation10 + $0x74] sm:$0xf]  ;;  %v5172_v0 = vadd.f32 %v5171_v23, %v5157_v4  ;;  %v8925_v50 = vld [vmem:[#allocation10 + $0xf8] sm:$0xf0]  ;;  %v8856_v4 = vor.u32 %v9719_v11, %v8853_v16 }
 0x34c   :  { %v8909_v23 = vld [vmem:[#allocation10 + $0xd8] sm:$0xf0] }
 0x34d   :  { %5988 = vmatpush.bf16.msra.mxu1 %v8900_v59  ;;  %v8868_v59 = vor.u32 %v9724_v53, %v8867_v21 }
 0x34e   :  { %5459 = vmatpush.bf16.msrb.mxu2 %v8624_v22  ;;  %v8883_v22 = vld [vmem:[#allocation10 + $0xa0] sm:$0xf]  ;;  %v5199_v35 = vpop.f32.mrf.mxu0 }
 0x34f   :  { %5473 = vmatpush.bf16.msrb.mxu0 %v8752_v55  ;;  %5975 = vmatpush.bf16.msra.mxu3 %v8828_v3  ;;  %v9728_v55 = vld [vmem:[#allocation10 + $0xa4] sm:$0xf0] }
 0x350   :  { %v8884_v62 = vor.u32 %v9728_v55, %v8883_v22  ;;  %v8912_v22 = vor.u32 %v9733_v46, %v8909_v23 }
 0x351   :  { %5989 = vmatpush.bf16.msra.mxu1 %v8892_v18 }
 0x352   :  { %5460 = vmatpush.bf16.msrb.mxu2 %v8608_v5  ;;  %v5159_v5 = vpop.f32.mrf.mxu3 }
 0x353   :  { %5474 = vmatpush.bf16.msrb.mxu0 %v8736_v8  ;;  %5976 = vmatpush.bf16.msra.mxu3 %v8820_v38  ;;  %v5060_v8 = vadd.f32 %v10628_v43, %v10626_v45  ;;  %v5185_v54 = vpop.f32.mrf.mxu2  ;;  %v5173_v45 = vpop.f32.mrf.mxu1 }
 0x354   :  { %v5186_v19 = vadd.f32 %v5185_v54, %v5172_v0  ;;  %v5174_v41 = vadd.f32 %v5173_v45, %v5159_v5  ;;  %v9713_v54 = vld [vmem:[#allocation10 + $0x34] sm:$0xf]  ;;  %v9711_v45 = vld [vmem:[#allocation10 + $0x24] sm:$0xf] }
 0x355   :  { %5990 = vmatpush.bf16.msra.mxu1 %v8884_v62  ;;  %v5074_v24 = vadd.f32 %v10636_v63, %v5060_v8 }
 0x356   :  { %5461 = vmatpush.bf16.msrb.mxu2 %v8592_v36  ;;  %v8864_v36 = vor.u32 %v9721_v28, %v8861_v60  ;;  %v5201_v3 = vpop.f32.mrf.mxu0 }
 0x357   :  { %5475 = vmatpush.bf16.msrb.mxu0 %v8720_v39  ;;  %5977 = vmatpush.bf16.msra.mxu3 %v8812_v15  ;;  %v9737_v39 = vld [vmem:[#allocation10 + $0xf4] sm:$0xf]  ;;  %v5088_v18 = vadd.f32 %v10630_v14, %v5074_v24  ;;  %v8901_v15 = vld [vmem:[#allocation10 + $0xc8] sm:$0xf0]  ;;  %v9727_v24 = vld [vmem:[#allocation10 + $0xa4] sm:$0xf] }
 0x358   :  { %v8928_v43 = vor.u32 %v9737_v39, %v8925_v50 }
 0x359   :  { %5991 = vmatpush.bf16.msra.mxu1 %v8876_v20  ;;  %v5102_v52 = vadd.f32 %v10638_v12, %v5088_v18 }
 0x35a   :  { %5462 = vmatpush.bf16.msrb.mxu2 %v8576_v2  ;;  %v5200_v2 = vadd.f32 %v5199_v35, %v5186_v19 }
 0x35b   :  { %5476 = vmatpush.bf16.msrb.mxu0 %v8704_v47  ;;  %5978 = vmatpush.bf16.msra.mxu3 %v8804_v49  ;;  %v5213_v47 = vpop.f32.mrf.mxu3  ;;  %v5187_v63 = vpop.f32.mrf.mxu2  ;;  %v5116_v30 = vadd.f32 %v10642_v37, %v5102_v52  ;;  %v8829_v49 = vld [vmem:[#allocation10 + $0x38] sm:$0xf0]  ;;  %v9729_v37 = vld [vmem:[#allocation10 + $0xb4] sm:$0xf] }
 0x35c   :  { %v5188_v55 = vadd.f32 %v5187_v63, %v5174_v41  ;;  %v5214_v14 = vadd.f32 %v5213_v47, %v5200_v2  ;;  %v5227_v62 = vpop.f32.mrf.mxu1  ;;  %v8832_v0 = vor.u32 %v9713_v54, %v8829_v49  ;;  %v8813_v47 = vld [vmem:[#allocation10 + $0x18] sm:$0xf0]  ;;  %v9725_v63 = vld [vmem:[#allocation10 + $0x94] sm:$0xf] }
 0x35d   :  { %5992 = vmatpush.bf16.msra.mxu1 %v8868_v59  ;;  %v5130_v20 = vadd.f32 %v10654_v58, %v5116_v30  ;;  %v8893_v59 = vld [vmem:[#allocation10 + $0xb8] sm:$0xf0] }
 0x35e   :  { %5463 = vmatpush.bf16.msrb.mxu2 %v8560_v10  ;;  %v9715_v10 = vld [vmem:[#allocation10 + $0x44] sm:$0xf]  ;;  %v5202_v5 = vadd.f32 %v5201_v3, %v5188_v55  ;;  %v5228_v8 = vadd.f32 %v5227_v62, %v5214_v14  ;;  %v8877_v41 = vld [vmem:[#allocation10 + $0x98] sm:$0xf0] }
 0x35f   :  { %5477 = vmatpush.bf16.msrb.mxu0 %v8688_v29  ;;  %6027 = vmatpush.bf16.msrb.mxu3 %v8864_v36  ;;  %v8837_v29 = vld [vmem:[#allocation10 + $0x48] sm:$0xf0]  ;;  %v8896_v36 = vor.u32 %v9729_v37, %v8893_v59  ;;  %v5144_v58 = vadd.f32 %v10650_v17, %v5130_v20  ;;  %v8880_v23 = vor.u32 %v9725_v63, %v8877_v41  ;;  %v9723_v55 = vld [vmem:[#allocation10 + $0x84] sm:$0xf]  ;;  %v9750_v63 = vld [vmem:[#allocation10 + $0x154] sm:$0xf0] }
 0x360   :  { %v8840_v35 = vor.u32 %v9715_v10, %v8837_v29  ;;  %v8869_v10 = vld [vmem:[#allocation10 + $0x88] sm:$0xf0] }
 0x361   :  { %5464 = vmatmul.bf16.vlgmr.msrb.gmra.mxu2 %v10606_v7  ;;  %6041 = vmatpush.bf16.msrb.mxu1 %v8928_v43  ;;  %v8917_v7 = vld [vmem:[#allocation10 + $0xe8] sm:$0xf0]  ;;  %v5255_v6 = vpop.f32.mrf.mxu0  ;;  %v8872_v30 = vor.u32 %v9723_v55, %v8869_v10  ;;  %v9746_v10 = vld [vmem:[#allocation10 + $0x134] sm:$0xf0] }
 0x362   :  { %5478 = vmatmul.bf16.vlgmr.msrb.gmra.mxu0 %v10608_v40  ;;  %v5062_v40 = vadd.f32 %v10634_v1, %v10632_v13  ;;  %v8920_v48 = vor.u32 %v9735_v57, %v8917_v7  ;;  %v5491_v13 = vld [vmem:[#allocation1] sm:$0xff]  ;;  %v5492_v1 = vld [vmem:[#allocation1 + $0x9] sm:$0xff] }
 0x363   :  { %6028 = vmatpush.bf16.msrb.mxu3 %v8856_v4  ;;  %v5495_v51 = vpack.i.b16 %v5491_v13, %v5491_v13  ;;  %v5498_v12 = vpack.i.b16 %v5492_v1, %v5492_v1  ;;  %v8821_v43 = vld [vmem:[#allocation10 + $0x28] sm:$0xf0]  ;;  %v9707_v1 = vld [vmem:[#allocation10 + $0x4] sm:$0xf] }
 0x364   :  { %v5076_v38 = vadd.f32 %v10646_v44, %v5062_v40  ;;  %v8904_v44 = vor.u32 %v9731_v32, %v8901_v15  ;;  %v5241_v21 = vpop.f32.mrf.mxu2  ;;  %v8824_v57 = vor.u32 %v9711_v45, %v8821_v43  ;;  %v8885_v4 = vld [vmem:[#allocation10 + $0xa8] sm:$0xf0]  ;;  %v5229_v7 = vpop.f32.mrf.mxu1  ;;  %v9754_v45 = vld [vmem:[#allocation10 + $0x174] sm:$0xf0]  ;;  %v9051_v43 = vld [vmem:[#allocation10 + $0x1f0] sm:$0xf] }
 0x365   :  { %6042 = vmatpush.bf16.msrb.mxu1 %v8920_v48  ;;  %v5242_v53 = vadd.f32 %v5241_v21, %v5228_v8  ;;  %v5497_v28 = vperm.slane %v5495_v51, 0  ;;  %v5500_v60 = vperm.slane %v5498_v12, 0  ;;  %v8888_v40 = vor.u32 %v9727_v24, %v8885_v4 }
 0x366   :  { %v5090_v31 = vadd.f32 %v10640_v56, %v5076_v38  ;;  %v5215_v56 = vpop.f32.mrf.mxu3 }
 0x367   :  { %6029 = vmatpush.bf16.msrb.mxu3 %v8848_v9  ;;  %v5256_v39 = vadd.f32 %v5255_v6, %v5242_v53  ;;  %v5216_v50 = vadd.f32 %v5215_v56, %v5202_v5  ;;  %v5515_v11 = vunpack.c.l.bf16 %v5497_v28  ;;  %v5516_v16 = vunpack.c.l.bf16 %v5500_v60 }
 0x368   :  { %v5104_v26 = vadd.f32 %v10648_v25, %v5090_v31 }
 0x369   :  { %6043 = vmatpush.bf16.msrb.mxu1 %v8912_v22  ;;  %v5484_v19 = vpack.c.bf16 %v5256_v39, %v5144_v58  ;;  %v5230_v18 = vadd.f32 %v5229_v7, %v5216_v50  ;;  %v5257_v9 = vpop.f32.mrf.mxu0  ;;  %v8805_v22 = vld [vmem:[#allocation10 + $0x8] sm:$0xf0]  ;;  %v9043_v7 = vld [vmem:[#allocation10 + $0x1e0] sm:$0xf] }
 0x36a   :  { %v5118_v25 = vadd.f32 %v10652_v61, %v5104_v26  ;;  %v9709_v61 = vld [vmem:[#allocation10 + $0x14] sm:$0xf]  ;;  %v8808_v62 = vor.u32 %v9707_v1, %v8805_v22  ;;  %v9764_v22 = vld [vmem:[#allocation10 + $0x1c4] sm:$0xf0] }
 0x36b   :  { %6030 = vmatpush.bf16.msrb.mxu3 %v8840_v35  ;;  %v5507_v48 = vunpack.c.l.bf16 %v5484_v19  ;;  %v5508_v17 = vunpack.c.h.bf16 %v5484_v19  ;;  %v8816_v52 = vor.u32 %v9709_v61, %v8813_v47  ;;  %v9770_v19 = vld [vmem:[#allocation10 + $0x1f4] sm:$0xf0]  ;;  %v8971_v47 = vld [vmem:[#allocation10 + $0x150] sm:$0xf] }
 0x36c   :  { %v5132_v3 = vadd.f32 %v10658_v27, %v5118_v25  ;;  %v5243_v2 = vpop.f32.mrf.mxu2  ;;  %v8987_v25 = vld [vmem:[#allocation10 + $0x170] sm:$0xf]  ;;  %v9052_v4 = vor.u32 %v9770_v19, %v9051_v43  ;;  %v9756_v19 = vld [vmem:[#allocation10 + $0x184] sm:$0xf0] }
 0x36d   :  { %6044 = vmatpush.bf16.msrb.mxu1 %v8904_v44  ;;  %v5519_v33 = vadd.f32 %v5515_v11, %v5507_v48  ;;  %v5520_v34 = vadd.f32 %v5516_v16, %v5508_v17  ;;  %v5244_v46 = vadd.f32 %v5243_v2, %v5230_v18  ;;  %v8988_v24 = vor.u32 %v9754_v45, %v8987_v25  ;;  %v8995_v25 = vld [vmem:[#allocation10 + $0x180] sm:$0xf] }
 0x36e   :  { %v5146_v38 = vadd.f32 %v10656_v42, %v5132_v3  ;;  %v10678_v56 = vpop.f32.mrf.mxu3  ;;  %6013 = vmatpush.bf16.msra.mxu0 %v9052_v4  ;;  %v8996_v4 = vor.u32 %v9756_v19, %v8995_v25  ;;  %v8957_v25 = vld [vmem:[#allocation10 + $0x138] sm:$0xf0] }
 0x36f   :  { %6031 = vmatpush.bf16.msrb.mxu3 %v8832_v0  ;;  %v5527_v13 = vpack.c.bf16 %v5520_v34, %v5519_v33  ;;  %v5258_v27 = vadd.f32 %v5257_v9, %v5244_v46  ;;  %5999 = vmatpush.bf16.msra.mxu2 %v8988_v24  ;;  %v9035_v33 = vld [vmem:[#allocation10 + $0x1d0] sm:$0xf]  ;;  %v8972_v34 = vor.u32 %v9750_v63, %v8971_v47  ;;  %v9766_v46 = vld [vmem:[#allocation10 + $0x1d4] sm:$0xf0] }
 0x370   :  { %v9036_v9 = vor.u32 %v9766_v46, %v9035_v33 }
 0x371   :  { %6045 = vmatpush.bf16.msrb.mxu1 %v8896_v36  ;;  %v5486_v14 = vpack.c.bf16 %v5258_v27, %v5146_v38  ;;  %v5531_v29 = vunpack.c.l.bf16 %v5527_v13  ;;  %v5532_v32 = vunpack.c.h.bf16 %v5527_v13  ;;  %v10680_v36 = vpop.f32.mrf.mxu1  ;;  %v8963_v38 = vld [vmem:[#allocation10 + $0x140] sm:$0xf] }
 0x372   :  { %v9027_v27 = vld [vmem:[#allocation10 + $0x1c0] sm:$0xf]  ;;  %v5284_v45 = vadd.f32 %v10680_v36, %v10678_v56  ;;  %v8981_v56 = vld [vmem:[#allocation10 + $0x168] sm:$0xf0]  ;;  %v9767_v36 = vld [vmem:[#allocation10 + $0x1e4] sm:$0xf] }
 0x373   :  { %6032 = vmatpush.bf16.msrb.mxu3 %v8824_v57  ;;  %v5511_v51 = vunpack.c.l.bf16 %v5486_v14  ;;  %v5512_v12 = vunpack.c.h.bf16 %v5486_v14  ;;  %v5547_v35 = vmul.f32 0.20019531, %v5531_v29  ;;  %v5548_v15 = vmul.f32 0.20019531, %v5532_v32 }
 0x374   :  { %vm5539_vm9 = vcmp.gt.f32.partialorder %v5531_v29, 0.0  ;;  %vm5540_vm10 = vcmp.gt.f32.partialorder %v5532_v32, 0.0  ;;  %v9028_v55 = vor.u32 %v9764_v22, %v9027_v27  ;;  %v9019_v29 = vld [vmem:[#allocation10 + $0x1b0] sm:$0xf] }
 0x375   :  { %6046 = vmatpush.bf16.msrb.mxu1 %v8888_v40  ;;  %v5523_v42 = vadd.f32 %v5515_v11, %v5511_v51  ;;  %v5524_v31 = vadd.f32 %v5516_v16, %v5512_v12  ;;  %v5555_v20 = vpack.c.bf16 %v5548_v15, %v5547_v35  ;;  %vm5559_vm13 = vmpackc.low %vm5540_vm10, %vm5539_vm9  ;;  %v8979_v11 = vld [vmem:[#allocation10 + $0x160] sm:$0xf]  ;;  %v9752_v16 = vld [vmem:[#allocation10 + $0x164] sm:$0xf0] }
 0x376   :  { %v10686_v50 = vpop.f32.mrf.mxu3  ;;  %v9768_v40 = vld [vmem:[#allocation10 + $0x1e4] sm:$0xf0]  ;;  %v8980_v3 = vor.u32 %v9752_v16, %v8979_v11  ;;  %v9753_v11 = vld [vmem:[#allocation10 + $0x174] sm:$0xf]  ;;  %v8989_v16 = vld [vmem:[#allocation10 + $0x178] sm:$0xf0] }
 0x377   :  { %6033 = vmatpush.bf16.msrb.mxu3 %v8816_v52  ;;  %v5529_v44 = vpack.c.bf16 %v5524_v31, %v5523_v42  ;;  %v5563_v54 = vsel %vm5559_vm13, %v5527_v13, %v5555_v20  ;;  %v9044_v48 = vor.u32 %v9768_v40, %v9043_v7  ;;  %v9748_v13 = vld [vmem:[#allocation10 + $0x144] sm:$0xf0]  ;;  %v8947_v42 = vld [vmem:[#allocation10 + $0x120] sm:$0xf]  ;;  %v8992_v7 = vor.u32 %v9753_v11, %v8989_v16  ;;  %v9769_v40 = vld [vmem:[#allocation10 + $0x1f4] sm:$0xf] }
 0x378   :  { %v5635_v37 = vunpack.c.l.b16 %v5563_v54  ;;  %v5636_v28 = vunpack.c.h.b16 %v5563_v54  ;;  %6000 = vmatpush.bf16.msra.mxu2 %v8980_v3  ;;  %v8964_v1 = vor.u32 %v9748_v13, %v8963_v38  ;;  %v9744_v31 = vld [vmem:[#allocation10 + $0x124] sm:$0xf0]  ;;  %v9011_v20 = vld [vmem:[#allocation10 + $0x1a0] sm:$0xf]  ;;  %v9003_v54 = vld [vmem:[#allocation10 + $0x190] sm:$0xf] }
 0x379   :  { %6047 = vmatpush.bf16.msrb.mxu1 %v8880_v23  ;;  %v5535_v5 = vunpack.c.l.bf16 %v5529_v44  ;;  %v5536_v8 = vunpack.c.h.bf16 %v5529_v44  ;;  %v10688_v57 = vpop.f32.mrf.mxu1  ;;  %6014 = vmatpush.bf16.msra.mxu0 %v9044_v48  ;;  %v9053_v3 = vld [vmem:[#allocation10 + $0x1f8] sm:$0xf0]  ;;  %v9045_v38 = vld [vmem:[#allocation10 + $0x1e8] sm:$0xf0]  ;;  %vm6190_vm13 = vcmask 7168  }
 0x37a   :  { %v9056_v63 = vor.u32 %v9769_v40, %v9053_v3  ;;  %v9048_v27 = vor.u32 %v9767_v36, %v9045_v38  ;;  %v8949_v3 = vld [vmem:[#allocation10 + $0x128] sm:$0xf0]  ;;  %v9741_v36 = vld [vmem:[#allocation10 + $0x114] sm:$0xf] }
 0x37b   :  { %6034 = vmatpush.bf16.msrb.mxu3 %v8808_v62  ;;  %vm5543_vm11 = vcmp.gt.f32.partialorder %v5535_v5, 0.0  ;;  %vm5544_vm12 = vcmp.gt.f32.partialorder %v5536_v8, 0.0  ;;  %v5551_v26 = vmul.f32 0.20019531, %v5535_v5  ;;  %v5552_v6 = vmul.f32 0.20019531, %v5536_v8  ;;  %v8955_v62 = vld [vmem:[#allocation10 + $0x130] sm:$0xf] }
 0x37c   :  { %vm5561_vm14 = vmpackc.low %vm5544_vm12, %vm5543_vm11  ;;  %6001 = vmatpush.bf16.msra.mxu2 %v8972_v34  ;;  %v8956_v32 = vor.u32 %v9746_v10, %v8955_v62  ;;  %v9760_v5 = vld [vmem:[#allocation10 + $0x1a4] sm:$0xf0]  ;;  %v9751_v34 = vld [vmem:[#allocation10 + $0x164] sm:$0xf] }
 0x37d   :  { %6048 = vmatpush.bf16.msrb.mxu1 %v8872_v30  ;;  %v5557_v21 = vpack.c.bf16 %v5552_v6, %v5551_v26  ;;  %6015 = vmatpush.bf16.msra.mxu0 %v9036_v9  ;;  %v9762_v30 = vld [vmem:[#allocation10 + $0x1b4] sm:$0xf0]  ;;  %v9012_v8 = vor.u32 %v9760_v5, %v9011_v20  ;;  %v8939_v6 = vld [vmem:[#allocation10 + $0x110] sm:$0xf]  ;;  %v8984_v9 = vor.u32 %v9751_v34, %v8981_v56  ;;  %v8973_v62 = vld [vmem:[#allocation10 + $0x158] sm:$0xf0] }
 0x37e   :  { %v10690_v17 = vpop.f32.mrf.mxu3  ;;  %v9020_v51 = vor.u32 %v9762_v30, %v9019_v29  ;;  %v9765_v10 = vld [vmem:[#allocation10 + $0x1d4] sm:$0xf]  ;;  %v9763_v5 = vld [vmem:[#allocation10 + $0x1c4] sm:$0xf] }
 0x37f   :  { %v5565_v49 = vsel %vm5561_vm14, %v5529_v44, %v5557_v21  ;;  %v8948_v44 = vor.u32 %v9744_v31, %v8947_v42  ;;  %v9742_v21 = vld [vmem:[#allocation10 + $0x114] sm:$0xf0]  ;;  %v5493_v31 = vld [vmem:[#allocation1 + $0x12] sm:$0xff]  ;;  %v9757_v38 = vld [vmem:[#allocation10 + $0x194] sm:$0xf] }
 0x380   :  { %v5639_v53 = vunpack.c.l.b16 %v5565_v49  ;;  %v5640_v60 = vunpack.c.h.b16 %v5565_v49  ;;  %6002 = vmatpush.bf16.msra.mxu2 %v8964_v1  ;;  %v8940_v49 = vor.u32 %v9742_v21, %v8939_v6  ;;  %v5286_v1 = vadd.f32 %v10688_v57, %v10686_v50  ;;  %v9747_v50 = vld [vmem:[#allocation10 + $0x144] sm:$0xf]  ;;  %v8965_v57 = vld [vmem:[#allocation10 + $0x148] sm:$0xf0] }
 0x381   :  { %v10682_v58 = vpop.f32.mrf.mxu0  ;;  %v10696_v61 = vpop.f32.mrf.mxu1  ;;  %6016 = vmatpush.bf16.msra.mxu0 %v9028_v55  ;;  %v9749_v55 = vld [vmem:[#allocation10 + $0x154] sm:$0xf]  ;;  %v8968_v6 = vor.u32 %v9747_v50, %v8965_v57  ;;  %v9029_v21 = vld [vmem:[#allocation10 + $0x1c8] sm:$0xf0] }
 0x382   :  { %v5643_v0 = vpack.c.b16 %v5639_v53, %v5635_v37  ;;  %v5644_v59 = vpack.c.b16 %v5640_v60, %v5636_v28  ;;  %v9758_v37 = vld [vmem:[#allocation10 + $0x194] sm:$0xf0] }
 0x383   :  { %v9004_v53 = vor.u32 %v9758_v37, %v9003_v54 }
 0x384   :  { %5979 = vmatmul.bf16.vlgmr.msra.gmra.mxu3 %v5643_v0  ;;  %5993 = vmatmul.bf16.vlgmr.msra.gmra.mxu1 %v5644_v59  ;;  %v10684_v39 = vpop.f32.mrf.mxu2 }
 0x385   :  { %6003 = vmatpush.bf16.msra.mxu2 %v8956_v32  ;;  %6017 = vmatpush.bf16.msra.mxu0 %v9020_v51  ;;  %v5298_v47 = vadd.f32 %v10684_v39, %v5284_v45  ;;  %v8976_v51 = vor.u32 %v9749_v55, %v8973_v62  ;;  %v9761_v45 = vld [vmem:[#allocation10 + $0x1b4] sm:$0xf] }
 0x386   :  { %v10702_v23 = vpop.f32.mrf.mxu3 }
 0x387   :  { %v5312_v13 = vadd.f32 %v10682_v58, %v5298_v47 }
 0x389   :  { %v10692_v18 = vpop.f32.mrf.mxu0  ;;  %v10704_v14 = vpop.f32.mrf.mxu1  ;;  %6004 = vmatpush.bf16.msra.mxu2 %v8948_v44  ;;  %6018 = vmatpush.bf16.msra.mxu0 %v9012_v8  ;;  %v5326_v58 = vadd.f32 %v10690_v17, %v5312_v13  ;;  %v5494_v44 = vld [vmem:[#allocation1 + $0x1b] sm:$0xff]  ;;  %v9005_v13 = vld [vmem:[#allocation10 + $0x198] sm:$0xf0] }
 0x38a   :  { %v5504_v37 = vpack.i.b16 %v5494_v44, %v5494_v44  ;;  %v9755_v44 = vld [vmem:[#allocation10 + $0x184] sm:$0xf] }
 0x38b   :  { %v5340_v17 = vadd.f32 %v10696_v61, %v5326_v58  ;;  %v9743_v61 = vld [vmem:[#allocation10 + $0x124] sm:$0xf] }
 0x38c   :  { %v10694_v2 = vpop.f32.mrf.mxu2  ;;  %v8952_v47 = vor.u32 %v9743_v61, %v8949_v3  ;;  %v9739_v58 = vld [vmem:[#allocation10 + $0x104] sm:$0xf] }
 0x38d   :  { %6005 = vmatpush.bf16.msra.mxu2 %v8940_v49  ;;  %6019 = vmatpush.bf16.msra.mxu0 %v9004_v53  ;;  %v5300_v29 = vadd.f32 %v10694_v2, %v5286_v1  ;;  %v5501_v49 = vpack.i.b16 %v5493_v31, %v5493_v31  ;;  %v9032_v53 = vor.u32 %v9763_v5, %v9029_v21  ;;  %v8933_v31 = vld [vmem:[#allocation10 + $0x108] sm:$0xf0] }
 0x38e   :  { %v5381_v12 = vpop.f32.mrf.mxu3  ;;  %v8936_v57 = vor.u32 %v9739_v58, %v8933_v31  ;;  %v8997_v5 = vld [vmem:[#allocation10 + $0x188] sm:$0xf0] }
 0x38f   :  { %v5314_v54 = vadd.f32 %v10692_v18, %v5300_v29  ;;  %v5503_v11 = vperm.slane %v5501_v49, 0  ;;  %v5506_v18 = vperm.slane %v5504_v37, 0 }
 0x391   :  { %v5395_v26 = vpop.f32.mrf.mxu1  ;;  %6020 = vmatpush.bf16.msra.mxu0 %v8996_v4  ;;  %v9021_v4 = vld [vmem:[#allocation10 + $0x1b8] sm:$0xf0]  ;;  %v5517_v1 = vunpack.c.l.bf16 %v5503_v11 }
 0x392   :  { %v5396_v48 = vadd.f32 %v5395_v26, %v5381_v12  ;;  %v9037_v12 = vld [vmem:[#allocation10 + $0x1d8] sm:$0xf0]  ;;  %v9024_v40 = vor.u32 %v9761_v45, %v9021_v4 }
 0x393   :  { %v9040_v20 = vor.u32 %v9765_v10, %v9037_v12 }
 0x394   :  { %6035 = vmatmul.bf16.vlgmr.msrb.gmra.mxu3 %v5643_v0  ;;  %6049 = vmatmul.bf16.vlgmr.msrb.gmra.mxu1 %v5644_v59  ;;  %v8931_v0 = vld [vmem:[#allocation10 + $0x100] sm:$0xf]  ;;  %v9740_v59 = vld [vmem:[#allocation10 + $0x104] sm:$0xf0] }
 0x395   :  { %v8932_v24 = vor.u32 %v9740_v59, %v8931_v0  ;;  %6069 = vmatpush.bf16.msrb.mxu0 %v9056_v63  ;;  %v9745_v59 = vld [vmem:[#allocation10 + $0x134] sm:$0xf]  ;;  %v9013_v63 = vld [vmem:[#allocation10 + $0x1a8] sm:$0xf0] }
 0x396   :  { %v5383_v43 = vpop.f32.mrf.mxu3  ;;  %v8960_v16 = vor.u32 %v9745_v59, %v8957_v25 }
 0x397   :  { %6006 = vmatpush.bf16.msra.mxu2 %v8932_v24 }
 0x399   :  { %v5397_v46 = vpop.f32.mrf.mxu1  ;;  %6070 = vmatpush.bf16.msrb.mxu0 %v9048_v27 }
 0x39a   :  { %v5398_v42 = vadd.f32 %v5397_v46, %v5383_v43  ;;  %v5328_v43 = vadd.f32 %v10702_v23, %v5314_v54  ;;  %v8941_v46 = vld [vmem:[#allocation10 + $0x118] sm:$0xf0] }
 0x39b   :  { %6055 = vmatpush.bf16.msrb.mxu2 %v8992_v7  ;;  %v8944_v62 = vor.u32 %v9741_v36, %v8941_v46 }
 0x39d   :  { %6071 = vmatpush.bf16.msrb.mxu0 %v9040_v20 }
 0x39e   :  { %v5437_v39 = vpop.f32.mrf.mxu3 }
 0x39f   :  { %v10698_v52 = vpop.f32.mrf.mxu0  ;;  %6056 = vmatpush.bf16.msrb.mxu2 %v8984_v9  ;;  %v5342_v9 = vadd.f32 %v10704_v14, %v5328_v43 }
 0x3a1   :  { %v5451_v2 = vpop.f32.mrf.mxu1  ;;  %6072 = vmatpush.bf16.msrb.mxu0 %v9032_v53 }
 0x3a3   :  { %6057 = vmatpush.bf16.msrb.mxu2 %v8976_v51 }
 0x3a4   :  { %v10700_v41 = vpop.f32.mrf.mxu2 }
 0x3a5   :  { %6073 = vmatpush.bf16.msrb.mxu0 %v9024_v40  ;;  %v6085_v40 = vld [vmem:[#allocation11] sm:$0x3] }
 0x3a6   :  { %6087 = vst [vmem:[#allocation1] ss:$9 sm:$0xff] %v6085_v40 }
 0x3a7   :  { %v10706_v35 = vpop.f32.mrf.mxu0  ;;  %6058 = vmatpush.bf16.msrb.mxu2 %v8968_v6 }
 0x3ab   :  { %6059 = vmatpush.bf16.msrb.mxu2 %v8960_v16 }
 0x3ac   :  { %v10708_v15 = vpop.f32.mrf.mxu2 }
 0x3ad   :  { %v5356_v55 = vadd.f32 %v10708_v15, %v5342_v9  ;;  %v6089_v36 = vld [vmem:[#allocation1 + $0x9] sm:$0xff] }
 0x3af   :  { %6060 = vmatpush.bf16.msrb.mxu2 %v8952_v47  ;;  %v5370_v20 = vadd.f32 %v10706_v35, %v5356_v55 }
 0x3b3   :  { %6061 = vmatpush.bf16.msrb.mxu2 %v8944_v62 }
 0x3b7   :  { %6062 = vmatpush.bf16.msrb.mxu2 %v8936_v57 }
 0x3bf   :  { %v5423_v28 = vpop.f32.mrf.mxu0 }
 0x3c4   :  { %v5409_v60 = vpop.f32.mrf.mxu2 }
 0x3c5   :  { %v5410_v33 = vadd.f32 %v5409_v60, %v5396_v48  ;;  %v9759_v48 = vld [vmem:[#allocation10 + $0x1a4] sm:$0xf] }
 0x3c6   :  { %v9016_v23 = vor.u32 %v9759_v48, %v9013_v63 }
 0x3c7   :  { %v5424_v22 = vadd.f32 %v5423_v28, %v5410_v33  ;;  %v5425_v32 = vpop.f32.mrf.mxu0  ;;  %v5354_v28 = vadd.f32 %v10700_v41, %v5340_v17  ;;  %v5439_v41 = vpop.f32.mrf.mxu3 }
 0x3c8   :  { %6074 = vmatpush.bf16.msrb.mxu0 %v9016_v23  ;;  %v6088_v23 = vld [vmem:[#allocation1] sm:$0xff] }
 0x3c9   :  { %v5438_v26 = vadd.f32 %v5437_v39, %v5424_v22  ;;  %v5368_v33 = vadd.f32 %v10698_v52, %v5354_v28  ;;  %v5518_v39 = vunpack.c.l.bf16 %v5506_v18  ;;  %v5453_v22 = vpop.f32.mrf.mxu1 }
 0x3cb   :  { %v5452_v0 = vadd.f32 %v5451_v2, %v5438_v26 }
 0x3cc   :  { %v5411_v30 = vpop.f32.mrf.mxu2 }
 0x3cd   :  { %v5412_v8 = vadd.f32 %v5411_v30, %v5398_v42 }
 0x3cf   :  { %v5426_v60 = vadd.f32 %v5425_v32, %v5412_v8  ;;  %v9008_v32 = vor.u32 %v9757_v38, %v9005_v13  ;;  %v9000_v8 = vor.u32 %v9755_v44, %v8997_v5  ;;  %v6090_v38 = vpack.i.b16 %v6088_v23, %v6088_v23  ;;  %v9784_v23 = vld [vmem:[#allocation2] ss:$0 sm:$0xff] }
 0x3d0   :  { %v6093_v13 = vpack.i.b16 %v6089_v36, %v6089_v36 }
 0x3d1   :  { %v5440_v56 = vadd.f32 %v5439_v41, %v5426_v60  ;;  %6075 = vmatpush.bf16.msrb.mxu0 %v9008_v32  ;;  %v6092_v62 = vperm.slane %v6090_v38, 0 }
 0x3d3   :  { %v5454_v29 = vadd.f32 %v5453_v22, %v5440_v56 }
 0x3d5   :  { %6076 = vmatpush.bf16.msrb.mxu0 %v9000_v8 }
 0x3df   :  { %v5479_v24 = vpop.f32.mrf.mxu0 }
 0x3e4   :  { %v5465_v19 = vpop.f32.mrf.mxu2 }
 0x3e5   :  { %v5466_v7 = vadd.f32 %v5465_v19, %v5452_v0 }
 0x3e7   :  { %v5480_v34 = vadd.f32 %v5479_v24, %v5466_v7  ;;  %v5481_v14 = vpop.f32.mrf.mxu0 }
 0x3e9   :  { %v5485_v27 = vpack.c.bf16 %v5480_v34, %v5368_v33 }
 0x3eb   :  { %v5509_v10 = vunpack.c.l.bf16 %v5485_v27  ;;  %v5510_v52 = vunpack.c.h.bf16 %v5485_v27 }
 0x3ec   :  { %v5467_v30 = vpop.f32.mrf.mxu2 }
 0x3ed   :  { %v5521_v51 = vadd.f32 %v5517_v1, %v5509_v10  ;;  %v5522_v12 = vadd.f32 %v5518_v39, %v5510_v52  ;;  %v5468_v42 = vadd.f32 %v5467_v30, %v5454_v29  ;;  %v6095_v10 = vperm.slane %v6093_v13, 0 }
 0x3ef   :  { %v5528_v50 = vpack.c.bf16 %v5522_v12, %v5521_v51  ;;  %v5482_v15 = vadd.f32 %v5481_v14, %v5468_v42  ;;  %v6100_v12 = vunpack.c.l.bf16 %v6092_v62  ;;  %v6101_v42 = vunpack.c.l.bf16 %v6095_v10 }
 0x3f1   :  { %v5487_v26 = vpack.c.bf16 %v5482_v15, %v5370_v20  ;;  %v5533_v6 = vunpack.c.l.bf16 %v5528_v50  ;;  %v5534_v21 = vunpack.c.h.bf16 %v5528_v50 }
 0x3f3   :  { %v5513_v2 = vunpack.c.l.bf16 %v5487_v26  ;;  %v5514_v54 = vunpack.c.h.bf16 %v5487_v26  ;;  %v5549_v49 = vmul.f32 0.20019531, %v5533_v6  ;;  %v5550_v37 = vmul.f32 0.20019531, %v5534_v21 }
 0x3f4   :  { %vm5541_vm15 = vcmp.gt.f32.partialorder %v5533_v6, 0.0  ;;  %vm5542_vm0 = vcmp.gt.f32.partialorder %v5534_v21, 0.0 }
 0x3f5   :  { %v5525_v53 = vadd.f32 %v5517_v1, %v5513_v2  ;;  %v5526_v17 = vadd.f32 %v5518_v39, %v5514_v54  ;;  %v5556_v35 = vpack.c.bf16 %v5550_v37, %v5549_v49  ;;  %vm5560_vm3 = vmpackc.low %vm5542_vm0, %vm5541_vm15 }
 0x3f7   :  { %v5530_v28 = vpack.c.bf16 %v5526_v17, %v5525_v53  ;;  %v5564_v43 = vsel %vm5560_vm3, %v5528_v50, %v5556_v35  ;;  %v6130_v35 = vld [vmem:[#allocation13] sm:$0x3] }
 0x3f8   :  { %v5637_v19 = vunpack.c.l.b16 %v5564_v43  ;;  %v5638_v18 = vunpack.c.h.b16 %v5564_v43  ;;  %v6133_v43 = vperm.slane %v6130_v35, 1 }
 0x3f9   :  { %v5537_v60 = vunpack.c.l.bf16 %v5530_v28  ;;  %v5538_v0 = vunpack.c.h.bf16 %v5530_v28 }
 0x3fb   :  { %vm5545_vm1 = vcmp.gt.f32.partialorder %v5537_v60, 0.0  ;;  %vm5546_vm2 = vcmp.gt.f32.partialorder %v5538_v0, 0.0  ;;  %v5553_v59 = vmul.f32 0.20019531, %v5537_v60  ;;  %v5554_v25 = vmul.f32 0.20019531, %v5538_v0 }
 0x3fc   :  { %vm5562_vm4 = vmpackc.low %vm5546_vm2, %vm5545_vm1 }
 0x3fd   :  { %v5558_v45 = vpack.c.bf16 %v5554_v25, %v5553_v59 }
 0x3ff   :  { %v5566_v24 = vsel %vm5562_vm4, %v5530_v28, %v5558_v45  ;;  %v6132_v45 = vperm.slane %v6130_v35, 0 }
 0x400   :  { %v5641_v11 = vunpack.c.l.b16 %v5566_v24  ;;  %v5642_v16 = vunpack.c.h.b16 %v5566_v24 }
 0x401   :  { %v5994_v3 = vpop.f32.mrf.mxu1 }
 0x402   :  { %v5645_v4 = vpack.c.b16 %v5641_v11, %v5637_v19  ;;  %v5646_v7 = vpack.c.b16 %v5642_v16, %v5638_v18 }
 0x404   :  { %6007 = vmatmul.bf16.vlgmr.msra.gmra.mxu2 %v5645_v4  ;;  %6021 = vmatmul.bf16.vlgmr.msra.gmra.mxu0 %v5646_v7 }
 0x407   :  { %v5980_v61 = vpop.f32.mrf.mxu3 }
 0x408   :  { %v5995_v9 = vadd.f32 %v5994_v3, %v5980_v61 }
 0x409   :  { %v5996_v63 = vpop.f32.mrf.mxu1 }
 0x40f   :  { %v5982_v41 = vpop.f32.mrf.mxu3 }
 0x410   :  { %v5997_v30 = vadd.f32 %v5996_v63, %v5982_v41 }
 0x411   :  { %v6050_v46 = vpop.f32.mrf.mxu1 }
 0x414   :  { %6063 = vmatmul.bf16.vlgmr.msrb.gmra.mxu2 %v5645_v4  ;;  %6077 = vmatmul.bf16.vlgmr.msrb.gmra.mxu0 %v5646_v7 }
 0x417   :  { %v6036_v56 = vpop.f32.mrf.mxu3 }
 0x418   :  { %v6051_v27 = vadd.f32 %v6050_v46, %v6036_v56 }
 0x419   :  { %v6052_v14 = vpop.f32.mrf.mxu1 }
 0x41f   :  { %v6038_v32 = vpop.f32.mrf.mxu3 }
 0x420   :  { %v6053_v58 = vadd.f32 %v6052_v14, %v6038_v32 }
 0x481   :  { %v6022_v48 = vpop.f32.mrf.mxu0 }
 0x487   :  { %v6008_v47 = vpop.f32.mrf.mxu2 }
 0x488   :  { %v6009_v1 = vadd.f32 %v6008_v47, %v5995_v9 }
 0x489   :  { %v6024_v33 = vpop.f32.mrf.mxu0 }
 0x48a   :  { %v6023_v52 = vadd.f32 %v6022_v48, %v6009_v1 }
 0x48f   :  { %v6010_v34 = vpop.f32.mrf.mxu2 }
 0x490   :  { %v6011_v31 = vadd.f32 %v6010_v34, %v5997_v30 }
 0x491   :  { %v6078_v39 = vpop.f32.mrf.mxu0 }
 0x492   :  { %v6025_v26 = vadd.f32 %v6024_v33, %v6011_v31 }
 0x497   :  { %v6064_v22 = vpop.f32.mrf.mxu2 }
 0x498   :  { %v6065_v55 = vadd.f32 %v6064_v22, %v6051_v27 }
 0x499   :  { %v6080_v8 = vpop.f32.mrf.mxu0 }
 0x49a   :  { %v6079_v29 = vadd.f32 %v6078_v39, %v6065_v55 }
 0x49c   :  { %v6083_v51 = vpack.c.bf16 %v6079_v29, %v6023_v52 }
 0x49e   :  { %v6096_v44 = vunpack.c.l.bf16 %v6083_v51  ;;  %v6097_v20 = vunpack.c.h.bf16 %v6083_v51 }
 0x49f   :  { %v6066_v50 = vpop.f32.mrf.mxu2 }
 0x4a0   :  { %v6102_v15 = vadd.f32 %v6100_v12, %v6096_v44  ;;  %v6103_v57 = vadd.f32 %v6101_v42, %v6097_v20  ;;  %v6067_v5 = vadd.f32 %v6066_v50, %v6053_v58 }
 0x4a2   :  { %v6081_v6 = vadd.f32 %v6080_v8, %v6067_v5  ;;  %v6106_v21 = vpack.c.bf16 %v6103_v57, %v6102_v15 }
 0x4a4   :  { %v6084_v2 = vpack.c.bf16 %v6081_v6, %v6025_v26  ;;  %v6108_v54 = vunpack.c.l.bf16 %v6106_v21  ;;  %v6109_v49 = vunpack.c.h.bf16 %v6106_v21 }
 0x4a6   :  { %v6098_v37 = vunpack.c.l.bf16 %v6084_v2  ;;  %v6099_v53 = vunpack.c.h.bf16 %v6084_v2  ;;  %vm6112_vm5 = vcmp.gt.f32.partialorder %v6108_v54, 0.0  ;;  %vm6113_vm6 = vcmp.gt.f32.partialorder %v6109_v49, 0.0 }
 0x4a7   :  { %v6116_v17 = vmul.f32 0.20019531, %v6108_v54  ;;  %v6117_v28 = vmul.f32 0.20019531, %v6109_v49  ;;  %vm6122_vm7 = vmpackc.low %vm6113_vm6, %vm6112_vm5 }
 0x4a8   :  { %v6104_v60 = vadd.f32 %v6100_v12, %v6098_v37  ;;  %v6105_v0 = vadd.f32 %v6101_v42, %v6099_v53 }
 0x4a9   :  { %v6120_v59 = vpack.c.bf16 %v6117_v28, %v6116_v17 }
 0x4aa   :  { %v6107_v25 = vpack.c.bf16 %v6105_v0, %v6104_v60 }
 0x4ab   :  { %v6124_v24 = vsel %vm6122_vm7, %v6106_v21, %v6120_v59 }
 0x4ac   :  { %v6126_v19 = vunpack.c.l.bf16 %v6124_v24  ;;  %v6127_v11 = vunpack.c.h.bf16 %v6124_v24  ;;  %v6110_v18 = vunpack.c.l.bf16 %v6107_v25  ;;  %v6111_v16 = vunpack.c.h.bf16 %v6107_v25 }
 0x4ae   :  { %v6136_v4 = vmul.f32 %v6132_v45, %v6126_v19  ;;  %v6137_v7 = vmul.f32 %v6133_v43, %v6127_v11  ;;  %vm6114_vm8 = vcmp.gt.f32.partialorder %v6110_v18, 0.0  ;;  %vm6115_vm9 = vcmp.gt.f32.partialorder %v6111_v16, 0.0 }
 0x4af   :  { %v6118_v40 = vmul.f32 0.20019531, %v6110_v18  ;;  %v6119_v61 = vmul.f32 0.20019531, %v6111_v16  ;;  %vm6123_vm10 = vmpackc.low %vm6115_vm9, %vm6114_vm8 }
 0x4b0   :  { %v6140_v3 = vadd.f32 %v6137_v7, %v6136_v4 }
 0x4b1   :  { %v6121_v48 = vpack.c.bf16 %v6119_v61, %v6118_v40 }
 0x4b2   :  { %6141 = vadd.xlane.f32.xlu0 %v6140_v3 }
 0x4b3   :  { %v6125_v41 = vsel %vm6123_vm10, %v6107_v25, %v6121_v48 }
 0x4b4   :  { %v6128_v47 = vunpack.c.l.bf16 %v6125_v41  ;;  %v6129_v63 = vunpack.c.h.bf16 %v6125_v41 }
 0x4b6   :  { %v6138_v33 = vmul.f32 %v6132_v45, %v6128_v47  ;;  %v6139_v34 = vmul.f32 %v6133_v43, %v6129_v63 }
 0x4b8   :  { %v6143_v56 = vadd.f32 %v6139_v34, %v6138_v33 }
 0x4ba   :  { %6144 = vadd.xlane.f32.xlu0 %v6143_v56 }
 0x525   :  { %v6142_v36 = vpop.xlane.xlu0 %6141 }
 0x526   :  { %v6150_v46 = vadd.f32 %v9784_v23, %v6142_v36 }
 0x528   :  { %v9057_v9 = vmul.f32 -1.442695, %v6150_v46 }
 0x52a   :  { %9785 = vpow2.f32 %v9057_v9 }
 0x52d   :  { %v6145_v38 = vpop.xlane.xlu0 %6144 }
 0x52e   :  { %v6151_v13 = vadd.f32 %v9784_v23, %v6145_v38 }
 0x530   :  { %v9786_v27 = vpop.eup %9785  ;;  %v9058_v1 = vmul.f32 -1.442695, %v6151_v13 }
 0x531   :  { %v6158_v39 = vadd.f32 1.0, %v9786_v27 }
 0x532   :  { %9787 = vpow2.f32 %v9058_v1 }
 0x533   :  { %9789 = vrcp.f32 %v6158_v39  ;;  %v6171_v29 = vand.u32 2147483648, %v6158_v39  ;;  %v6169_v30 = vand.u32 2147483647, %v6158_v39  ;;  %vm6165_vm12 = vweird.f32 %v6158_v39 }
 0x535   :  { %v6172_v42 = vor.u32 1.1754944e-38, %v6171_v29  ;;  %vm6170_vm15 = vcmp.eq.f32.partialorder %v6169_v30, 8.507059e+37 }
 0x538   :  { %v9788_v22 = vpop.eup %9787 }
 0x539   :  { %v9790_v55 = vpop.eup %9789  ;;  %v6159_v62 = vadd.f32 1.0, %v9788_v22 }
 0x53a   :  { %v6161_v10 = vmul.f32 %v9790_v55, %v6158_v39  ;;  %vm6166_vm11 = vweird.f32 %v9790_v55 }
 0x53b   :  { %9791 = vrcp.f32 %v6159_v62  ;;  %vm6167_vm14 = vmor %vm6165_vm12, %vm6166_vm11  ;;  %v6186_v20 = vand.u32 2147483648, %v6159_v62  ;;  %v6184_v15 = vand.u32 2147483647, %v6159_v62  ;;  %vm6180_vm1 = vweird.f32 %v6159_v62 }
 0x53c   :  { %v6162_v52 = vsub.f32 1.0, %v6161_v10 }
 0x53d   :  { %v6187_v5 = vor.u32 1.1754944e-38, %v6186_v20  ;;  %vm6185_vm3 = vcmp.eq.f32.partialorder %v6184_v15, 8.507059e+37 }
 0x53e   :  { %v6163_v32 = vmul.f32 %v9790_v55, %v6162_v52 }
 0x540   :  { %v6164_v51 = vadd.f32 %v9790_v55, %v6163_v32 }
 0x541   :  { %v9792_v12 = vpop.eup %9791 }
 0x542   :  { %v6168_v14 = vsel %vm6167_vm14, %v9790_v55, %v6164_v51  ;;  %v6176_v58 = vmul.f32 %v9792_v12, %v6159_v62  ;;  %vm6181_vm0 = vweird.f32 %v9792_v12 }
 0x543   :  { %v6173_v31 = vsel %vm6170_vm15, %v6172_v42, %v6168_v14  ;;  %vm6182_vm2 = vmor %vm6180_vm1, %vm6181_vm0 }
 0x544   :  { %6191 = vst.msk [vmem:[%s10743_s9] sm:$0xff] %vm6190_vm13, %v6173_v31  ;;  %v6177_v44 = vsub.f32 1.0, %v6176_v58 }
 0x546   :  { %v6178_v50 = vmul.f32 %v9792_v12, %v6177_v44 }
 0x548   :  { %v6179_v57 = vadd.f32 %v9792_v12, %v6178_v50 }
 0x54a   :  { %v6183_v8 = vsel %vm6182_vm2, %v9792_v12, %v6179_v57 }
 0x54b   :  { %v6188_v26 = vsel %vm6185_vm3, %v6187_v5, %v6183_v8 }
 0x54c   :  { %6192 = vst.msk [vmem:[%s10743_s9 + $0x8] sm:$0xff] %vm6190_vm13, %v6188_v26 }
 0x54d   :  { %6197 = vsyncpa [#allocation4], 1 }
 0x54e   :  { %6198 = vsyncpa [#allocation6], 1 }
 0x54f   :  { %6199 = vsyncpa [#allocation9], 1 }
 0x550   :  { %6200 = vsyncpa [#allocation12], 1 }

</bundles_post_ra>
